<compile_context>
chip_gen: v5e
topology: v5e:2x2
jax: 0.10.0
libtpu: 0.0.40
codegen_flags: <defaults>
</compile_context>

<pallas_src>
import jax
import jax.numpy as jnp
from jax.experimental import pallas as pl
from jax.experimental.pallas import tpu as pltpu

FCNUM = 256 * 10          # 2560
H1 = 128
H2 = 32
OUT_ROT, OUT_TRANS, OUT_COVAR = 3, 3, 6
FUSED_H1 = 3 * H1         # 384
FUSED_H2 = 3 * H2         # 96
OUT = OUT_ROT + OUT_TRANS + OUT_COVAR   # 12


def pose_regressor_kernel(x_ref, w1_ref, b1_ref, w2_ref, b2_ref, w3_ref, b3_ref,
                          out_ref):
    # Layer 1: (B,2560)bf16 @ (2560,384)bf16 -> f32 accumulate, bias, ReLU.
    h1 = jnp.dot(x_ref[...], w1_ref[...],
                 preferred_element_type=jnp.float32) + b1_ref[...]
    h1 = jnp.maximum(h1, 0.0)
    # Layer 2 (block-diagonal fused): (B,384) @ (384,96), bias, ReLU.
    h2 = jnp.dot(h1, w2_ref[...],
                 preferred_element_type=jnp.float32) + b2_ref[...]
    h2 = jnp.maximum(h2, 0.0)
    # Layer 3 (block-diagonal fused): (B,96) @ (96,12) + bias.
    # Output layout is already [rot(3) | trans(3) | covar(6)].
    out_ref[...] = jnp.dot(h2, w3_ref[...],
                           preferred_element_type=jnp.float32) + b3_ref[...]


def pose_regressor_forward(x, fused_params):
    """x: (B, ...) with prod(...) == FCNUM.  Returns (B, 12) = cat(rot, trans, covar)."""
    B = x.shape[0]
    x2d = x.reshape(B, -1)
    assert x2d.shape[1] == FCNUM
    # Cast once in the wrapper (bf16 MXU feed); kernel never re-casts.
    x2d = x2d.astype(jnp.bfloat16)

    w1, b1, w2, b2, w3, b3 = fused_params

    return pl.pallas_call(
        pose_regressor_kernel,
        out_shape=jax.ShapeDtypeStruct((B, OUT), jnp.float32),
        grid_spec=pltpu.PrefetchScalarGridSpec(
            num_scalar_prefetch=0,
            grid=(1,),                                               # single step
            in_specs=[
                pl.BlockSpec((B, FCNUM), lambda i: (0, 0)),          # x (bf16)
                pl.BlockSpec((FCNUM, FUSED_H1), lambda i: (0, 0)),   # W1 (bf16, fused)
                pl.BlockSpec((1, FUSED_H1), lambda i: (0, 0)),       # b1
                pl.BlockSpec((FUSED_H1, FUSED_H2), lambda i: (0, 0)),  # W2 (block-diag)
                pl.BlockSpec((1, FUSED_H2), lambda i: (0, 0)),       # b2
                pl.BlockSpec((FUSED_H2, OUT), lambda i: (0, 0)),     # W3 (block-diag)
                pl.BlockSpec((1, OUT), lambda i: (0, 0)),            # b3
            ],
            out_specs=pl.BlockSpec((B, OUT), lambda i: (0, 0)),
        ),
        compiler_params=pltpu.CompilerParams(
            dimension_semantics=("arbitrary",),
        ),
    )(x2d, w1, b1, w2, b2, w3, b3)


def init_params(key):
    """Per-head synthetic parameters matching nn.Linear shapes.

    Weights stored transposed vs. PyTorch: (in_features, out_features);
    biases as (1, out_features).
    """
    def linear_params(k, fan_in, fan_out):
        kw, kb = jax.random.split(k)
        bound = 1.0 / jnp.sqrt(fan_in)
        w = jax.random.uniform(kw, (fan_in, fan_out), jnp.float32, -bound, bound)
        b = jax.random.uniform(kb, (1, fan_out), jnp.float32, -bound, bound)
        return w, b

    keys = jax.random.split(key, 9)
    params = []
    # trans head
    params += linear_params(keys[0], FCNUM, H1)
    params += linear_params(keys[1], H1, H2)
    params += linear_params(keys[2], H2, OUT_TRANS)
    # rot head
    params += linear_params(keys[3], FCNUM, H1)
    params += linear_params(keys[4], H1, H2)
    params += linear_params(keys[5], H2, OUT_ROT)
    # covar head
    params += linear_params(keys[6], FCNUM, H1)
    params += linear_params(keys[7], H1, H2)
    params += linear_params(keys[8], H2, OUT_COVAR)
    return tuple(params)


def fuse_params(params):
    """Fuse the three heads (one-time, at init): wide layer-1 + block-diag tail.

    Head order is (rot, trans, covar) so the fused output is already the
    torch.cat((rot, trans, covar), dim=1) layout.  Layer-1 weights (~95% of
    bytes) are stored bf16; everything else stays f32.
    """
    (w1t, b1t, w2t, b2t, w3t, b3t,
     w1r, b1r, w2r, b2r, w3r, b3r,
     w1c, b1c, w2c, b2c, w3c, b3c) = params

    w1 = jnp.concatenate([w1r, w1t, w1c], axis=1).astype(jnp.bfloat16)   # (2560, 384)
    b1 = jnp.concatenate([b1r, b1t, b1c], axis=1)                        # (1, 384)

    w2 = jnp.zeros((FUSED_H1, FUSED_H2), jnp.float32)                    # (384, 96)
    w2 = w2.at[0:H1, 0:H2].set(w2r)
    w2 = w2.at[H1:2 * H1, H2:2 * H2].set(w2t)
    w2 = w2.at[2 * H1:3 * H1, 2 * H2:3 * H2].set(w2c)
    b2 = jnp.concatenate([b2r, b2t, b2c], axis=1)                        # (1, 96)

    w3 = jnp.zeros((FUSED_H2, OUT), jnp.float32)                         # (96, 12)
    w3 = w3.at[0:H2, 0:OUT_ROT].set(w3r)
    w3 = w3.at[H2:2 * H2, OUT_ROT:OUT_ROT + OUT_TRANS].set(w3t)
    w3 = w3.at[2 * H2:3 * H2, OUT_ROT + OUT_TRANS:OUT].set(w3c)
    b3 = jnp.concatenate([b3r, b3t, b3c], axis=1)                        # (1, 12)

    return (w1, b1, w2, b2, w3, b3)


def reference_forward(x, params):
    """Pure-JAX, UNFUSED per-head reference of the PyTorch forward.

    Uses the same bf16 quantization of the first-layer weights / input feed as
    the kernel, so the comparison validates both the fusion and the kernel.
    """
    B = x.shape[0]
    x2d = x.reshape(B, -1).astype(jnp.float32)
    xb = x2d.astype(jnp.bfloat16)
    (w1t, b1t, w2t, b2t, w3t, b3t,
     w1r, b1r, w2r, b2r, w3r, b3r,
     w1c, b1c, w2c, b2c, w3c, b3c) = params

    def head(w1, b1, w2, b2, w3, b3):
        h1 = jnp.dot(xb, w1.astype(jnp.bfloat16),
                     preferred_element_type=jnp.float32) + b1
        h1 = jnp.maximum(h1, 0.0)
        h2 = jnp.maximum(jnp.dot(h1, w2, preferred_element_type=jnp.float32) + b2, 0.0)
        return jnp.dot(h2, w3, preferred_element_type=jnp.float32) + b3

    rot = head(w1r, b1r, w2r, b2r, w3r, b3r)
    trans = head(w1t, b1t, w2t, b2t, w3t, b3t)
    covar = head(w1c, b1c, w2c, b2c, w3c, b3c)
    return jnp.concatenate([rot, trans, covar], axis=1)


if __name__ == "__main__":
    key = jax.random.PRNGKey(0)
    kx, kp = jax.random.split(key)

    B = 2
    # Input consistent with the module: flattens to (B, 256*10)
    x = jax.random.normal(kx, (B, 256, 10), dtype=jnp.float32)
    params = init_params(kp)
    fused = fuse_params(params)

    out = pose_regressor_forward(x, fused)
    out = jax.block_until_ready(out)
    assert out.shape == (B, 12), out.shape

    ref = jax.block_until_ready(reference_forward(x, params))
    # bf16 first-layer weights/input feed in both paths; tolerance covers f32
    # accumulation-order differences between the fused kernel and XLA's unfused dots.
    assert jnp.allclose(out, ref, atol=1e-2, rtol=1e-2), "mismatch vs reference"

    print("KERNEL_OK")
</pallas_src>

<mosaic_0001>
module attributes {stable_mosaic.version = 11 : i64} {
  func.func @pose_regressor_kernel(%arg0: i32, %arg1: memref<2x2560xbf16, #tpu.memory_space<vmem>>, %arg2: memref<2560x384xbf16, #tpu.memory_space<vmem>>, %arg3: memref<1x384xf32, #tpu.memory_space<vmem>>, %arg4: memref<384x96xf32, #tpu.memory_space<vmem>>, %arg5: memref<1x96xf32, #tpu.memory_space<vmem>>, %arg6: memref<96x12xf32, #tpu.memory_space<vmem>>, %arg7: memref<1x12xf32, #tpu.memory_space<vmem>>, %arg8: memref<2x12xf32, #tpu.memory_space<vmem>>) attributes {dimension_semantics = [#tpu.dimension_semantics<arbitrary>], iteration_bounds = array<i64: 1>, scalar_prefetch = 0 : i64, scratch_operands = 0 : i64, tpu.core_type = #tpu.core_type<tc>, window_params = [{pipeline_mode = #tpu.pipeline_mode<synchronous>, transform_indices = @transform_0, window_bounds = array<i64: 2, 2560>}, {pipeline_mode = #tpu.pipeline_mode<synchronous>, transform_indices = @transform_1, window_bounds = array<i64: 2560, 384>}, {pipeline_mode = #tpu.pipeline_mode<synchronous>, transform_indices = @transform_2, window_bounds = array<i64: 1, 384>}, {pipeline_mode = #tpu.pipeline_mode<synchronous>, transform_indices = @transform_3, window_bounds = array<i64: 384, 96>}, {pipeline_mode = #tpu.pipeline_mode<synchronous>, transform_indices = @transform_4, window_bounds = array<i64: 1, 96>}, {pipeline_mode = #tpu.pipeline_mode<synchronous>, transform_indices = @transform_5, window_bounds = array<i64: 96, 12>}, {pipeline_mode = #tpu.pipeline_mode<synchronous>, transform_indices = @transform_6, window_bounds = array<i64: 1, 12>}, {pipeline_mode = #tpu.pipeline_mode<synchronous>, transform_indices = @transform_7, window_bounds = array<i64: 2, 12>}]} {
    %c0 = arith.constant 0 : index
    %c0_0 = arith.constant 0 : index
    %0 = vector.load %arg1[%c0, %c0_0] : memref<2x2560xbf16, #tpu.memory_space<vmem>>, vector<2x2560xbf16>
    %c0_1 = arith.constant 0 : index
    %c0_2 = arith.constant 0 : index
    %1 = vector.load %arg2[%c0_1, %c0_2] : memref<2560x384xbf16, #tpu.memory_space<vmem>>, vector<2560x384xbf16>
    %cst = arith.constant dense<0.000000e+00> : vector<2x384xf32>
    %2 = tpu.matmul %0, %1, %cst {dimension_numbers = #tpu.dot_dimension_numbers<[1], [0], [0], [1], [0, 0, 1, 1], [], []>} : vector<2x2560xbf16>, vector<2560x384xbf16>, vector<2x384xf32> -> vector<2x384xf32>
    %c0_3 = arith.constant 0 : index
    %c0_4 = arith.constant 0 : index
    %3 = vector.load %arg3[%c0_3, %c0_4] : memref<1x384xf32, #tpu.memory_space<vmem>>, vector<1x384xf32>
    %4 = vector.broadcast %3 : vector<1x384xf32> to vector<2x384xf32>
    %5 = arith.addf %2, %4 : vector<2x384xf32>
    %cst_5 = arith.constant 0.000000e+00 : f32
    %6 = vector.broadcast %cst_5 : f32 to vector<2x384xf32>
    %7 = arith.maximumf %5, %6 : vector<2x384xf32>
    %c0_6 = arith.constant 0 : index
    %c0_7 = arith.constant 0 : index
    %8 = vector.load %arg4[%c0_6, %c0_7] : memref<384x96xf32, #tpu.memory_space<vmem>>, vector<384x96xf32>
    %cst_8 = arith.constant dense<0.000000e+00> : vector<2x96xf32>
    %9 = tpu.matmul %7, %8, %cst_8 {dimension_numbers = #tpu.dot_dimension_numbers<[1], [0], [0], [1], [0, 0, 1, 1], [], []>} : vector<2x384xf32>, vector<384x96xf32>, vector<2x96xf32> -> vector<2x96xf32>
    %c0_9 = arith.constant 0 : index
    %c0_10 = arith.constant 0 : index
    %10 = vector.load %arg5[%c0_9, %c0_10] : memref<1x96xf32, #tpu.memory_space<vmem>>, vector<1x96xf32>
    %11 = vector.broadcast %10 : vector<1x96xf32> to vector<2x96xf32>
    %12 = arith.addf %9, %11 : vector<2x96xf32>
    %cst_11 = arith.constant 0.000000e+00 : f32
    %13 = vector.broadcast %cst_11 : f32 to vector<2x96xf32>
    %14 = arith.maximumf %12, %13 : vector<2x96xf32>
    %c0_12 = arith.constant 0 : index
    %c0_13 = arith.constant 0 : index
    %15 = vector.load %arg6[%c0_12, %c0_13] : memref<96x12xf32, #tpu.memory_space<vmem>>, vector<96x12xf32>
    %cst_14 = arith.constant dense<0.000000e+00> : vector<2x12xf32>
    %16 = tpu.matmul %14, %15, %cst_14 {dimension_numbers = #tpu.dot_dimension_numbers<[1], [0], [0], [1], [0, 0, 1, 1], [], []>} : vector<2x96xf32>, vector<96x12xf32>, vector<2x12xf32> -> vector<2x12xf32>
    %c0_15 = arith.constant 0 : index
    %c0_16 = arith.constant 0 : index
    %17 = vector.load %arg7[%c0_15, %c0_16] : memref<1x12xf32, #tpu.memory_space<vmem>>, vector<1x12xf32>
    %18 = vector.broadcast %17 : vector<1x12xf32> to vector<2x12xf32>
    %19 = arith.addf %16, %18 : vector<2x12xf32>
    %c0_17 = arith.constant 0 : index
    %c0_18 = arith.constant 0 : index
    %20 = vector.load %arg8[%c0_17, %c0_18] : memref<2x12xf32, #tpu.memory_space<vmem>>, vector<2x12xf32>
    tpu.vector_store %arg8[%c0_17, %c0_18], %19 {strides = array<i32>} : memref<2x12xf32, #tpu.memory_space<vmem>>, vector<2x12xf32>,
    return
  }
  func.func @transform_0(%arg0: i32) -> (i32, i32) {
    %c0_i32 = arith.constant 0 : i32
    %c0_i32_0 = arith.constant 0 : i32
    %c0_i32_1 = arith.constant 0 : i32
    return %c0_i32, %c0_i32_0 : i32, i32
  }
  func.func @transform_1(%arg0: i32) -> (i32, i32) {
    %c0_i32 = arith.constant 0 : i32
    %c0_i32_0 = arith.constant 0 : i32
    %c0_i32_1 = arith.constant 0 : i32
    return %c0_i32, %c0_i32_0 : i32, i32
  }
  func.func @transform_2(%arg0: i32) -> (i32, i32) {
    %c0_i32 = arith.constant 0 : i32
    %c0_i32_0 = arith.constant 0 : i32
    %c0_i32_1 = arith.constant 0 : i32
    return %c0_i32, %c0_i32_0 : i32, i32
  }
  func.func @transform_3(%arg0: i32) -> (i32, i32) {
    %c0_i32 = arith.constant 0 : i32
    %c0_i32_0 = arith.constant 0 : i32
    %c0_i32_1 = arith.constant 0 : i32
    return %c0_i32, %c0_i32_0 : i32, i32
  }
  func.func @transform_4(%arg0: i32) -> (i32, i32) {
    %c0_i32 = arith.constant 0 : i32
    %c0_i32_0 = arith.constant 0 : i32
    %c0_i32_1 = arith.constant 0 : i32
    return %c0_i32, %c0_i32_0 : i32, i32
  }
  func.func @transform_5(%arg0: i32) -> (i32, i32) {
    %c0_i32 = arith.constant 0 : i32
    %c0_i32_0 = arith.constant 0 : i32
    %c0_i32_1 = arith.constant 0 : i32
    return %c0_i32, %c0_i32_0 : i32, i32
  }
  func.func @transform_6(%arg0: i32) -> (i32, i32) {
    %c0_i32 = arith.constant 0 : i32
    %c0_i32_0 = arith.constant 0 : i32
    %c0_i32_1 = arith.constant 0 : i32
    return %c0_i32, %c0_i32_0 : i32, i32
  }
  func.func @transform_7(%arg0: i32) -> (i32, i32) {
    %c0_i32 = arith.constant 0 : i32
    %c0_i32_0 = arith.constant 0 : i32
    %c0_i32_1 = arith.constant 0 : i32
    return %c0_i32, %c0_i32_0 : i32, i32
  }
}

</mosaic_0001>

<bundles_post_ra>
// kernel: tpu_custom_call.1
= control target key start
LH: loop header
LB: loop body
LE: loop exit
PB: predicated region body
PF: predicated region fallthrough
CT: control target
= control target key end

     0   :  { %12 = vsyncpa [#allocation3], 0  ;;  %s7255_s0 = inlined_call_operand.hbm [shape: bf16[2,2560], index: 0, kind: input, shape index: {}]   ;;  %s7256_s1 = inlined_call_operand.hbm [shape: bf16[2560,384], index: 1, kind: input, shape index: {}]   ;;  %s7257_s2 = inlined_call_operand.hbm [shape: f32[1,384], index: 2, kind: input, shape index: {}]   ;;  %s7258_s3 = inlined_call_operand.vmem [shape: f32[384,96], index: 3, kind: input, shape index: {}]   ;;  %s7259_s4 = inlined_call_operand.hbm [shape: f32[1,96], index: 4, kind: input, shape index: {}]   ;;  %s7260_s5 = inlined_call_operand.vmem [shape: f32[96,12], index: 5, kind: input, shape index: {}]   ;;  %s7261_s6 = inlined_call_operand.hbm [shape: f32[1,12], index: 6, kind: input, shape index: {}]   ;;  %s7262_s7 = inlined_call_operand.hbm [shape: f32[2,12], index: 7, kind: output, shape index: {}]  }
   0x1   :  { %13 = vsyncpa [#allocation6], 0 }
   0x2   :  { %14 = vsyncpa [#allocation9], 0  ;;  %s31_s26 = sshll.u32 %s7256_s1, 4  ;;  %s32_s26 = int_to_ptr.hbm [resolvable:$true] %s31_s26 }
   0x3   :  { %15 = vsyncpa [#allocation4], 0  ;;  %s6884_s27 = smov [#allocation5]   ;;  %s58_s8 = sshll.u32 %s7259_s4, 4  ;;  %s59_s8 = int_to_ptr.hbm [resolvable:$true] %s58_s8 }
   0x4   :  { %s33_s28 = sshll.u32 %s6884_s27, 4  ;;  %s6885_s9 = smov 192   ;;  %s34_s28 = int_to_ptr.vmem [resolvable:$true] %s33_s28 }
   0x5   :  { %s6886_s10 = smov 12   ;;  %s6887_s11 = smov [#allocation8]  }
   0x6   :  { %39 = dma.hbm_to_vmem [thread:$0]  %s32_s26, 61440, %s34_s28, [#allocation6], %s6885_s9, %s6885_s9, %s6886_s10  }
   0x7   :  { %s60_s12 = sshll.u32 %s6887_s11, 4  ;;  %s21_s15 = sshll.u32 %s7255_s0, 4  ;;  %s61_s12 = int_to_ptr.vmem [resolvable:$true] %s60_s12  ;;  %s22_s15 = int_to_ptr.hbm [resolvable:$true] %s21_s15 }
   0x8   :  { %63 = dma.hbm_to_vmem [thread:$0]  %s59_s8, 16, %s61_s12, [#allocation9]  }
   0x9   :  { %s45_s17 = sshll.u32 %s7257_s2, 4  ;;  %s6888_s18 = smov [#allocation2]   ;;  %s46_s17 = int_to_ptr.hbm [resolvable:$true] %s45_s17 }
   0xa   :  { %s23_s19 = sshll.u32 %s6888_s18, 4  ;;  %s6889_s4 = smov [#allocation7]   ;;  %s24_s19 = int_to_ptr.vmem [resolvable:$true] %s23_s19 }
   0xb   :  { %26 = dma.hbm_to_vmem [thread:$0]  %s22_s15, 320, %s24_s19, [#allocation3]  }
   0xc   :  { %s47_s20 = sshll.u32 %s6889_s4, 4  ;;  %s71_s23 = sshll.u32 %s7261_s6, 4  ;;  %s48_s20 = int_to_ptr.vmem [resolvable:$true] %s47_s20  ;;  %s72_s23 = int_to_ptr.hbm [resolvable:$true] %s71_s23 }
   0xd   :  { %50 = dma.hbm_to_vmem [thread:$0]  %s46_s17, 48, %s48_s20, [#allocation6]  }
   0xe   :  { %s6890_s0 = smov [#allocation10]  }
   0xf   :  { %s73_s24 = sshll.u32 %s6890_s0, 4  ;;  %s74_s24 = int_to_ptr.vmem [resolvable:$true] %s73_s24 }
  0x10   :  { %76 = dma.hbm_to_vmem [thread:$0]  %s72_s23, 16, %s74_s24, [#allocation9]  }
  0x11   :  { %6876 = dma.done.wait [#allocation3], 320  }
  0x12   :  { %6877 = vsyncadd [#allocation3], 4294966976 }
  0x13   :  { %6878 = dma.done.wait [#allocation6], 61488  }
  0x14   :  { %6879 = vsyncadd [#allocation6], 4294905808 }
  0x15   :  { %6880 = dma.done.wait [#allocation9], 32  }
  0x16   :  { %6881 = vsyncadd [#allocation9], 4294967264  ;;  %v4397_v0 = vld [vmem:[#allocation5 + $0xa8] sm:$0xf]  ;;  %v6254_v1 = vld [vmem:[#allocation5 + $0xb0] sm:$0xf0] }
  0x17   :  { %v4493_v2 = vld [vmem:[#allocation5 + $0x168] sm:$0xf]  ;;  %v4398_v3 = vor.u32 %v6254_v1, %v4397_v0  ;;  %v6278_v4 = vld [vmem:[#allocation5 + $0x170] sm:$0xf0]  ;;  %v4385_v11 = vld [vmem:[#allocation5 + $0x90] sm:$0xf] }
  0x18   :  { %v4589_v5 = vld [vmem:[#allocation5 + $0x228] sm:$0xf]  ;;  %v6302_v6 = vld [vmem:[#allocation5 + $0x230] sm:$0xf0]  ;;  %v4494_v7 = vor.u32 %v6278_v4, %v4493_v2  ;;  %v6251_v13 = vld [vmem:[#allocation5 + $0x98] sm:$0xf0] }
  0x19   :  { %v4590_v8 = vor.u32 %v6302_v6, %v4589_v5  ;;  %v4685_v9 = vld [vmem:[#allocation5 + $0x2e8] sm:$0xf]  ;;  %v6326_v10 = vld [vmem:[#allocation5 + $0x2f0] sm:$0xf0]  ;;  %3354 = vmatpush.bf16.msra.mxu0 %v4398_v3  ;;  %v4481_v14 = vld [vmem:[#allocation5 + $0x150] sm:$0xf]  ;;  %v4386_v16 = vor.u32 %v6251_v13, %v4385_v11 }
  0x1a   :  { %v4686_v12 = vor.u32 %v6326_v10, %v4685_v9  ;;  %v6275_v15 = vld [vmem:[#allocation5 + $0x158] sm:$0xf0]  ;;  %3367 = vmatpush.bf16.msra.mxu1 %v4494_v7  ;;  %v4577_v18 = vld [vmem:[#allocation5 + $0x210] sm:$0xf]  ;;  %v4373_v23 = vld [vmem:[#allocation5 + $0x78] sm:$0xf] }
  0x1b   :  { %3380 = vmatpush.bf16.msra.mxu2 %v4590_v8  ;;  %v4482_v17 = vor.u32 %v6275_v15, %v4481_v14  ;;  %v6299_v19 = vld [vmem:[#allocation5 + $0x218] sm:$0xf0]  ;;  %v4673_v20 = vld [vmem:[#allocation5 + $0x2d0] sm:$0xf]  ;;  %v6248_v24 = vld [vmem:[#allocation5 + $0x80] sm:$0xf0] }
  0x1c   :  { %3393 = vmatpush.bf16.msra.mxu3 %v4686_v12  ;;  %v4578_v21 = vor.u32 %v6299_v19, %v4577_v18  ;;  %v6323_v22 = vld [vmem:[#allocation5 + $0x2d8] sm:$0xf0]  ;;  %v4469_v26 = vld [vmem:[#allocation5 + $0x138] sm:$0xf]  ;;  %v6272_v27 = vld [vmem:[#allocation5 + $0x140] sm:$0xf0]  ;;  %v4374_v29 = vor.u32 %v6248_v24, %v4373_v23 }
  0x1d   :  { %v4674_v25 = vor.u32 %v6323_v22, %v4673_v20  ;;  %v4565_v28 = vld [vmem:[#allocation5 + $0x1f8] sm:$0xf]  ;;  %3355 = vmatpush.bf16.msra.mxu0 %v4386_v16  ;;  %v6296_v30 = vld [vmem:[#allocation5 + $0x200] sm:$0xf0]  ;;  %v4470_v33 = vor.u32 %v6272_v27, %v4469_v26  ;;  %v4361_v35 = vld [vmem:[#allocation5 + $0x60] sm:$0xf] }
  0x1e   :  { %v4661_v31 = vld [vmem:[#allocation5 + $0x2b8] sm:$0xf]  ;;  %v6320_v32 = vld [vmem:[#allocation5 + $0x2c0] sm:$0xf0]  ;;  %3368 = vmatpush.bf16.msra.mxu1 %v4482_v17  ;;  %v4566_v34 = vor.u32 %v6296_v30, %v4565_v28  ;;  %v6245_v36 = vld [vmem:[#allocation5 + $0x68] sm:$0xf0] }
  0x1f   :  { %3381 = vmatpush.bf16.msra.mxu2 %v4578_v21  ;;  %v4457_v37 = vld [vmem:[#allocation5 + $0x120] sm:$0xf]  ;;  %v4662_v38 = vor.u32 %v6320_v32, %v4661_v31  ;;  %v6269_v39 = vld [vmem:[#allocation5 + $0x128] sm:$0xf0]  ;;  %v4362_v44 = vor.u32 %v6245_v36, %v4361_v35  ;;  %v4349_v47 = vld [vmem:[#allocation5 + $0x48] sm:$0xf] }
  0x20   :  { %3394 = vmatpush.bf16.msra.mxu3 %v4674_v25  ;;  %v4553_v40 = vld [vmem:[#allocation5 + $0x1e0] sm:$0xf]  ;;  %v6293_v41 = vld [vmem:[#allocation5 + $0x1e8] sm:$0xf0]  ;;  %v4458_v45 = vor.u32 %v6269_v39, %v4457_v37  ;;  %v6242_v48 = vld [vmem:[#allocation5 + $0x50] sm:$0xf0] }
  0x21   :  { %v4649_v42 = vld [vmem:[#allocation5 + $0x2a0] sm:$0xf]  ;;  %v6317_v43 = vld [vmem:[#allocation5 + $0x2a8] sm:$0xf0]  ;;  %3356 = vmatpush.bf16.msra.mxu0 %v4374_v29  ;;  %v4554_v46 = vor.u32 %v6293_v41, %v4553_v40  ;;  %v4445_v49 = vld [vmem:[#allocation5 + $0x108] sm:$0xf]  ;;  %v4350_v56 = vor.u32 %v6242_v48, %v4349_v47 }
  0x22   :  { %3369 = vmatpush.bf16.msra.mxu1 %v4470_v33  ;;  %v4650_v50 = vor.u32 %v6317_v43, %v4649_v42  ;;  %v6266_v51 = vld [vmem:[#allocation5 + $0x110] sm:$0xf0]  ;;  %v4541_v52 = vld [vmem:[#allocation5 + $0x1c8] sm:$0xf]  ;;  %v4337_v59 = vld [vmem:[#allocation5 + $0x30] sm:$0xf] }
  0x23   :  { %3382 = vmatpush.bf16.msra.mxu2 %v4566_v34  ;;  %v6290_v53 = vld [vmem:[#allocation5 + $0x1d0] sm:$0xf0]  ;;  %v4637_v54 = vld [vmem:[#allocation5 + $0x288] sm:$0xf]  ;;  %v4446_v57 = vor.u32 %v6266_v51, %v4445_v49  ;;  %v6239_v60 = vld [vmem:[#allocation5 + $0x38] sm:$0xf0] }
  0x24   :  { %3395 = vmatpush.bf16.msra.mxu3 %v4662_v38  ;;  %v6314_v55 = vld [vmem:[#allocation5 + $0x290] sm:$0xf0]  ;;  %v4542_v58 = vor.u32 %v6290_v53, %v4541_v52  ;;  %v4433_v61 = vld [vmem:[#allocation5 + $0xf0] sm:$0xf]  ;;  %v6263_v63 = vld [vmem:[#allocation5 + $0xf8] sm:$0xf0]  ;;  %v4338_v4 = vor.u32 %v6239_v60, %v4337_v59 }
  0x25   :  { %3357 = vmatpush.bf16.msra.mxu0 %v4362_v44  ;;  %v4638_v62 = vor.u32 %v6314_v55, %v4637_v54  ;;  %v4529_v0 = vld [vmem:[#allocation5 + $0x1b0] sm:$0xf]  ;;  %v6287_v1 = vld [vmem:[#allocation5 + $0x1b8] sm:$0xf0]  ;;  %v4434_v5 = vor.u32 %v6263_v63, %v4433_v61  ;;  %v4325_v7 = vld [vmem:[#allocation5 + $0x18] sm:$0xf] }
  0x26   :  { %3370 = vmatpush.bf16.msra.mxu1 %v4458_v45  ;;  %v4625_v2 = vld [vmem:[#allocation5 + $0x270] sm:$0xf]  ;;  %v6311_v3 = vld [vmem:[#allocation5 + $0x278] sm:$0xf0]  ;;  %v4530_v6 = vor.u32 %v6287_v1, %v4529_v0  ;;  %v6236_v8 = vld [vmem:[#allocation5 + $0x20] sm:$0xf0] }
  0x27   :  { %3383 = vmatpush.bf16.msra.mxu2 %v4554_v46  ;;  %v4421_v9 = vld [vmem:[#allocation5 + $0xd8] sm:$0xf]  ;;  %v4626_v10 = vor.u32 %v6311_v3, %v4625_v2  ;;  %v6260_v11 = vld [vmem:[#allocation5 + $0xe0] sm:$0xf0]  ;;  %v4326_v16 = vor.u32 %v6236_v8, %v4325_v7  ;;  %v4313_v17 = vld [vmem:[#allocation5] sm:$0xf] }
  0x28   :  { %3396 = vmatpush.bf16.msra.mxu3 %v4650_v50  ;;  %v4517_v12 = vld [vmem:[#allocation5 + $0x198] sm:$0xf]  ;;  %v6284_v13 = vld [vmem:[#allocation5 + $0x1a0] sm:$0xf0]  ;;  %v6233_v18 = vld [vmem:[#allocation5 + $0x8] sm:$0xf0]  ;;  %v4422_v19 = vor.u32 %v6260_v11, %v4421_v9 }
  0x29   :  { %3358 = vmatpush.bf16.msra.mxu0 %v4350_v56  ;;  %v4613_v14 = vld [vmem:[#allocation5 + $0x258] sm:$0xf]  ;;  %v6308_v15 = vld [vmem:[#allocation5 + $0x260] sm:$0xf0]  ;;  %v4518_v20 = vor.u32 %v6284_v13, %v4517_v12  ;;  %v4409_v21 = vld [vmem:[#allocation5 + $0xc0] sm:$0xf]  ;;  %v4314_v31 = vor.u32 %v6233_v18, %v4313_v17 }
  0x2a   :  { %3371 = vmatpush.bf16.msra.mxu1 %v4446_v57  ;;  %v6257_v22 = vld [vmem:[#allocation5 + $0xc8] sm:$0xf0]  ;;  %v4505_v23 = vld [vmem:[#allocation5 + $0x180] sm:$0xf]  ;;  %v4614_v24 = vor.u32 %v6308_v15, %v4613_v14  ;;  %v4781_v28 = vld [vmem:[#allocation5 + $0x3a8] sm:$0xf] }
  0x2b   :  { %3384 = vmatpush.bf16.msra.mxu2 %v4542_v58  ;;  %v6281_v25 = vld [vmem:[#allocation5 + $0x188] sm:$0xf0]  ;;  %v4601_v26 = vld [vmem:[#allocation5 + $0x240] sm:$0xf]  ;;  %v6350_v29 = vld [vmem:[#allocation5 + $0x3b0] sm:$0xf0]  ;;  %v4410_v35 = vor.u32 %v6257_v22, %v4409_v21 }
  0x2c   :  { %3397 = vmatpush.bf16.msra.mxu3 %v4638_v62  ;;  %v6305_v27 = vld [vmem:[#allocation5 + $0x248] sm:$0xf0]  ;;  %v4877_v30 = vld [vmem:[#allocation5 + $0x468] sm:$0xf]  ;;  %v6374_v32 = vld [vmem:[#allocation5 + $0x470] sm:$0xf0]  ;;  %v4506_v36 = vor.u32 %v6281_v25, %v4505_v23  ;;  %v4782_v40 = vor.u32 %v6350_v29, %v4781_v28 }
  0x2d   :  { %3359 = vmatpush.bf16.msra.mxu0 %v4338_v4  ;;  %v4973_v33 = vld [vmem:[#allocation5 + $0x528] sm:$0xf]  ;;  %v6398_v34 = vld [vmem:[#allocation5 + $0x530] sm:$0xf0]  ;;  %v4602_v39 = vor.u32 %v6305_v27, %v4601_v26  ;;  %v4878_v41 = vor.u32 %v6374_v32, %v4877_v30  ;;  %v4769_v43 = vld [vmem:[#allocation5 + $0x390] sm:$0xf] }
  0x2e   :  { %3372 = vmatpush.bf16.msra.mxu1 %v4434_v5  ;;  %v5069_v37 = vld [vmem:[#allocation5 + $0x5e8] sm:$0xf]  ;;  %v6422_v38 = vld [vmem:[#allocation5 + $0x5f0] sm:$0xf0]  ;;  %v4974_v42 = vor.u32 %v6398_v34, %v4973_v33  ;;  %v6347_v44 = vld [vmem:[#allocation5 + $0x398] sm:$0xf0] }
  0x2f   :  { %3385 = vmatpush.bf16.msra.mxu2 %v4530_v6  ;;  %v4865_v45 = vld [vmem:[#allocation5 + $0x450] sm:$0xf]  ;;  %v5070_v46 = vor.u32 %v6422_v38, %v5069_v37  ;;  %v6371_v47 = vld [vmem:[#allocation5 + $0x458] sm:$0xf0]  ;;  %v4770_v52 = vor.u32 %v6347_v44, %v4769_v43  ;;  %v4757_v55 = vld [vmem:[#allocation5 + $0x378] sm:$0xf] }
  0x30   :  { %3398 = vmatpush.bf16.msra.mxu3 %v4626_v10  ;;  %v4961_v48 = vld [vmem:[#allocation5 + $0x510] sm:$0xf]  ;;  %v6395_v49 = vld [vmem:[#allocation5 + $0x518] sm:$0xf0]  ;;  %v4866_v53 = vor.u32 %v6371_v47, %v4865_v45  ;;  %v6344_v56 = vld [vmem:[#allocation5 + $0x380] sm:$0xf0] }
  0x31   :  { %3360 = vmatpush.bf16.msra.mxu0 %v4326_v16  ;;  %v5057_v50 = vld [vmem:[#allocation5 + $0x5d0] sm:$0xf]  ;;  %v6419_v51 = vld [vmem:[#allocation5 + $0x5d8] sm:$0xf0]  ;;  %v4962_v54 = vor.u32 %v6395_v49, %v4961_v48  ;;  %v4853_v57 = vld [vmem:[#allocation5 + $0x438] sm:$0xf]  ;;  %v4758_v0 = vor.u32 %v6344_v56, %v4757_v55 }
  0x32   :  { %3373 = vmatpush.bf16.msra.mxu1 %v4422_v19  ;;  %v5058_v58 = vor.u32 %v6419_v51, %v5057_v50  ;;  %v6368_v59 = vld [vmem:[#allocation5 + $0x440] sm:$0xf0]  ;;  %v4949_v60 = vld [vmem:[#allocation5 + $0x4f8] sm:$0xf]  ;;  %v4745_v1 = vld [vmem:[#allocation5 + $0x360] sm:$0xf] }
  0x33   :  { %3386 = vmatpush.bf16.msra.mxu2 %v4518_v20  ;;  %v6392_v61 = vld [vmem:[#allocation5 + $0x500] sm:$0xf0]  ;;  %v5045_v62 = vld [vmem:[#allocation5 + $0x5b8] sm:$0xf]  ;;  %v97_v2 = vld [vmem:[#allocation2] sm:$0xff]  ;;  %v4854_v3 = vor.u32 %v6368_v59, %v4853_v57  ;;  %vm4266_vm0 = vcmask 785408  }
  0x34   :  { %3399 = vmatpush.bf16.msra.mxu3 %v4614_v24  ;;  %v6416_v63 = vld [vmem:[#allocation5 + $0x5c0] sm:$0xf0]  ;;  %v4950_v4 = vor.u32 %v6392_v61, %v4949_v60  ;;  %v6341_v5 = vld [vmem:[#allocation5 + $0x368] sm:$0xf0]  ;;  %v4841_v6 = vld [vmem:[#allocation5 + $0x420] sm:$0xf] }
  0x35   :  { %3361 = vmatpush.bf16.msra.mxu0 %v4314_v31  ;;  %749 = vst [vmem:[#allocation1] ss:$9 sm:$0xff] %v97_v2  ;;  %v5046_v7 = vor.u32 %v6416_v63, %v5045_v62  ;;  %v6365_v8 = vld [vmem:[#allocation5 + $0x428] sm:$0xf0]  ;;  %v4937_v9 = vld [vmem:[#allocation5 + $0x4e0] sm:$0xf]  ;;  %v4746_v13 = vor.u32 %v6341_v5, %v4745_v1 }
  0x36   :  { %3374 = vmatpush.bf16.msra.mxu1 %v4410_v35  ;;  %v6389_v10 = vld [vmem:[#allocation5 + $0x4e8] sm:$0xf0]  ;;  %v5033_v11 = vld [vmem:[#allocation5 + $0x5a0] sm:$0xf]  ;;  %v4842_v14 = vor.u32 %v6365_v8, %v4841_v6  ;;  %v4733_v16 = vld [vmem:[#allocation5 + $0x348] sm:$0xf] }
  0x37   :  { %3387 = vmatpush.bf16.msra.mxu2 %v4506_v36  ;;  %v6413_v12 = vld [vmem:[#allocation5 + $0x5a8] sm:$0xf0]  ;;  %v4938_v15 = vor.u32 %v6389_v10, %v4937_v9  ;;  %v6338_v17 = vld [vmem:[#allocation5 + $0x350] sm:$0xf0]  ;;  %v4829_v18 = vld [vmem:[#allocation5 + $0x408] sm:$0xf] }
  0x38   :  { %3400 = vmatpush.bf16.msra.mxu3 %v4602_v39  ;;  %v5034_v19 = vor.u32 %v6413_v12, %v5033_v11  ;;  %v6362_v20 = vld [vmem:[#allocation5 + $0x410] sm:$0xf0]  ;;  %v4925_v21 = vld [vmem:[#allocation5 + $0x4c8] sm:$0xf]  ;;  %v4721_v25 = vld [vmem:[#allocation5 + $0x330] sm:$0xf]  ;;  %v4734_v26 = vor.u32 %v6338_v17, %v4733_v16 }
  0x39   :  { %3406 = vmatpush.bf16.msrb.mxu0 %v4782_v40  ;;  %v6386_v22 = vld [vmem:[#allocation5 + $0x4d0] sm:$0xf0]  ;;  %v5021_v23 = vld [vmem:[#allocation5 + $0x588] sm:$0xf]  ;;  %v4830_v30 = vor.u32 %v6362_v20, %v4829_v18  ;;  %v6335_v32 = vld [vmem:[#allocation5 + $0x338] sm:$0xf0] }
  0x3a   :  { %3419 = vmatpush.bf16.msrb.mxu1 %v4878_v41  ;;  %v6410_v24 = vld [vmem:[#allocation5 + $0x590] sm:$0xf0]  ;;  %v4926_v31 = vor.u32 %v6386_v22, %v4925_v21  ;;  %v4817_v33 = vld [vmem:[#allocation5 + $0x3f0] sm:$0xf]  ;;  %v6359_v36 = vld [vmem:[#allocation5 + $0x3f8] sm:$0xf0]  ;;  %v4722_v41 = vor.u32 %v6335_v32, %v4721_v25 }
  0x3b   :  { %3432 = vmatpush.bf16.msrb.mxu2 %v4974_v42  ;;  %v5022_v35 = vor.u32 %v6410_v24, %v5021_v23  ;;  %v4913_v37 = vld [vmem:[#allocation5 + $0x4b0] sm:$0xf]  ;;  %v6383_v38 = vld [vmem:[#allocation5 + $0x4b8] sm:$0xf0]  ;;  %v4818_v42 = vor.u32 %v6359_v36, %v4817_v33  ;;  %v4709_v44 = vld [vmem:[#allocation5 + $0x318] sm:$0xf] }
  0x3c   :  { %3445 = vmatpush.bf16.msrb.mxu3 %v5070_v46  ;;  %v6947_v27 = vld [vmem:[#allocation1 + $0x12] sm:$0xff]  ;;  %v6949_v28 = vld [vmem:[#allocation1] sm:$0xff]  ;;  %v6953_v34 = vld [vmem:[#allocation1 + $0x9] sm:$0xff]  ;;  %v4914_v43 = vor.u32 %v6383_v38, %v4913_v37  ;;  %s6891_s30 = smov [#allocation11]   ;;  %s4299_s11 = sshll.u32 %s7262_s7, 4  ;;  %vm4290_vm1 = vcmask 91136   ;;  %s4300_s11 = int_to_ptr.hbm [resolvable:$true] %s4299_s11 }
  0x3d   :  { %3407 = vmatpush.bf16.msrb.mxu0 %v4770_v52  ;;  %v6951_v29 = vld [vmem:[#allocation1 + $0x1b] sm:$0xff]  ;;  %3388 = vmatmul.bf16.vlgmr.msra.gmra.mxu2 %v6947_v27  ;;  %v5009_v39 = vld [vmem:[#allocation5 + $0x570] sm:$0xf]  ;;  %v4805_v46 = vld [vmem:[#allocation5 + $0x3d8] sm:$0xf]  ;;  %s4297_s8 = sshll.u32 %s6891_s30, 4  ;;  %s4298_s8 = int_to_ptr.vmem [resolvable:$true] %s4297_s8 }
  0x3e   :  { %3420 = vmatpush.bf16.msrb.mxu1 %v4866_v53  ;;  %v6407_v40 = vld [vmem:[#allocation5 + $0x578] sm:$0xf0]  ;;  %3362 = vmatmul.bf16.vlgmr.msra.gmra.mxu0 %v6949_v28  ;;  %v6332_v45 = vld [vmem:[#allocation5 + $0x320] sm:$0xf0]  ;;  %v4901_v49 = vld [vmem:[#allocation5 + $0x498] sm:$0xf] }
  0x3f   :  { %3433 = vmatpush.bf16.msrb.mxu2 %v4962_v54  ;;  %3401 = vmatmul.bf16.vlgmr.msra.gmra.mxu3 %v6951_v29  ;;  %v5010_v47 = vor.u32 %v6407_v40, %v5009_v39  ;;  %v6356_v48 = vld [vmem:[#allocation5 + $0x3e0] sm:$0xf0]  ;;  %v4997_v51 = vld [vmem:[#allocation5 + $0x558] sm:$0xf]  ;;  %v4710_v53 = vor.u32 %v6332_v45, %v4709_v44  ;;  %v4697_v54 = vld [vmem:[#allocation5 + $0x300] sm:$0xf] }
  0x40   :  { %3446 = vmatpush.bf16.msrb.mxu3 %v5058_v58  ;;  %3375 = vmatmul.bf16.vlgmr.msra.gmra.mxu1 %v6953_v34  ;;  %v6380_v50 = vld [vmem:[#allocation5 + $0x4a0] sm:$0xf0]  ;;  %v6329_v55 = vld [vmem:[#allocation5 + $0x308] sm:$0xf0]  ;;  %v4806_v56 = vor.u32 %v6356_v48, %v4805_v46  ;;  %v4793_v58 = vld [vmem:[#allocation5 + $0x3c0] sm:$0xf] }
  0x41   :  { %3408 = vmatpush.bf16.msrb.mxu0 %v4758_v0  ;;  %v6404_v52 = vld [vmem:[#allocation5 + $0x560] sm:$0xf0]  ;;  %v4902_v57 = vor.u32 %v6380_v50, %v4901_v49  ;;  %v6353_v59 = vld [vmem:[#allocation5 + $0x3c8] sm:$0xf0]  ;;  %v4889_v60 = vld [vmem:[#allocation5 + $0x480] sm:$0xf] }
  0x42   :  { %3421 = vmatpush.bf16.msrb.mxu1 %v4854_v3  ;;  %v4998_v61 = vor.u32 %v6404_v52, %v4997_v51  ;;  %v6377_v62 = vld [vmem:[#allocation5 + $0x488] sm:$0xf0]  ;;  %v4985_v63 = vld [vmem:[#allocation5 + $0x540] sm:$0xf]  ;;  %v5165_v1 = vld [vmem:[#allocation5 + $0x6a8] sm:$0xf]  ;;  %v4794_v8 = vor.u32 %v6353_v59, %v4793_v58 }
  0x43   :  { %3434 = vmatpush.bf16.msrb.mxu2 %v4950_v4  ;;  %v6401_v0 = vld [vmem:[#allocation5 + $0x548] sm:$0xf0]  ;;  %v6446_v2 = vld [vmem:[#allocation5 + $0x6b0] sm:$0xf0]  ;;  %v5261_v3 = vld [vmem:[#allocation5 + $0x768] sm:$0xf]  ;;  %v4698_v4 = vor.u32 %v6329_v55, %v4697_v54  ;;  %v4890_v9 = vor.u32 %v6377_v62, %v4889_v60 }
  0x44   :  { %3447 = vmatpush.bf16.msrb.mxu3 %v5046_v7  ;;  %v6470_v5 = vld [vmem:[#allocation5 + $0x770] sm:$0xf0]  ;;  %v5357_v6 = vld [vmem:[#allocation5 + $0x828] sm:$0xf]  ;;  %v4986_v12 = vor.u32 %v6401_v0, %v4985_v63  ;;  %v5153_v16 = vld [vmem:[#allocation5 + $0x690] sm:$0xf] }
  0x45   :  { %3409 = vmatpush.bf16.msrb.mxu0 %v4746_v13  ;;  %v6494_v7 = vld [vmem:[#allocation5 + $0x830] sm:$0xf0]  ;;  %v5453_v10 = vld [vmem:[#allocation5 + $0x8e8] sm:$0xf]  ;;  %v5166_v13 = vor.u32 %v6446_v2, %v5165_v1  ;;  %v6443_v17 = vld [vmem:[#allocation5 + $0x698] sm:$0xf0] }
  0x46   :  { %3422 = vmatpush.bf16.msrb.mxu1 %v4842_v14  ;;  %v6518_v11 = vld [vmem:[#allocation5 + $0x8f0] sm:$0xf0]  ;;  %v5262_v14 = vor.u32 %v6470_v5, %v5261_v3  ;;  %v5249_v18 = vld [vmem:[#allocation5 + $0x750] sm:$0xf]  ;;  %v6467_v20 = vld [vmem:[#allocation5 + $0x758] sm:$0xf0] }
  0x47   :  { %3435 = vmatpush.bf16.msrb.mxu2 %v4938_v15  ;;  %v5358_v15 = vor.u32 %v6494_v7, %v5357_v6  ;;  %v5345_v21 = vld [vmem:[#allocation5 + $0x810] sm:$0xf]  ;;  %v6491_v22 = vld [vmem:[#allocation5 + $0x818] sm:$0xf0]  ;;  %v6963_v32 = vld [vmem:[#allocation1 + $0x3f] sm:$0xff]  ;;  %v5250_v33 = vor.u32 %v6467_v20, %v5249_v18 }
  0x48   :  { %3448 = vmatpush.bf16.msrb.mxu3 %v5034_v19  ;;  %v5454_v19 = vor.u32 %v6518_v11, %v5453_v10  ;;  %v5441_v23 = vld [vmem:[#allocation5 + $0x8d0] sm:$0xf]  ;;  %v6515_v24 = vld [vmem:[#allocation5 + $0x8d8] sm:$0xf0]  ;;  %v6440_v36 = vld [vmem:[#allocation5 + $0x680] sm:$0xf0] }
  0x49   :  { %3410 = vmatpush.bf16.msrb.mxu0 %v4734_v26  ;;  %v6959_v25 = vld [vmem:[#allocation1 + $0x36] sm:$0xff]  ;;  %v5154_v26 = vor.u32 %v6443_v17, %v5153_v16  ;;  %v6965_v38 = vld [vmem:[#allocation1 + $0x2d] sm:$0xff]  ;;  %v5442_v39 = vor.u32 %v6515_v24, %v5441_v23  ;;  %v6464_v40 = vld [vmem:[#allocation5 + $0x740] sm:$0xf0] }
  0x4a   :  { %3423 = vmatpush.bf16.msrb.mxu1 %v4830_v30  ;;  %v5141_v30 = vld [vmem:[#allocation5 + $0x678] sm:$0xf]  ;;  %v6512_v44 = vld [vmem:[#allocation5 + $0x8c0] sm:$0xf0]  ;;  %v5129_v48 = vld [vmem:[#allocation5 + $0x660] sm:$0xf] }
  0x4b   :  { %3436 = vmatpush.bf16.msrb.mxu2 %v4926_v31  ;;  %v6961_v31 = vld [vmem:[#allocation1 + $0x24] sm:$0xff]  ;;  %v5237_v37 = vld [vmem:[#allocation5 + $0x738] sm:$0xf]  ;;  %v5142_v45 = vor.u32 %v6440_v36, %v5141_v30  ;;  %v5225_v50 = vld [vmem:[#allocation5 + $0x720] sm:$0xf] }
  0x4c   :  { %3449 = vmatpush.bf16.msrb.mxu3 %v5022_v35  ;;  %v5346_v35 = vor.u32 %v6491_v22, %v5345_v21  ;;  %v5238_v46 = vor.u32 %v6464_v40, %v5237_v37  ;;  %v6437_v49 = vld [vmem:[#allocation5 + $0x668] sm:$0xf0]  ;;  %v5417_v55 = vld [vmem:[#allocation5 + $0x8a0] sm:$0xf]  ;;  %v6434_v62 = vld [vmem:[#allocation5 + $0x650] sm:$0xf0] }
  0x4d   :  { %3411 = vmatpush.bf16.msrb.mxu0 %v4722_v41  ;;  %v5333_v41 = vld [vmem:[#allocation5 + $0x7f8] sm:$0xf]  ;;  %v6461_v52 = vld [vmem:[#allocation5 + $0x728] sm:$0xf0]  ;;  %v5130_v58 = vor.u32 %v6437_v49, %v5129_v48  ;;  %v5213_v63 = vld [vmem:[#allocation5 + $0x708] sm:$0xf] }
  0x4e   :  { %3424 = vmatpush.bf16.msrb.mxu1 %v4818_v42  ;;  %v6488_v42 = vld [vmem:[#allocation5 + $0x800] sm:$0xf0]  ;;  %v6485_v54 = vld [vmem:[#allocation5 + $0x7e8] sm:$0xf0]  ;;  %v5226_v59 = vor.u32 %v6461_v52, %v5225_v50  ;;  %v6458_v1 = vld [vmem:[#allocation5 + $0x710] sm:$0xf0] }
  0x4f   :  { %3437 = vmatpush.bf16.msrb.mxu2 %v4914_v43  ;;  %v5429_v43 = vld [vmem:[#allocation5 + $0x8b8] sm:$0xf]  ;;  %v5309_v2 = vld [vmem:[#allocation5 + $0x7c8] sm:$0xf]  ;;  %v6482_v3 = vld [vmem:[#allocation5 + $0x7d0] sm:$0xf0]  ;;  %v5214_v7 = vor.u32 %v6458_v1, %v5213_v63 }
  0x50   :  { %3450 = vmatpush.bf16.msrb.mxu3 %v5010_v47  ;;  %v5334_v47 = vor.u32 %v6488_v42, %v5333_v41  ;;  %v5430_v51 = vor.u32 %v6512_v44, %v5429_v43  ;;  %v6506_v5 = vld [vmem:[#allocation5 + $0x890] sm:$0xf0]  ;;  %v6431_v10 = vld [vmem:[#allocation5 + $0x638] sm:$0xf0]  ;;  %v5201_v11 = vld [vmem:[#allocation5 + $0x6f0] sm:$0xf] }
  0x51   :  { %3412 = vmatpush.bf16.msrb.mxu0 %v4710_v53  ;;  %v5321_v53 = vld [vmem:[#allocation5 + $0x7e0] sm:$0xf]  ;;  %v5393_v16 = vld [vmem:[#allocation5 + $0x870] sm:$0xf]  ;;  %v6503_v17 = vld [vmem:[#allocation5 + $0x878] sm:$0xf0] }
  0x52   :  { %3425 = vmatpush.bf16.msrb.mxu1 %v4806_v56  ;;  %v6509_v56 = vld [vmem:[#allocation5 + $0x8a8] sm:$0xf0]  ;;  %v5322_v60 = vor.u32 %v6485_v54, %v5321_v53  ;;  %v5093_v21 = vld [vmem:[#allocation5 + $0x618] sm:$0xf]  ;;  %v6428_v22 = vld [vmem:[#allocation5 + $0x620] sm:$0xf0]  ;;  %v5394_v24 = vor.u32 %v6503_v17, %v5393_v16 }
  0x53   :  { %3438 = vmatpush.bf16.msrb.mxu2 %v4902_v57  ;;  %v98_v57 = vld [vmem:[#allocation2 + $0x8] sm:$0xff]  ;;  %v5418_v0 = vor.u32 %v6509_v56, %v5417_v55  ;;  %v6500_v36 = vld [vmem:[#allocation5 + $0x860] sm:$0xf0]  ;;  %v5094_v37 = vor.u32 %v6428_v22, %v5093_v21  ;;  %v6425_v40 = vld [vmem:[#allocation5 + $0x608] sm:$0xf0] }
  0x54   :  { %3451 = vmatpush.bf16.msrb.mxu3 %v4998_v61  ;;  %759 = vst [vmem:[#allocation1] ss:$9 sm:$0xff] %v98_v57  ;;  %v5117_v61 = vld [vmem:[#allocation5 + $0x648] sm:$0xf]  ;;  %v5189_v23 = vld [vmem:[#allocation5 + $0x6d8] sm:$0xf] }
  0x55   :  { %3413 = vmatpush.bf16.msrb.mxu0 %v4698_v4  ;;  %v5405_v4 = vld [vmem:[#allocation5 + $0x888] sm:$0xf]  ;;  %v5118_v6 = vor.u32 %v6434_v62, %v5117_v61  ;;  %v5285_v30 = vld [vmem:[#allocation5 + $0x798] sm:$0xf]  ;;  %v5177_v43 = vld [vmem:[#allocation5 + $0x6c0] sm:$0xf] }
  0x56   :  { %3426 = vmatpush.bf16.msrb.mxu1 %v4794_v8  ;;  %v5310_v8 = vor.u32 %v6482_v3, %v5309_v2  ;;  %v6449_v44 = vld [vmem:[#allocation5 + $0x6c8] sm:$0xf0]  ;;  %v5369_v48 = vld [vmem:[#allocation5 + $0x840] sm:$0xf]  ;;  %v5549_v50 = vld [vmem:[#allocation5 + $0x9a8] sm:$0xf] }
  0x57   :  { %3439 = vmatpush.bf16.msrb.mxu2 %v4890_v9  ;;  %v5105_v9 = vld [vmem:[#allocation5 + $0x630] sm:$0xf]  ;;  %v6497_v49 = vld [vmem:[#allocation5 + $0x848] sm:$0xf0]  ;;  %v5645_v52 = vld [vmem:[#allocation5 + $0xa68] sm:$0xf]  ;;  %v5178_v57 = vor.u32 %v6449_v44, %v5177_v43 }
  0x58   :  { %3452 = vmatpush.bf16.msrb.mxu3 %v4986_v12  ;;  %3414 = vmatmul.bf16.vlgmr.msrb.gmra.mxu0 %v6961_v31  ;;  %v5406_v12 = vor.u32 %v6506_v5, %v5405_v4  ;;  %v5106_v18 = vor.u32 %v6431_v10, %v5105_v9  ;;  %v6566_v54 = vld [vmem:[#allocation5 + $0xa70] sm:$0xf0]  ;;  %v5741_v55 = vld [vmem:[#allocation5 + $0xb28] sm:$0xf]  ;;  %v5370_v61 = vor.u32 %v6497_v49, %v5369_v48  ;;  %v5537_v1 = vld [vmem:[#allocation5 + $0x990] sm:$0xf] }
  0x59   :  { %3458 = vmatpush.bf16.msra.mxu0 %v5166_v13  ;;  %3427 = vmatmul.bf16.vlgmr.msrb.gmra.mxu1 %v6965_v38  ;;  %v6455_v13 = vld [vmem:[#allocation5 + $0x6f8] sm:$0xf0]  ;;  %v6590_v56 = vld [vmem:[#allocation5 + $0xb30] sm:$0xf0]  ;;  %v5646_v63 = vor.u32 %v6566_v54, %v5645_v52  ;;  %v5633_v3 = vld [vmem:[#allocation5 + $0xa50] sm:$0xf] }
  0x5a   :  { %3471 = vmatpush.bf16.msra.mxu1 %v5262_v14  ;;  %3440 = vmatmul.bf16.vlgmr.msrb.gmra.mxu2 %v6959_v25  ;;  %v5297_v14 = vld [vmem:[#allocation5 + $0x7b0] sm:$0xf]  ;;  %v6539_v2 = vld [vmem:[#allocation5 + $0x998] sm:$0xf0]  ;;  %v6560_v21 = vld [vmem:[#allocation5 + $0xa40] sm:$0xf0] }
  0x5b   :  { %3484 = vmatpush.bf16.msra.mxu2 %v5358_v15  ;;  %3453 = vmatmul.bf16.vlgmr.msrb.gmra.mxu3 %v6963_v32  ;;  %v6479_v15 = vld [vmem:[#allocation5 + $0x7b8] sm:$0xf0]  ;;  %v5825_v9 = vld [vmem:[#allocation5 + $0xbd0] sm:$0xf]  ;;  %v5717_v22 = vld [vmem:[#allocation5 + $0xaf8] sm:$0xf] }
  0x5c   :  { %3497 = vmatpush.bf16.msra.mxu3 %v5454_v19  ;;  %v5202_v19 = vor.u32 %v6455_v13, %v5201_v11  ;;  %v5298_v20 = vor.u32 %v6479_v15, %v5297_v14  ;;  %v6563_v5 = vld [vmem:[#allocation5 + $0xa58] sm:$0xf0]  ;;  %v5538_v13 = vor.u32 %v6539_v2, %v5537_v1  ;;  %v5525_v14 = vld [vmem:[#allocation5 + $0x978] sm:$0xf]  ;;  %v6581_v43 = vld [vmem:[#allocation5 + $0xae8] sm:$0xf0] }
  0x5d   :  { %3459 = vmatpush.bf16.msra.mxu0 %v5154_v26  ;;  %v6452_v26 = vld [vmem:[#allocation5 + $0x6e0] sm:$0xf0]  ;;  %v6611_v10 = vld [vmem:[#allocation5 + $0xbd8] sm:$0xf0]  ;;  %v5634_v16 = vor.u32 %v6563_v5, %v5633_v3  ;;  %v5801_v44 = vld [vmem:[#allocation5 + $0xba0] sm:$0xf] }
  0x5e   :  { %3472 = vmatpush.bf16.msra.mxu1 %v5250_v33  ;;  %v6476_v33 = vld [vmem:[#allocation5 + $0x7a0] sm:$0xf0]  ;;  %v5190_v41 = vor.u32 %v6452_v26, %v5189_v23  ;;  %v6973_v11 = vld [vmem:[#allocation1 + $0x12] sm:$0xff]  ;;  %v5501_v49 = vld [vmem:[#allocation5 + $0x948] sm:$0xf] }
  0x5f   :  { %3485 = vmatpush.bf16.msra.mxu2 %v5346_v35  ;;  %v5381_v35 = vld [vmem:[#allocation5 + $0x858] sm:$0xf]  ;;  %v5286_v42 = vor.u32 %v6476_v33, %v5285_v30  ;;  %v6977_v15 = vld [vmem:[#allocation1 + $0x1b] sm:$0xff]  ;;  %v5693_v54 = vld [vmem:[#allocation5 + $0xac8] sm:$0xf] }
  0x60   :  { %3498 = vmatpush.bf16.msra.mxu3 %v5442_v39  ;;  %v5081_v39 = vld [vmem:[#allocation5 + $0x600] sm:$0xf]  ;;  %v6584_v23 = vld [vmem:[#allocation5 + $0xb00] sm:$0xf0]  ;;  %v6551_v1 = vld [vmem:[#allocation5 + $0x9f8] sm:$0xf0] }
  0x61   :  { %3460 = vmatpush.bf16.msra.mxu0 %v5142_v45  ;;  %v5273_v45 = vld [vmem:[#allocation5 + $0x780] sm:$0xf]  ;;  %v5082_v53 = vor.u32 %v6425_v40, %v5081_v39  ;;  %v6608_v26 = vld [vmem:[#allocation5 + $0xbc0] sm:$0xf0]  ;;  %v6557_v40 = vld [vmem:[#allocation5 + $0xa28] sm:$0xf0] }
  0x62   :  { %3473 = vmatpush.bf16.msra.mxu1 %v5238_v46  ;;  %v5382_v46 = vor.u32 %v6500_v36, %v5381_v35  ;;  %v5513_v33 = vld [vmem:[#allocation5 + $0x960] sm:$0xf]  ;;  %v5718_v36 = vor.u32 %v6584_v23, %v5717_v22  ;;  %v5681_v2 = vld [vmem:[#allocation5 + $0xab0] sm:$0xf]  ;;  %v6575_v3 = vld [vmem:[#allocation5 + $0xab8] sm:$0xf0] }
  0x63   :  { %3486 = vmatpush.bf16.msra.mxu2 %v5334_v47  ;;  %v6473_v47 = vld [vmem:[#allocation5 + $0x788] sm:$0xf0]  ;;  %v5609_v39 = vld [vmem:[#allocation5 + $0xa20] sm:$0xf]  ;;  %v6599_v5 = vld [vmem:[#allocation5 + $0xb78] sm:$0xf0] }
  0x64   :  { %3499 = vmatpush.bf16.msra.mxu3 %v5430_v51  ;;  %v6542_v51 = vld [vmem:[#allocation5 + $0x9b0] sm:$0xf0]  ;;  %v5465_v22 = vld [vmem:[#allocation5 + $0x900] sm:$0xf]  ;;  %v6521_v23 = vld [vmem:[#allocation5 + $0x908] sm:$0xf0] }
  0x65   :  { %3461 = vmatpush.bf16.msra.mxu0 %v5130_v58  ;;  %v5274_v58 = vor.u32 %v6473_v47, %v5273_v45  ;;  %v5550_v62 = vor.u32 %v6542_v51, %v5549_v50  ;;  %v6605_v45 = vld [vmem:[#allocation5 + $0xba8] sm:$0xf0]  ;;  %v5610_v47 = vor.u32 %v6557_v40, %v5609_v39  ;;  %v6530_v50 = vld [vmem:[#allocation5 + $0x950] sm:$0xf0]  ;;  %v5597_v51 = vld [vmem:[#allocation5 + $0xa08] sm:$0xf] }
  0x66   :  { %3474 = vmatpush.bf16.msra.mxu1 %v5226_v59  ;;  %v5837_v59 = vld [vmem:[#allocation5 + $0xbe8] sm:$0xf]  ;;  %v5802_v52 = vor.u32 %v6605_v45, %v5801_v44  ;;  %v5753_v39 = vld [vmem:[#allocation5 + $0xb40] sm:$0xf]  ;;  %v6593_v40 = vld [vmem:[#allocation5 + $0xb48] sm:$0xf0] }
  0x67   :  { %3487 = vmatpush.bf16.msra.mxu2 %v5322_v60  ;;  %v6614_v60 = vld [vmem:[#allocation5 + $0xbf0] sm:$0xf0]  ;;  %v6029_v44 = vld [vmem:[#allocation5 + $0xd68] sm:$0xf] }
  0x68   :  { %3500 = vmatpush.bf16.msra.mxu3 %v5418_v0  ;;  %v5742_v0 = vor.u32 %v6590_v56, %v5741_v55  ;;  %v5838_v4 = vor.u32 %v6614_v60, %v5837_v59  ;;  %v6578_v55 = vld [vmem:[#allocation5 + $0xad0] sm:$0xf0]  ;;  %v5789_v56 = vld [vmem:[#allocation5 + $0xb88] sm:$0xf] }
  0x69   :  { %3462 = vmatpush.bf16.msra.mxu0 %v5118_v6  ;;  %v5729_v6 = vld [vmem:[#allocation5 + $0xb10] sm:$0xf]  ;;  %v5694_v60 = vor.u32 %v6578_v55, %v5693_v54  ;;  %v6662_v45 = vld [vmem:[#allocation5 + $0xd70] sm:$0xf0] }
  0x6a   :  { %3475 = vmatpush.bf16.msra.mxu1 %v5214_v7  ;;  %v6587_v7 = vld [vmem:[#allocation5 + $0xb18] sm:$0xf0] }
  0x6b   :  { %3488 = vmatpush.bf16.msra.mxu2 %v5310_v8  ;;  %v6971_v8 = vld [vmem:[#allocation1] sm:$0xff]  ;;  %v5730_v17 = vor.u32 %v6587_v7, %v5729_v6  ;;  %v5477_v7 = vld [vmem:[#allocation5 + $0x918] sm:$0xf] }
  0x6c   :  { %3501 = vmatpush.bf16.msra.mxu3 %v5406_v12  ;;  %v6975_v12 = vld [vmem:[#allocation1 + $0x9] sm:$0xff] }
  0x6d   :  { %3463 = vmatpush.bf16.msra.mxu0 %v5106_v18  ;;  %v6536_v18 = vld [vmem:[#allocation5 + $0x980] sm:$0xf0] }
  0x6e   :  { %3476 = vmatpush.bf16.msra.mxu1 %v5202_v19  ;;  %v5621_v19 = vld [vmem:[#allocation5 + $0xa38] sm:$0xf]  ;;  %v5526_v30 = vor.u32 %v6536_v18, %v5525_v14 }
  0x6f   :  { %3489 = vmatpush.bf16.msra.mxu2 %v5298_v20  ;;  %v5826_v20 = vor.u32 %v6611_v10, %v5825_v9  ;;  %v5622_v35 = vor.u32 %v6560_v21, %v5621_v19  ;;  %v5682_v10 = vor.u32 %v6575_v3, %v5681_v2  ;;  %v5573_v14 = vld [vmem:[#allocation5 + $0x9d8] sm:$0xf]  ;;  %v6572_v19 = vld [vmem:[#allocation5 + $0xaa0] sm:$0xf0]  ;;  %v6659_v2 = vld [vmem:[#allocation5 + $0xd58] sm:$0xf0] }
  0x70   :  { %3502 = vmatpush.bf16.msra.mxu3 %v5394_v24  ;;  %v5813_v24 = vld [vmem:[#allocation5 + $0xbb8] sm:$0xf]  ;;  %v6596_v21 = vld [vmem:[#allocation5 + $0xb60] sm:$0xf0]  ;;  %v6113_v3 = vld [vmem:[#allocation5 + $0xe10] sm:$0xf] }
  0x71   :  { %3464 = vmatpush.bf16.msra.mxu0 %v5094_v37  ;;  %v6533_v37 = vld [vmem:[#allocation5 + $0x968] sm:$0xf0]  ;;  %v5669_v18 = vld [vmem:[#allocation5 + $0xa98] sm:$0xf] }
  0x72   :  { %3477 = vmatpush.bf16.msra.mxu1 %v5190_v41  ;;  %v5814_v41 = vor.u32 %v6608_v26, %v5813_v24  ;;  %v5561_v26 = vld [vmem:[#allocation5 + $0x9c0] sm:$0xf] }
  0x73   :  { %3490 = vmatpush.bf16.msra.mxu2 %v5286_v42  ;;  %v5705_v42 = vld [vmem:[#allocation5 + $0xae0] sm:$0xf] }
  0x74   :  { %3503 = vmatpush.bf16.msra.mxu3 %v5382_v46  ;;  %v5514_v46 = vor.u32 %v6533_v37, %v5513_v33  ;;  %v5706_v48 = vor.u32 %v6581_v43, %v5705_v42  ;;  %v5657_v33 = vld [vmem:[#allocation5 + $0xa80] sm:$0xf]  ;;  %v5670_v37 = vor.u32 %v6572_v19, %v5669_v18  ;;  %v6638_v42 = vld [vmem:[#allocation5 + $0xcb0] sm:$0xf0]  ;;  %v6656_v18 = vld [vmem:[#allocation5 + $0xd40] sm:$0xf0] }
  0x75   :  { %3465 = vmatpush.bf16.msra.mxu0 %v5082_v53  ;;  %v6554_v53 = vld [vmem:[#allocation5 + $0xa10] sm:$0xf0]  ;;  %v6101_v19 = vld [vmem:[#allocation5 + $0xdf8] sm:$0xf] }
  0x76   :  { %3478 = vmatpush.bf16.msra.mxu1 %v5178_v57  ;;  %v6602_v57 = vld [vmem:[#allocation5 + $0xb90] sm:$0xf0]  ;;  %v5598_v59 = vor.u32 %v6554_v53, %v5597_v51  ;;  %v5466_v51 = vor.u32 %v6521_v23, %v5465_v22  ;;  %v6704_v22 = vld [vmem:[#allocation5 + $0xec0] sm:$0xf0] }
  0x77   :  { %3491 = vmatpush.bf16.msra.mxu2 %v5274_v58  ;;  %v5502_v58 = vor.u32 %v6530_v50, %v5501_v49  ;;  %v6989_v49 = vld [vmem:[#allocation1 + $0x3f] sm:$0xff]  ;;  %v99_v50 = vld [vmem:[#allocation2 + $0x10] sm:$0xf]  ;;  %v6686_v53 = vld [vmem:[#allocation5 + $0xe30] sm:$0xf0] }
  0x78   :  { %3504 = vmatpush.bf16.msra.mxu3 %v5370_v61  ;;  %3466 = vmatmul.bf16.vlgmr.msra.gmra.mxu0 %v6971_v8  ;;  %v5489_v61 = vld [vmem:[#allocation5 + $0x930] sm:$0xf] }
  0x79   :  { %3510 = vmatpush.bf16.msrb.mxu0 %v5550_v62  ;;  %3479 = vmatmul.bf16.vlgmr.msra.gmra.mxu1 %v6975_v12  ;;  %v6527_v62 = vld [vmem:[#allocation5 + $0x938] sm:$0xf0] }
  0x7a   :  { %3523 = vmatpush.bf16.msrb.mxu1 %v5646_v63  ;;  %3492 = vmatmul.bf16.vlgmr.msra.gmra.mxu2 %v6973_v11  ;;  %v5585_v63 = vld [vmem:[#allocation5 + $0x9f0] sm:$0xf]  ;;  %v5490_v6 = vor.u32 %v6527_v62, %v5489_v61 }
  0x7b   :  { %3536 = vmatpush.bf16.msrb.mxu2 %v5742_v0  ;;  %3505 = vmatmul.bf16.vlgmr.msra.gmra.mxu3 %v6977_v15  ;;  %v5790_v0 = vor.u32 %v6602_v57, %v5789_v56  ;;  %v5586_v9 = vor.u32 %v6551_v1, %v5585_v63  ;;  %v6221_v56 = vld [vmem:[#allocation5 + $0xee8] sm:$0xf]  ;;  %v6710_v57 = vld [vmem:[#allocation5 + $0xef0] sm:$0xf0]  ;;  %v5921_v62 = vld [vmem:[#allocation5 + $0xc90] sm:$0xf] }
  0x7c   :  { %3549 = vmatpush.bf16.msrb.mxu3 %v5838_v4  ;;  %v5777_v4 = vld [vmem:[#allocation5 + $0xb70] sm:$0xf]  ;;  %v6635_v63 = vld [vmem:[#allocation5 + $0xc98] sm:$0xf0]  ;;  %v6222_v1 = vor.u32 %v6710_v57, %v6221_v56  ;;  %v6674_v56 = vld [vmem:[#allocation5 + $0xdd0] sm:$0xf0] }
  0x7d   :  { %3511 = vmatpush.bf16.msrb.mxu0 %v5538_v13  ;;  %v6524_v13 = vld [vmem:[#allocation5 + $0x920] sm:$0xf0]  ;;  %v6173_v57 = vld [vmem:[#allocation5 + $0xe88] sm:$0xf] }
  0x7e   :  { %3524 = vmatpush.bf16.msrb.mxu1 %v5634_v16  ;;  %v6548_v16 = vld [vmem:[#allocation5 + $0x9e0] sm:$0xf0]  ;;  %v5478_v24 = vor.u32 %v6524_v13, %v5477_v7  ;;  %v5922_v7 = vor.u32 %v6635_v63, %v5921_v62  ;;  %v5909_v13 = vld [vmem:[#allocation5 + $0xc78] sm:$0xf]  ;;  %v5873_v62 = vld [vmem:[#allocation5 + $0xc30] sm:$0xf] }
  0x7f   :  { %3537 = vmatpush.bf16.msrb.mxu2 %v5730_v17  ;;  %v5778_v17 = vor.u32 %v6599_v5, %v5777_v4  ;;  %v6683_v4 = vld [vmem:[#allocation5 + $0xe18] sm:$0xf0]  ;;  %v6209_v5 = vld [vmem:[#allocation5 + $0xed0] sm:$0xf] }
  0x80   :  { %3550 = vmatpush.bf16.msrb.mxu3 %v5826_v20  ;;  %v5765_v20 = vld [vmem:[#allocation5 + $0xb58] sm:$0xf]  ;;  %v6623_v63 = vld [vmem:[#allocation5 + $0xc38] sm:$0xf0] }
  0x81   :  { %3512 = vmatpush.bf16.msrb.mxu0 %v5526_v30  ;;  %v6545_v30 = vld [vmem:[#allocation5 + $0x9c8] sm:$0xf0]  ;;  %v5766_v43 = vor.u32 %v6596_v21, %v5765_v20  ;;  %v6680_v20 = vld [vmem:[#allocation5 + $0xe00] sm:$0xf0]  ;;  %v6197_v21 = vld [vmem:[#allocation5 + $0xeb8] sm:$0xf] }
  0x82   :  { %3525 = vmatpush.bf16.msrb.mxu1 %v5622_v35  ;;  %v6569_v35 = vld [vmem:[#allocation5 + $0xa88] sm:$0xf0]  ;;  %v5562_v54 = vor.u32 %v6545_v30, %v5561_v26  ;;  %v6102_v26 = vor.u32 %v6680_v20, %v6101_v19  ;;  %v5897_v30 = vld [vmem:[#allocation5 + $0xc60] sm:$0xf]  ;;  %v6053_v19 = vld [vmem:[#allocation5 + $0xd98] sm:$0xf] }
  0x83   :  { %3538 = vmatpush.bf16.msrb.mxu2 %v5718_v36  ;;  %v5574_v36 = vor.u32 %v6548_v16, %v5573_v14  ;;  %v5658_v55 = vor.u32 %v6569_v35, %v5657_v33  ;;  %v6632_v14 = vld [vmem:[#allocation5 + $0xc80] sm:$0xf0]  ;;  %v6005_v16 = vld [vmem:[#allocation5 + $0xd38] sm:$0xf]  ;;  %v6629_v33 = vld [vmem:[#allocation5 + $0xc68] sm:$0xf0] }
  0x84   :  { %3551 = vmatpush.bf16.msrb.mxu3 %v5814_v41  ;;  %v5933_v41 = vld [vmem:[#allocation5 + $0xca8] sm:$0xf]  ;;  %v5910_v23 = vor.u32 %v6632_v14, %v5909_v13  ;;  %v5993_v35 = vld [vmem:[#allocation5 + $0xd20] sm:$0xf]  ;;  %v5861_v13 = vld [vmem:[#allocation5 + $0xc18] sm:$0xf] }
  0x85   :  { %3513 = vmatpush.bf16.msrb.mxu0 %v5514_v46  ;;  %v6983_v46 = vld [vmem:[#allocation1 + $0x24] sm:$0xff]  ;;  %v6620_v14 = vld [vmem:[#allocation5 + $0xc20] sm:$0xf0] }
  0x86   :  { %3526 = vmatpush.bf16.msrb.mxu1 %v5610_v47  ;;  %v6985_v47 = vld [vmem:[#allocation1 + $0x36] sm:$0xff]  ;;  %v6668_v20 = vld [vmem:[#allocation5 + $0xda0] sm:$0xf0] }
  0x87   :  { %3539 = vmatpush.bf16.msrb.mxu2 %v5706_v48  ;;  %v6987_v48 = vld [vmem:[#allocation1 + $0x2d] sm:$0xff] }
  0x88   :  { %3552 = vmatpush.bf16.msrb.mxu3 %v5802_v52  ;;  %v6125_v52 = vld [vmem:[#allocation5 + $0xe28] sm:$0xf]  ;;  %769 = vst [vmem:[#allocation1] ss:$9 sm:$0xff] %v99_v50 }
  0x89   :  { %3514 = vmatpush.bf16.msrb.mxu0 %v5502_v58  ;;  %v5754_v58 = vor.u32 %v6593_v40, %v5753_v39  ;;  %v6126_v61 = vor.u32 %v6686_v53, %v6125_v52  ;;  %v6089_v39 = vld [vmem:[#allocation5 + $0xde0] sm:$0xf]  ;;  %v6677_v40 = vld [vmem:[#allocation5 + $0xde8] sm:$0xf0]  ;;  %v5885_v50 = vld [vmem:[#allocation5 + $0xc48] sm:$0xf] }
  0x8a   :  { %3527 = vmatpush.bf16.msrb.mxu1 %v5598_v59  ;;  %v5934_v59 = vor.u32 %v6638_v42, %v5933_v41  ;;  %v6185_v41 = vld [vmem:[#allocation5 + $0xea0] sm:$0xf]  ;;  %v6701_v42 = vld [vmem:[#allocation5 + $0xea8] sm:$0xf0]  ;;  %v5981_v52 = vld [vmem:[#allocation5 + $0xd08] sm:$0xf] }
  0x8b   :  { %3540 = vmatpush.bf16.msrb.mxu2 %v5694_v60  ;;  %v6030_v60 = vor.u32 %v6662_v45, %v6029_v44  ;;  %v6090_v45 = vor.u32 %v6677_v40, %v6089_v39  ;;  %v6186_v53 = vor.u32 %v6701_v42, %v6185_v41  ;;  %v6665_v40 = vld [vmem:[#allocation5 + $0xd88] sm:$0xf0]  ;;  %v6137_v41 = vld [vmem:[#allocation5 + $0xe40] sm:$0xf] }
  0x8c   :  { %3553 = vmatpush.bf16.msrb.mxu3 %v5790_v0  ;;  %v6017_v0 = vld [vmem:[#allocation5 + $0xd50] sm:$0xf]  ;;  %v6689_v42 = vld [vmem:[#allocation5 + $0xe48] sm:$0xf0] }
  0x8d   :  { %3515 = vmatpush.bf16.msrb.mxu0 %v5490_v6  ;;  %v6707_v6 = vld [vmem:[#allocation5 + $0xed8] sm:$0xf0] }
  0x8e   :  { %3528 = vmatpush.bf16.msrb.mxu1 %v5586_v9  ;;  %v6018_v9 = vor.u32 %v6659_v2, %v6017_v0  ;;  %v5969_v0 = vld [vmem:[#allocation5 + $0xcf0] sm:$0xf]  ;;  %v6647_v2 = vld [vmem:[#allocation5 + $0xcf8] sm:$0xf0] }
  0x8f   :  { %3541 = vmatpush.bf16.msrb.mxu2 %v5682_v10  ;;  %v6114_v10 = vor.u32 %v6683_v4, %v6113_v3  ;;  %v6065_v3 = vld [vmem:[#allocation5 + $0xdb0] sm:$0xf]  ;;  %v6671_v4 = vld [vmem:[#allocation5 + $0xdb8] sm:$0xf0] }
  0x90   :  { %3554 = vmatpush.bf16.msrb.mxu3 %v5778_v17  ;;  %v6210_v17 = vor.u32 %v6707_v6, %v6209_v5  ;;  %v6161_v5 = vld [vmem:[#allocation5 + $0xe70] sm:$0xf]  ;;  %v6695_v6 = vld [vmem:[#allocation5 + $0xe78] sm:$0xf0] }
  0x91   :  { %3516 = vmatpush.bf16.msrb.mxu0 %v5478_v24  ;;  %v6006_v24 = vor.u32 %v6656_v18, %v6005_v16  ;;  %v5957_v16 = vld [vmem:[#allocation5 + $0xcd8] sm:$0xf]  ;;  %v6644_v18 = vld [vmem:[#allocation5 + $0xce0] sm:$0xf0] }
  0x92   :  { %3529 = vmatpush.bf16.msrb.mxu1 %v5574_v36  ;;  %v6198_v36 = vor.u32 %v6704_v22, %v6197_v21  ;;  %v6149_v21 = vld [vmem:[#allocation5 + $0xe58] sm:$0xf]  ;;  %v6692_v22 = vld [vmem:[#allocation5 + $0xe60] sm:$0xf0] }
  0x93   :  { %3542 = vmatpush.bf16.msrb.mxu2 %v5670_v37  ;;  %v6653_v37 = vld [vmem:[#allocation5 + $0xd28] sm:$0xf0]  ;;  %v6150_v39 = vor.u32 %v6692_v22, %v6149_v21  ;;  %v4471_v22 = vld [vmem:[#allocation5 + $0x144] sm:$0xf0] }
  0x94   :  { %3555 = vmatpush.bf16.msrb.mxu3 %v5766_v43  ;;  %v5898_v43 = vor.u32 %v6629_v33, %v5897_v30  ;;  %v5994_v44 = vor.u32 %v6653_v37, %v5993_v35  ;;  %v5958_v30 = vor.u32 %v6644_v18, %v5957_v16  ;;  %v6054_v33 = vor.u32 %v6668_v20, %v6053_v19  ;;  %v5945_v35 = vld [vmem:[#allocation5 + $0xcc0] sm:$0xf]  ;;  %v6247_v18 = vld [vmem:[#allocation5 + $0x7c] sm:$0xf]  ;;  %v4375_v19 = vld [vmem:[#allocation5 + $0x84] sm:$0xf0] }
  0x95   :  { %3517 = vmatpush.bf16.msrb.mxu0 %v5466_v51  ;;  %v6626_v51 = vld [vmem:[#allocation5 + $0xc50] sm:$0xf0]  ;;  %v6041_v37 = vld [vmem:[#allocation5 + $0xd80] sm:$0xf]  ;;  %v6271_v20 = vld [vmem:[#allocation5 + $0x13c] sm:$0xf] }
  0x96   :  { %3530 = vmatpush.bf16.msrb.mxu1 %v5562_v54  ;;  %v6650_v54 = vld [vmem:[#allocation5 + $0xd10] sm:$0xf0] }
  0x97   :  { %3543 = vmatpush.bf16.msrb.mxu2 %v5658_v55  ;;  %v6077_v55 = vld [vmem:[#allocation5 + $0xdc8] sm:$0xf] }
  0x98   :  { %3556 = vmatpush.bf16.msrb.mxu3 %v5754_v58  ;;  %3518 = vmatmul.bf16.vlgmr.msrb.gmra.mxu0 %v6983_v46  ;;  %v6698_v58 = vld [vmem:[#allocation5 + $0xe90] sm:$0xf0] }
  0x99   :  { %3562 = vmatpush.bf16.msra.mxu0 %v5934_v59  ;;  %3531 = vmatmul.bf16.vlgmr.msrb.gmra.mxu1 %v6987_v48  ;;  %v5886_v59 = vor.u32 %v6626_v51, %v5885_v50  ;;  %v4495_v51 = vld [vmem:[#allocation5 + $0x174] sm:$0xf0] }
  0x9a   :  { %3575 = vmatpush.bf16.msra.mxu1 %v6030_v60  ;;  %3544 = vmatmul.bf16.vlgmr.msrb.gmra.mxu2 %v6985_v47  ;;  %v5982_v60 = vor.u32 %v6650_v54, %v5981_v52  ;;  %v6301_v52 = vld [vmem:[#allocation5 + $0x22c] sm:$0xf] }
  0x9b   :  { %3588 = vmatpush.bf16.msra.mxu2 %v6126_v61  ;;  %3557 = vmatmul.bf16.vlgmr.msrb.gmra.mxu3 %v6989_v49  ;;  %v6078_v61 = vor.u32 %v6674_v56, %v6077_v55  ;;  %v6042_v55 = vor.u32 %v6665_v40, %v6041_v37  ;;  %v6325_v56 = vld [vmem:[#allocation5 + $0x2ec] sm:$0xf]  ;;  %v6244_v37 = vld [vmem:[#allocation5 + $0x64] sm:$0xf] }
  0x9c   :  { %3601 = vmatpush.bf16.msra.mxu3 %v6222_v1  ;;  %v6174_v1 = vor.u32 %v6698_v58, %v6173_v57  ;;  %v4687_v57 = vld [vmem:[#allocation5 + $0x2f4] sm:$0xf0]  ;;  %v6138_v58 = vor.u32 %v6689_v42, %v6137_v41  ;;  %v6268_v40 = vld [vmem:[#allocation5 + $0x124] sm:$0xf]  ;;  %v4459_v42 = vld [vmem:[#allocation5 + $0x12c] sm:$0xf0] }
  0x9d   :  { %3563 = vmatpush.bf16.msra.mxu0 %v5922_v7  ;;  %v5874_v7 = vor.u32 %v6623_v63, %v5873_v62  ;;  %v6250_v62 = vld [vmem:[#allocation5 + $0x94] sm:$0xf]  ;;  %v4387_v63 = vld [vmem:[#allocation5 + $0x9c] sm:$0xf0] }
  0x9e   :  { %3576 = vmatpush.bf16.msra.mxu1 %v6018_v9  ;;  %v5970_v9 = vor.u32 %v6647_v2, %v5969_v0  ;;  %v6274_v0 = vld [vmem:[#allocation5 + $0x154] sm:$0xf]  ;;  %v4483_v2 = vld [vmem:[#allocation5 + $0x15c] sm:$0xf0] }
  0x9f   :  { %3589 = vmatpush.bf16.msra.mxu2 %v6114_v10  ;;  %v6066_v10 = vor.u32 %v6671_v4, %v6065_v3  ;;  %v6298_v3 = vld [vmem:[#allocation5 + $0x214] sm:$0xf]  ;;  %v4579_v4 = vld [vmem:[#allocation5 + $0x21c] sm:$0xf0]  ;;  %v4486_v16 = vor.u32 %v6274_v0, %v4483_v2 }
  0xa0   :  { %3602 = vmatpush.bf16.msra.mxu3 %v6210_v17  ;;  %v6162_v17 = vor.u32 %v6695_v6, %v6161_v5  ;;  %v770_v5 = vld [vmem:[#allocation1] sm:$0xff]  ;;  %v6322_v6 = vld [vmem:[#allocation5 + $0x2d4] sm:$0xf] }
  0xa1   :  { %3564 = vmatpush.bf16.msra.mxu0 %v5910_v23  ;;  %v5862_v23 = vor.u32 %v6620_v14, %v5861_v13  ;;  %v773_v13 = vld [vmem:[#allocation1 + $0x1b] sm:$0xff]  ;;  %v4390_v14 = vor.u32 %v6250_v62, %v4387_v63  ;;  %v4639_v62 = vld [vmem:[#allocation5 + $0x294] sm:$0xf0]  ;;  %v6238_v0 = vld [vmem:[#allocation5 + $0x34] sm:$0xf] }
  0xa2   :  { %3577 = vmatpush.bf16.msra.mxu1 %v6006_v24  ;;  %v5849_v24 = vld [vmem:[#allocation5 + $0xc00] sm:$0xf] }
  0xa3   :  { %3590 = vmatpush.bf16.msra.mxu2 %v6102_v26  ;;  %v6617_v26 = vld [vmem:[#allocation5 + $0xc08] sm:$0xf0] }
  0xa4   :  { %3603 = vmatpush.bf16.msra.mxu3 %v6198_v36  ;;  %v6641_v36 = vld [vmem:[#allocation5 + $0xcc8] sm:$0xf0]  ;;  %v5850_v50 = vor.u32 %v6617_v26, %v5849_v24  ;;  %v4567_v24 = vld [vmem:[#allocation5 + $0x204] sm:$0xf0]  ;;  %v6319_v26 = vld [vmem:[#allocation5 + $0x2bc] sm:$0xf] }
  0xa5   :  { %3565 = vmatpush.bf16.msra.mxu0 %v5898_v43  ;;  %v6253_v43 = vld [vmem:[#allocation5 + $0xac] sm:$0xf]  ;;  %v5946_v54 = vor.u32 %v6641_v36, %v5945_v35  ;;  %v4474_v35 = vor.u32 %v6271_v20, %v4471_v22  ;;  %v4327_v20 = vld [vmem:[#allocation5 + $0x24] sm:$0xf0] }
  0xa6   :  { %3578 = vmatpush.bf16.msra.mxu1 %v5994_v44  ;;  %v4399_v44 = vld [vmem:[#allocation5 + $0xb4] sm:$0xf0] }
  0xa7   :  { %3591 = vmatpush.bf16.msra.mxu2 %v6090_v45  ;;  %v6277_v45 = vld [vmem:[#allocation5 + $0x16c] sm:$0xf] }
  0xa8   :  { %3604 = vmatpush.bf16.msra.mxu3 %v6186_v53  ;;  %v4591_v53 = vld [vmem:[#allocation5 + $0x234] sm:$0xf0] }
  0xa9   :  { %3566 = vmatpush.bf16.msra.mxu0 %v5886_v59  ;;  %v4402_v59 = vor.u32 %v6253_v43, %v4399_v44  ;;  %v6292_v43 = vld [vmem:[#allocation5 + $0x1e4] sm:$0xf]  ;;  %v4555_v44 = vld [vmem:[#allocation5 + $0x1ec] sm:$0xf0] }
  0xaa   :  { %3579 = vmatpush.bf16.msra.mxu1 %v5982_v60  ;;  %v4498_v60 = vor.u32 %v6277_v45, %v4495_v51  ;;  %v6316_v45 = vld [vmem:[#allocation5 + $0x2a4] sm:$0xf] }
  0xab   :  { %3592 = vmatpush.bf16.msra.mxu2 %v6078_v61  ;;  %v4594_v61 = vor.u32 %v6301_v52, %v4591_v53  ;;  %v4462_v52 = vor.u32 %v6268_v40, %v4459_v42  ;;  %v4558_v53 = vor.u32 %v6292_v43, %v4555_v44  ;;  %v6256_v43 = vld [vmem:[#allocation5 + $0xc4] sm:$0xf]  ;;  %v4411_v44 = vld [vmem:[#allocation5 + $0xcc] sm:$0xf0] }
  0xac   :  { %3605 = vmatpush.bf16.msra.mxu3 %v6174_v1  ;;  %v4690_v1 = vor.u32 %v6325_v56, %v4687_v57  ;;  %v6265_v56 = vld [vmem:[#allocation5 + $0x10c] sm:$0xf] }
  0xad   :  { %3567 = vmatpush.bf16.msra.mxu0 %v5874_v7  ;;  %v4675_v7 = vld [vmem:[#allocation5 + $0x2dc] sm:$0xf0] }
  0xae   :  { %3580 = vmatpush.bf16.msra.mxu1 %v5970_v9  ;;  %v772_v9 = vld [vmem:[#allocation1 + $0x12] sm:$0xff]  ;;  %v4678_v21 = vor.u32 %v6322_v6, %v4675_v7 }
  0xaf   :  { %3593 = vmatpush.bf16.msra.mxu2 %v6066_v10  ;;  %v771_v10 = vld [vmem:[#allocation1 + $0x9] sm:$0xff] }
  0xb0   :  { %3606 = vmatpush.bf16.msra.mxu3 %v6162_v17  ;;  %v4582_v17 = vor.u32 %v6298_v3, %v4579_v4  ;;  %v4339_v3 = vld [vmem:[#allocation5 + $0x3c] sm:$0xf0]  ;;  %v6262_v4 = vld [vmem:[#allocation5 + $0xf4] sm:$0xf] }
  0xb1   :  { %3568 = vmatpush.bf16.msra.mxu0 %v5862_v23  ;;  %v6295_v23 = vld [vmem:[#allocation5 + $0x1fc] sm:$0xf]  ;;  %v6286_v7 = vld [vmem:[#allocation5 + $0x1b4] sm:$0xf] }
  0xb2   :  { %3581 = vmatpush.bf16.msra.mxu1 %v5958_v30  ;;  %v4663_v30 = vld [vmem:[#allocation5 + $0x2c4] sm:$0xf0]  ;;  %v4570_v36 = vor.u32 %v6295_v23, %v4567_v24 }
  0xb3   :  { %3594 = vmatpush.bf16.msra.mxu2 %v6054_v33  ;;  %v4378_v33 = vor.u32 %v6247_v18, %v4375_v19  ;;  %v4666_v41 = vor.u32 %v6319_v26, %v4663_v30  ;;  %v4423_v24 = vld [vmem:[#allocation5 + $0xe4] sm:$0xf0]  ;;  %v6283_v26 = vld [vmem:[#allocation5 + $0x19c] sm:$0xf] }
  0xb4   :  { %3607 = vmatpush.bf16.msra.mxu3 %v6150_v39  ;;  %v4363_v39 = vld [vmem:[#allocation5 + $0x6c] sm:$0xf0]  ;;  %v4519_v30 = vld [vmem:[#allocation5 + $0x1a4] sm:$0xf0] }
  0xb5   :  { %3569 = vmatpush.bf16.msra.mxu0 %v5850_v50  ;;  %v4651_v50 = vld [vmem:[#allocation5 + $0x2ac] sm:$0xf0]  ;;  %v4366_v51 = vor.u32 %v6244_v37, %v4363_v39  ;;  %v6232_v37 = vld [vmem:[#allocation5 + $0x4] sm:$0xf]  ;;  %v4522_v42 = vor.u32 %v6283_v26, %v4519_v30  ;;  %v5059_v26 = vld [vmem:[#allocation5 + $0x5dc] sm:$0xf0] }
  0xb6   :  { %3582 = vmatpush.bf16.msra.mxu1 %v5946_v54  ;;  %v6241_v54 = vld [vmem:[#allocation5 + $0x4c] sm:$0xf]  ;;  %v4654_v57 = vor.u32 %v6316_v45, %v4651_v50  ;;  %v4315_v39 = vld [vmem:[#allocation5 + $0xc] sm:$0xf0]  ;;  %v6280_v45 = vld [vmem:[#allocation5 + $0x184] sm:$0xf] }
  0xb7   :  { %3595 = vmatpush.bf16.msra.mxu2 %v6042_v55  ;;  %v4351_v55 = vld [vmem:[#allocation5 + $0x54] sm:$0xf0] }
  0xb8   :  { %3608 = vmatpush.bf16.msra.mxu3 %v6138_v58  ;;  %3570 = vmatmul.bf16.vlgmr.msra.gmra.mxu0 %v770_v5  ;;  %v4447_v58 = vld [vmem:[#allocation5 + $0x114] sm:$0xf0]  ;;  %v4354_v63 = vor.u32 %v6241_v54, %v4351_v55  ;;  %v4435_v5 = vld [vmem:[#allocation5 + $0xfc] sm:$0xf0]  ;;  %v6304_v54 = vld [vmem:[#allocation5 + $0x244] sm:$0xf] }
  0xb9   :  { %3614 = vmatpush.bf16.msrb.mxu0 %v4402_v59  ;;  %3583 = vmatmul.bf16.vlgmr.msra.gmra.mxu1 %v771_v10  ;;  %v6289_v59 = vld [vmem:[#allocation5 + $0x1cc] sm:$0xf]  ;;  %v740_v10 = vld [vmem:[#allocation7] sm:$0x7]  ;;  %v4438_v18 = vor.u32 %v6262_v4, %v4435_v5  ;;  %v4603_v55 = vld [vmem:[#allocation5 + $0x24c] sm:$0xf0] }
  0xba   :  { %3627 = vmatpush.bf16.msrb.mxu1 %v4498_v60  ;;  %3596 = vmatmul.bf16.vlgmr.msra.gmra.mxu2 %v772_v9  ;;  %v4543_v60 = vld [vmem:[#allocation5 + $0x1d4] sm:$0xf0]  ;;  %v4531_v9 = vld [vmem:[#allocation5 + $0x1bc] sm:$0xf0]  ;;  %v742_v22 = vperm.slane %v740_v10, 0  ;;  %v4606_v5 = vor.u32 %v6304_v54, %v4603_v55 }
  0xbb   :  { %3640 = vmatpush.bf16.msrb.mxu2 %v4594_v61  ;;  %3609 = vmatmul.bf16.vlgmr.msra.gmra.mxu3 %v773_v13  ;;  %v6313_v61 = vld [vmem:[#allocation5 + $0x28c] sm:$0xf]  ;;  %v4546_v2 = vor.u32 %v6289_v59, %v4543_v60  ;;  %v6310_v13 = vld [vmem:[#allocation5 + $0x274] sm:$0xf]  ;;  %v4534_v19 = vor.u32 %v6286_v7, %v4531_v9  ;;  %v3363_v40 = vpop.f32.mrf.mxu0  ;;  %v4318_v60 = vor.u32 %v6232_v37, %v4315_v39  ;;  %v6343_v37 = vld [vmem:[#allocation5 + $0x37c] sm:$0xf] }
  0xbc   :  { %3653 = vmatpush.bf16.msrb.mxu3 %v4690_v1  ;;  %v4450_v1 = vor.u32 %v6265_v56, %v4447_v58  ;;  %v4642_v6 = vor.u32 %v6313_v61, %v4639_v62  ;;  %v3364_v50 = vadd.f32 %v3363_v40, %v742_v22  ;;  %v6349_v56 = vld [vmem:[#allocation5 + $0x3ac] sm:$0xf]  ;;  %v4879_v61 = vld [vmem:[#allocation5 + $0x474] sm:$0xf0]  ;;  %v4759_v39 = vld [vmem:[#allocation5 + $0x384] sm:$0xf0] }
  0xbd   :  { %3615 = vmatpush.bf16.msrb.mxu0 %v4390_v14  ;;  %v4627_v14 = vld [vmem:[#allocation5 + $0x27c] sm:$0xf0]  ;;  %v6373_v58 = vld [vmem:[#allocation5 + $0x46c] sm:$0xf]  ;;  %v6367_v40 = vld [vmem:[#allocation5 + $0x43c] sm:$0xf] }
  0xbe   :  { %3628 = vmatpush.bf16.msrb.mxu1 %v4486_v16  ;;  %v4342_v16 = vor.u32 %v6238_v0, %v4339_v3  ;;  %v4630_v23 = vor.u32 %v6310_v13, %v4627_v14  ;;  %v6397_v62 = vld [vmem:[#allocation5 + $0x52c] sm:$0xf]  ;;  %v4414_v0 = vor.u32 %v6256_v43, %v4411_v44  ;;  %v5071_v3 = vld [vmem:[#allocation5 + $0x5f4] sm:$0xf0]  ;;  %v4882_v10 = vor.u32 %v6373_v58, %v4879_v61  ;;  %v6346_v14 = vld [vmem:[#allocation5 + $0x394] sm:$0xf] }
  0xbf   :  { %3641 = vmatpush.bf16.msrb.mxu2 %v4582_v17  ;;  %v6235_v17 = vld [vmem:[#allocation5 + $0x1c] sm:$0xf]  ;;  %v4951_v44 = vld [vmem:[#allocation5 + $0x504] sm:$0xf0]  ;;  %v6364_v58 = vld [vmem:[#allocation5 + $0x424] sm:$0xf] }
  0xc0   :  { %3654 = vmatpush.bf16.msrb.mxu3 %v4678_v21  ;;  %v6259_v21 = vld [vmem:[#allocation5 + $0xdc] sm:$0xf]  ;;  %v3389_v4 = vpop.f32.mrf.mxu2  ;;  %v6388_v61 = vld [vmem:[#allocation5 + $0x4e4] sm:$0xf] }
  0xc1   :  { %3616 = vmatpush.bf16.msrb.mxu0 %v4378_v33  ;;  %v6307_v33 = vld [vmem:[#allocation5 + $0x25c] sm:$0xf] }
  0xc2   :  { %3629 = vmatpush.bf16.msrb.mxu1 %v4474_v35  ;;  %v4615_v35 = vld [vmem:[#allocation5 + $0x264] sm:$0xf0]  ;;  %v3402_v9 = vpop.f32.mrf.mxu3  ;;  %v6391_v43 = vld [vmem:[#allocation5 + $0x4fc] sm:$0xf] }
  0xc3   :  { %3642 = vmatpush.bf16.msrb.mxu2 %v4570_v36  ;;  %v4330_v36 = vor.u32 %v6235_v17, %v4327_v20  ;;  %v6370_v17 = vld [vmem:[#allocation5 + $0x454] sm:$0xf]  ;;  %v4954_v55 = vor.u32 %v6391_v43, %v4951_v44  ;;  %v5011_v43 = vld [vmem:[#allocation5 + $0x57c] sm:$0xf0] }
  0xc4   :  { %3655 = vmatpush.bf16.msrb.mxu3 %v4666_v41  ;;  %v4426_v41 = vor.u32 %v6259_v21, %v4423_v24  ;;  %v6394_v20 = vld [vmem:[#allocation5 + $0x514] sm:$0xf]  ;;  %v4963_v21 = vld [vmem:[#allocation5 + $0x51c] sm:$0xf0] }
  0xc5   :  { %3617 = vmatpush.bf16.msrb.mxu0 %v4366_v51  ;;  %v3376_v51 = vpop.f32.mrf.mxu1  ;;  %v6418_v24 = vld [vmem:[#allocation5 + $0x5d4] sm:$0xf] }
  0xc6   :  { %3630 = vmatpush.bf16.msrb.mxu1 %v4462_v52  ;;  %v4618_v52 = vor.u32 %v6307_v33, %v4615_v35  ;;  %v3377_v59 = vadd.f32 %v3376_v51, %v3364_v50  ;;  %v5047_v50 = vld [vmem:[#allocation5 + $0x5c4] sm:$0xf0] }
  0xc7   :  { %3643 = vmatpush.bf16.msrb.mxu2 %v4558_v53  ;;  %v4507_v53 = vld [vmem:[#allocation5 + $0x18c] sm:$0xf0] }
  0xc8   :  { %3656 = vmatpush.bf16.msrb.mxu3 %v4654_v57  ;;  %v4783_v57 = vld [vmem:[#allocation5 + $0x3b4] sm:$0xf0]  ;;  %v3390_v7 = vadd.f32 %v3389_v4, %v3377_v59  ;;  %v3391_v51 = vpop.f32.mrf.mxu2 }
  0xc9   :  { %3618 = vmatpush.bf16.msrb.mxu0 %v4354_v63  ;;  %v4975_v63 = vld [vmem:[#allocation5 + $0x534] sm:$0xf0] }
  0xca   :  { %3631 = vmatpush.bf16.msrb.mxu1 %v4450_v1  ;;  %v4510_v1 = vor.u32 %v6280_v45, %v4507_v53  ;;  %v4978_v13 = vor.u32 %v6397_v62, %v4975_v63  ;;  %v3403_v22 = vadd.f32 %v3402_v9, %v3390_v7  ;;  %v6415_v45 = vld [vmem:[#allocation5 + $0x5bc] sm:$0xf]  ;;  %v3404_v53 = vpop.f32.mrf.mxu3  ;;  %v4939_v62 = vld [vmem:[#allocation5 + $0x4ec] sm:$0xf0]  ;;  %v6412_v63 = vld [vmem:[#allocation5 + $0x5a4] sm:$0xf] }
  0xcb   :  { %3644 = vmatpush.bf16.msrb.mxu2 %v4546_v2  ;;  %v6421_v2 = vld [vmem:[#allocation5 + $0x5ec] sm:$0xf]  ;;  %v5050_v59 = vor.u32 %v6415_v45, %v5047_v50  ;;  %v4942_v4 = vor.u32 %v6388_v61, %v4939_v62  ;;  %v6331_v53 = vld [vmem:[#allocation5 + $0x31c] sm:$0xf]  ;;  %v4999_v62 = vld [vmem:[#allocation5 + $0x564] sm:$0xf0] }
  0xcc   :  { %3657 = vmatpush.bf16.msrb.mxu3 %v4642_v6  ;;  %v4786_v6 = vor.u32 %v6349_v56, %v4783_v57  ;;  %v6340_v56 = vld [vmem:[#allocation5 + $0x364] sm:$0xf]  ;;  %v4747_v57 = vld [vmem:[#allocation5 + $0x36c] sm:$0xf0]  ;;  %v6361_v7 = vld [vmem:[#allocation5 + $0x40c] sm:$0xf] }
  0xcd   :  { %3619 = vmatpush.bf16.msrb.mxu0 %v4342_v16  ;;  %v4771_v16 = vld [vmem:[#allocation5 + $0x39c] sm:$0xf0]  ;;  %v3378_v30 = vpop.f32.mrf.mxu1  ;;  %v6403_v61 = vld [vmem:[#allocation5 + $0x55c] sm:$0xf] }
  0xce   :  { %3632 = vmatpush.bf16.msrb.mxu1 %v4438_v18  ;;  %v5074_v18 = vor.u32 %v6421_v2, %v5071_v3  ;;  %v4774_v33 = vor.u32 %v6346_v14, %v4771_v16  ;;  %v4831_v14 = vld [vmem:[#allocation5 + $0x414] sm:$0xf0]  ;;  %v6385_v16 = vld [vmem:[#allocation5 + $0x4cc] sm:$0xf]  ;;  %v4723_v30 = vld [vmem:[#allocation5 + $0x33c] sm:$0xf0] }
  0xcf   :  { %3645 = vmatpush.bf16.msrb.mxu2 %v4534_v19  ;;  %v4867_v19 = vld [vmem:[#allocation5 + $0x45c] sm:$0xf0] }
  0xd0   :  { %3658 = vmatpush.bf16.msrb.mxu3 %v4630_v23  ;;  %v3365_v23 = vpop.f32.mrf.mxu0  ;;  %v4870_v35 = vor.u32 %v6370_v17, %v4867_v19  ;;  %v4927_v17 = vld [vmem:[#allocation5 + $0x4d4] sm:$0xf0] }
  0xd1   :  { %3620 = vmatpush.bf16.msrb.mxu0 %v4330_v36  ;;  %v4966_v36 = vor.u32 %v6394_v20, %v4963_v21  ;;  %v5023_v19 = vld [vmem:[#allocation5 + $0x594] sm:$0xf0]  ;;  %v4834_v23 = vor.u32 %v6361_v7, %v4831_v14  ;;  %v4987_v14 = vld [vmem:[#allocation5 + $0x54c] sm:$0xf0] }
  0xd2   :  { %3633 = vmatpush.bf16.msrb.mxu1 %v4426_v41  ;;  %v5062_v41 = vor.u32 %v6418_v24, %v5059_v26  ;;  %v4930_v24 = vor.u32 %v6385_v16, %v4927_v17  ;;  %v6334_v26 = vld [vmem:[#allocation5 + $0x334] sm:$0xf]  ;;  %v6445_v17 = vld [vmem:[#allocation5 + $0x6ac] sm:$0xf] }
  0xd3   :  { %3646 = vmatpush.bf16.msrb.mxu2 %v4522_v42  ;;  %v4855_v42 = vld [vmem:[#allocation5 + $0x444] sm:$0xf0]  ;;  %v4726_v44 = vor.u32 %v6334_v26, %v4723_v30 }
  0xd4   :  { %3659 = vmatpush.bf16.msrb.mxu3 %v4618_v52  ;;  %v4762_v52 = vor.u32 %v6343_v37, %v4759_v39  ;;  %v4858_v54 = vor.u32 %v6367_v40, %v4855_v42  ;;  %v6382_v37 = vld [vmem:[#allocation5 + $0x4b4] sm:$0xf]  ;;  %v4915_v39 = vld [vmem:[#allocation5 + $0x4bc] sm:$0xf0] }
  0xd5   :  { %3621 = vmatpush.bf16.msrb.mxu0 %v4318_v60  ;;  %v4843_v60 = vld [vmem:[#allocation5 + $0x42c] sm:$0xf0]  ;;  %v6406_v42 = vld [vmem:[#allocation5 + $0x574] sm:$0xf] }
  0xd6   :  { %3634 = vmatpush.bf16.msrb.mxu1 %v4414_v0  ;;  %v5035_v0 = vld [vmem:[#allocation5 + $0x5ac] sm:$0xf0]  ;;  %v4846_v3 = vor.u32 %v6364_v58, %v4843_v60  ;;  %v4807_v58 = vld [vmem:[#allocation5 + $0x3e4] sm:$0xf0] }
  0xd7   :  { %3647 = vmatpush.bf16.msrb.mxu2 %v4510_v1  ;;  %v4750_v1 = vor.u32 %v6340_v56, %v4747_v57  ;;  %v5014_v57 = vor.u32 %v6406_v42, %v5011_v43  ;;  %v4903_v60 = vld [vmem:[#allocation5 + $0x4a4] sm:$0xf0]  ;;  %v6466_v42 = vld [vmem:[#allocation5 + $0x754] sm:$0xf] }
  0xd8   :  { %3660 = vmatpush.bf16.msrb.mxu3 %v4606_v5  ;;  %3622 = vmatmul.bf16.vlgmr.msrb.gmra.mxu0 %v6949_v28  ;;  %v3415_v2 = vpop.f32.mrf.mxu0  ;;  %v6337_v5 = vld [vmem:[#allocation5 + $0x34c] sm:$0xf] }
  0xd9   :  { %3666 = vmatpush.bf16.msra.mxu0 %v4786_v6  ;;  %3635 = vmatmul.bf16.vlgmr.msrb.gmra.mxu1 %v6953_v34  ;;  %v4735_v6 = vld [vmem:[#allocation5 + $0x354] sm:$0xf0]  ;;  %v3416_v9 = vadd.f32 %v3415_v2, %v3403_v22 }
  0xda   :  { %3679 = vmatpush.bf16.msra.mxu1 %v4882_v10  ;;  %3648 = vmatmul.bf16.vlgmr.msrb.gmra.mxu2 %v6947_v27  ;;  %v3428_v10 = vpop.f32.mrf.mxu1  ;;  %v4738_v21 = vor.u32 %v6337_v5, %v4735_v6  ;;  %v4795_v5 = vld [vmem:[#allocation5 + $0x3cc] sm:$0xf0]  ;;  %v6376_v6 = vld [vmem:[#allocation5 + $0x484] sm:$0xf] }
  0xdb   :  { %3692 = vmatpush.bf16.msra.mxu2 %v4978_v13  ;;  %3661 = vmatmul.bf16.vlgmr.msrb.gmra.mxu3 %v6951_v29  ;;  %v5038_v13 = vor.u32 %v6412_v63, %v5035_v0  ;;  %v3429_v20 = vadd.f32 %v3428_v10, %v3416_v9  ;;  %v6328_v0 = vld [vmem:[#allocation5 + $0x304] sm:$0xf]  ;;  %v5002_v9 = vor.u32 %v6403_v61, %v4999_v62  ;;  %v4891_v10 = vld [vmem:[#allocation5 + $0x48c] sm:$0xf0]  ;;  %v5239_v61 = vld [vmem:[#allocation5 + $0x744] sm:$0xf0] }
  0xdc   :  { %3705 = vmatpush.bf16.msra.mxu3 %v5074_v18  ;;  %v6409_v18 = vld [vmem:[#allocation5 + $0x58c] sm:$0xf]  ;;  %v4894_v30 = vor.u32 %v6376_v6, %v4891_v10  ;;  %v6487_v62 = vld [vmem:[#allocation5 + $0x7fc] sm:$0xf]  ;;  %v5131_v6 = vld [vmem:[#allocation5 + $0x66c] sm:$0xf0] }
  0xdd   :  { %3667 = vmatpush.bf16.msra.mxu0 %v4774_v33  ;;  %v6358_v33 = vld [vmem:[#allocation5 + $0x3f4] sm:$0xf]  ;;  %v5026_v22 = vor.u32 %v6409_v18, %v5023_v19  ;;  %v5167_v18 = vld [vmem:[#allocation5 + $0x6b4] sm:$0xf0]  ;;  %v6469_v19 = vld [vmem:[#allocation5 + $0x76c] sm:$0xf] }
  0xde   :  { %3680 = vmatpush.bf16.msra.mxu1 %v4870_v35  ;;  %v3441_v35 = vpop.f32.mrf.mxu2  ;;  %v5227_v10 = vld [vmem:[#allocation5 + $0x72c] sm:$0xf0] }
  0xdf   :  { %3693 = vmatpush.bf16.msra.mxu2 %v4966_v36  ;;  %v4819_v36 = vld [vmem:[#allocation5 + $0x3fc] sm:$0xf0]  ;;  %v3442_v40 = vadd.f32 %v3441_v35, %v3429_v20  ;;  %v5455_v35 = vld [vmem:[#allocation5 + $0x8f4] sm:$0xf0] }
  0xe0   :  { %3706 = vmatpush.bf16.msra.mxu3 %v5062_v41  ;;  %v3454_v41 = vpop.f32.mrf.mxu3  ;;  %v3417_v50 = vpop.f32.mrf.mxu0  ;;  %v4822_v51 = vor.u32 %v6358_v33, %v4819_v36  ;;  %v6517_v33 = vld [vmem:[#allocation5 + $0x8ec] sm:$0xf]  ;;  %v5170_v36 = vor.u32 %v6445_v17, %v5167_v18  ;;  %v6508_v17 = vld [vmem:[#allocation5 + $0x8a4] sm:$0xf]  ;;  %v5419_v18 = vld [vmem:[#allocation5 + $0x8ac] sm:$0xf0] }
  0xe1   :  { %3668 = vmatpush.bf16.msra.mxu0 %v4762_v52  ;;  %v6999_v45 = vadd.f32 %v3454_v41, %v3442_v40  ;;  %v4918_v52 = vor.u32 %v6382_v37, %v4915_v39  ;;  %v6442_v40 = vld [vmem:[#allocation5 + $0x694] sm:$0xf]  ;;  %v5155_v41 = vld [vmem:[#allocation5 + $0x69c] sm:$0xf0]  ;;  %v5458_v43 = vor.u32 %v6517_v33, %v5455_v35  ;;  %v6457_v33 = vld [vmem:[#allocation5 + $0x70c] sm:$0xf]  ;;  %v5422_v35 = vor.u32 %v6508_v17, %v5419_v18 }
  0xe2   :  { %3681 = vmatpush.bf16.msra.mxu1 %v4858_v54  ;;  %v4711_v54 = vld [vmem:[#allocation5 + $0x324] sm:$0xf0]  ;;  %v3430_v56 = vpop.f32.mrf.mxu1  ;;  %v6490_v50 = vld [vmem:[#allocation5 + $0x814] sm:$0xf]  ;;  %v6424_v17 = vld [vmem:[#allocation5 + $0x604] sm:$0xf] }
  0xe3   :  { %3694 = vmatpush.bf16.msra.mxu2 %v4954_v55  ;;  %v6355_v55 = vld [vmem:[#allocation5 + $0x3dc] sm:$0xf]  ;;  %v4714_v63 = vor.u32 %v6331_v53, %v4711_v54  ;;  %v5443_v53 = vld [vmem:[#allocation5 + $0x8dc] sm:$0xf0]  ;;  %v5158_v54 = vor.u32 %v6442_v40, %v5155_v41  ;;  %v6505_v40 = vld [vmem:[#allocation5 + $0x88c] sm:$0xf] }
  0xe4   :  { %3707 = vmatpush.bf16.msra.mxu3 %v5050_v59  ;;  %v6379_v59 = vld [vmem:[#allocation5 + $0x49c] sm:$0xf]  ;;  %v4810_v2 = vor.u32 %v6355_v55, %v4807_v58  ;;  %v5143_v58 = vld [vmem:[#allocation5 + $0x684] sm:$0xf0]  ;;  %v5407_v41 = vld [vmem:[#allocation5 + $0x894] sm:$0xf0] }
  0xe5   :  { %3669 = vmatpush.bf16.msra.mxu0 %v4750_v1  ;;  %v4699_v1 = vld [vmem:[#allocation5 + $0x30c] sm:$0xf0] }
  0xe6   :  { %3682 = vmatpush.bf16.msra.mxu1 %v4846_v3  ;;  %v4906_v3 = vor.u32 %v6379_v59, %v4903_v60  ;;  %v3443_v7 = vpop.f32.mrf.mxu2  ;;  %v4702_v20 = vor.u32 %v6328_v0, %v4699_v1  ;;  %v6463_v59 = vld [vmem:[#allocation5 + $0x73c] sm:$0xf]  ;;  %v5431_v1 = vld [vmem:[#allocation5 + $0x8c4] sm:$0xf0]  ;;  %v5083_v18 = vld [vmem:[#allocation5 + $0x60c] sm:$0xf0] }
  0xe7   :  { %3695 = vmatpush.bf16.msra.mxu2 %v4942_v4  ;;  %v6352_v4 = vld [vmem:[#allocation5 + $0x3c4] sm:$0xf]  ;;  %v6511_v0 = vld [vmem:[#allocation5 + $0x8bc] sm:$0xf] }
  0xe8   :  { %3708 = vmatpush.bf16.msra.mxu3 %v5038_v13  ;;  %v6400_v13 = vld [vmem:[#allocation5 + $0x544] sm:$0xf]  ;;  %v3456_v16 = vpop.f32.mrf.mxu3  ;;  %v4798_v26 = vor.u32 %v6352_v4, %v4795_v5 }
  0xe9   :  { %3670 = vmatpush.bf16.msra.mxu0 %v4738_v21  ;;  %v5263_v21 = vld [vmem:[#allocation5 + $0x774] sm:$0xf0]  ;;  %v6436_v5 = vld [vmem:[#allocation5 + $0x664] sm:$0xf] }
  0xea   :  { %3683 = vmatpush.bf16.msra.mxu1 %v4834_v23  ;;  %v6493_v23 = vld [vmem:[#allocation5 + $0x82c] sm:$0xf]  ;;  %v5266_v37 = vor.u32 %v6469_v19, %v5263_v21  ;;  %v6460_v7 = vld [vmem:[#allocation5 + $0x724] sm:$0xf] }
  0xeb   :  { %3696 = vmatpush.bf16.msra.mxu2 %v4930_v24  ;;  %v5359_v24 = vld [vmem:[#allocation5 + $0x834] sm:$0xf0] }
  0xec   :  { %3709 = vmatpush.bf16.msra.mxu3 %v5026_v22  ;;  %v4990_v22 = vor.u32 %v6400_v13, %v4987_v14  ;;  %v5362_v39 = vor.u32 %v6493_v23, %v5359_v24  ;;  %v6484_v13 = vld [vmem:[#allocation5 + $0x7e4] sm:$0xf]  ;;  %v5323_v14 = vld [vmem:[#allocation5 + $0x7ec] sm:$0xf0]  ;;  %v5230_v23 = vor.u32 %v6460_v7, %v5227_v10  ;;  %v5191_v7 = vld [vmem:[#allocation5 + $0x6e4] sm:$0xf0] }
  0xed   :  { %3671 = vmatpush.bf16.msra.mxu0 %v4726_v44  ;;  %v5251_v44 = vld [vmem:[#allocation5 + $0x75c] sm:$0xf0]  ;;  %v5326_v24 = vor.u32 %v6484_v13, %v5323_v14  ;;  %v5287_v10 = vld [vmem:[#allocation5 + $0x7a4] sm:$0xf0]  ;;  %v6499_v13 = vld [vmem:[#allocation5 + $0x85c] sm:$0xf] }
  0xee   :  { %3684 = vmatpush.bf16.msra.mxu1 %v4822_v51  ;;  %v5347_v51 = vld [vmem:[#allocation5 + $0x81c] sm:$0xf0]  ;;  %v5254_v55 = vor.u32 %v6466_v42, %v5251_v44  ;;  %v6430_v44 = vld [vmem:[#allocation5 + $0x634] sm:$0xf]  ;;  %v5383_v14 = vld [vmem:[#allocation5 + $0x864] sm:$0xf0] }
  0xef   :  { %3697 = vmatpush.bf16.msra.mxu2 %v4918_v52  ;;  %v6514_v52 = vld [vmem:[#allocation5 + $0x8d4] sm:$0xf]  ;;  %v5350_v56 = vor.u32 %v6490_v50, %v5347_v51  ;;  %v5107_v50 = vld [vmem:[#allocation5 + $0x63c] sm:$0xf0] }
  0xf0   :  { %3710 = vmatpush.bf16.msra.mxu3 %v5014_v57  ;;  %v6439_v57 = vld [vmem:[#allocation5 + $0x67c] sm:$0xf]  ;;  %v5446_v60 = vor.u32 %v6514_v52, %v5443_v53  ;;  %v6454_v51 = vld [vmem:[#allocation5 + $0x6f4] sm:$0xf]  ;;  %v5410_v52 = vor.u32 %v6505_v40, %v5407_v41  ;;  %v5086_v41 = vor.u32 %v6424_v17, %v5083_v18  ;;  %v5815_v18 = vld [vmem:[#allocation5 + $0xbc4] sm:$0xf0] }
  0xf1   :  { %3672 = vmatpush.bf16.msra.mxu0 %v4714_v63  ;;  %v5335_v63 = vld [vmem:[#allocation5 + $0x804] sm:$0xf0]  ;;  %v6607_v17 = vld [vmem:[#allocation5 + $0xbbc] sm:$0xf] }
  0xf2   :  { %3685 = vmatpush.bf16.msra.mxu1 %v4810_v2  ;;  %v5146_v2 = vor.u32 %v6439_v57, %v5143_v58  ;;  %v5338_v4 = vor.u32 %v6487_v62, %v5335_v63  ;;  %v5110_v62 = vor.u32 %v6430_v44, %v5107_v50 }
  0xf3   :  { %3698 = vmatpush.bf16.msra.mxu2 %v4906_v3  ;;  %v5242_v3 = vor.u32 %v6463_v59, %v5239_v61  ;;  %v6502_v59 = vld [vmem:[#allocation5 + $0x874] sm:$0xf] }
  0xf4   :  { %3711 = vmatpush.bf16.msra.mxu3 %v5002_v9  ;;  %v5434_v9 = vor.u32 %v6511_v0, %v5431_v1 }
  0xf5   :  { %3673 = vmatpush.bf16.msra.mxu0 %v4702_v20  ;;  %v3467_v16 = vpop.f32.mrf.mxu0  ;;  %v5134_v20 = vor.u32 %v6436_v5, %v5131_v6  ;;  %v6451_v5 = vld [vmem:[#allocation5 + $0x6dc] sm:$0xf] }
  0xf6   :  { %3686 = vmatpush.bf16.msra.mxu1 %v4798_v26  ;;  %v3468_v19 = vadd.f32 %v3467_v16, %v6999_v45  ;;  %v3480_v21 = vpop.f32.mrf.mxu1  ;;  %v6433_v26 = vld [vmem:[#allocation5 + $0x64c] sm:$0xf] }
  0xf7   :  { %3699 = vmatpush.bf16.msra.mxu2 %v4894_v30  ;;  %v5119_v30 = vld [vmem:[#allocation5 + $0x654] sm:$0xf0] }
  0xf8   :  { %3712 = vmatpush.bf16.msra.mxu3 %v4990_v22  ;;  %3674 = vmatmul.bf16.vlgmr.msra.gmra.mxu0 %v6961_v31  ;;  %v3481_v22 = vadd.f32 %v3480_v21, %v3468_v19  ;;  %v5122_v42 = vor.u32 %v6433_v26, %v5119_v30  ;;  %v5194_v19 = vor.u32 %v6451_v5, %v5191_v7  ;;  %v6448_v21 = vld [vmem:[#allocation5 + $0x6c4] sm:$0xf]  ;;  %v5275_v30 = vld [vmem:[#allocation5 + $0x78c] sm:$0xf0]  ;;  %v5527_v7 = vld [vmem:[#allocation5 + $0x984] sm:$0xf0] }
  0xf9   :  { %3718 = vmatpush.bf16.msrb.mxu0 %v5170_v36  ;;  %3687 = vmatmul.bf16.vlgmr.msra.gmra.mxu1 %v6965_v38  ;;  %v5215_v36 = vld [vmem:[#allocation5 + $0x714] sm:$0xf0]  ;;  %v5386_v26 = vor.u32 %v6499_v13, %v5383_v14  ;;  %v5623_v13 = vld [vmem:[#allocation5 + $0xa44] sm:$0xf0]  ;;  %v6583_v14 = vld [vmem:[#allocation5 + $0xafc] sm:$0xf] }
  0xfa   :  { %3731 = vmatpush.bf16.msrb.mxu1 %v5266_v37  ;;  %3700 = vmatmul.bf16.vlgmr.msra.gmra.mxu2 %v6959_v25  ;;  %v6481_v37 = vld [vmem:[#allocation5 + $0x7cc] sm:$0xf]  ;;  %v5218_v45 = vor.u32 %v6457_v33, %v5215_v36  ;;  %v6496_v33 = vld [vmem:[#allocation5 + $0x844] sm:$0xf] }
  0xfb   :  { %3744 = vmatpush.bf16.msrb.mxu2 %v5362_v39  ;;  %3713 = vmatmul.bf16.vlgmr.msra.gmra.mxu3 %v6963_v32  ;;  %v5311_v39 = vld [vmem:[#allocation5 + $0x7d4] sm:$0xf0]  ;;  %v6541_v36 = vld [vmem:[#allocation5 + $0x9ac] sm:$0xf] }
  0xfc   :  { %3757 = vmatpush.bf16.msrb.mxu3 %v5458_v43  ;;  %v5314_v43 = vor.u32 %v6481_v37, %v5311_v39  ;;  %v5551_v37 = vld [vmem:[#allocation5 + $0x9b4] sm:$0xf0]  ;;  %v6565_v39 = vld [vmem:[#allocation5 + $0xa6c] sm:$0xf] }
  0xfd   :  { %3719 = vmatpush.bf16.msrb.mxu0 %v5158_v54  ;;  %v3493_v53 = vpop.f32.mrf.mxu2  ;;  %v5203_v54 = vld [vmem:[#allocation5 + $0x6fc] sm:$0xf0]  ;;  %v3469_v61 = vpop.f32.mrf.mxu0 }
  0xfe   :  { %3732 = vmatpush.bf16.msrb.mxu1 %v5254_v55  ;;  %v6478_v55 = vld [vmem:[#allocation5 + $0x7b4] sm:$0xf]  ;;  %v3494_v57 = vadd.f32 %v3493_v53, %v3481_v22  ;;  %v3506_v58 = vpop.f32.mrf.mxu3  ;;  %v3482_v63 = vpop.f32.mrf.mxu1  ;;  %v5206_v1 = vor.u32 %v6454_v51, %v5203_v54  ;;  %v6613_v51 = vld [vmem:[#allocation5 + $0xbec] sm:$0xf]  ;;  %v5554_v54 = vor.u32 %v6541_v36, %v5551_v37  ;;  %v5635_v61 = vld [vmem:[#allocation5 + $0xa5c] sm:$0xf0] }
  0xff   :  { %3745 = vmatpush.bf16.msrb.mxu2 %v5350_v56  ;;  %v5299_v56 = vld [vmem:[#allocation5 + $0x7bc] sm:$0xf0]  ;;  %v6604_v37 = vld [vmem:[#allocation5 + $0xba4] sm:$0xf] }
 0x100   :  { %3758 = vmatpush.bf16.msrb.mxu3 %v5446_v60  ;;  %v5395_v60 = vld [vmem:[#allocation5 + $0x87c] sm:$0xf0]  ;;  %v7006_v0 = vadd.f32 %v3506_v58, %v3494_v57  ;;  %v6538_v57 = vld [vmem:[#allocation5 + $0x994] sm:$0xf] }
 0x101   :  { %3720 = vmatpush.bf16.msrb.mxu0 %v5146_v2  ;;  %v5302_v2 = vor.u32 %v6478_v55, %v5299_v56  ;;  %v5398_v6 = vor.u32 %v6502_v59, %v5395_v60  ;;  %v5539_v58 = vld [vmem:[#allocation5 + $0x99c] sm:$0xf0]  ;;  %v6562_v59 = vld [vmem:[#allocation5 + $0xa54] sm:$0xf] }
 0x102   :  { %3733 = vmatpush.bf16.msrb.mxu1 %v5242_v3  ;;  %v6427_v3 = vld [vmem:[#allocation5 + $0x61c] sm:$0xf]  ;;  %v5731_v63 = vld [vmem:[#allocation5 + $0xb1c] sm:$0xf0] }
 0x103   :  { %3746 = vmatpush.bf16.msrb.mxu2 %v5338_v4  ;;  %v5095_v4 = vld [vmem:[#allocation5 + $0x624] sm:$0xf0] }
 0x104   :  { %3759 = vmatpush.bf16.msrb.mxu3 %v5434_v9  ;;  %v6475_v9 = vld [vmem:[#allocation5 + $0x79c] sm:$0xf]  ;;  %v5098_v16 = vor.u32 %v6427_v3, %v5095_v4  ;;  %v5542_v3 = vor.u32 %v6538_v57, %v5539_v58  ;;  %v5638_v4 = vor.u32 %v6562_v59, %v5635_v61  ;;  %v5491_v61 = vld [vmem:[#allocation5 + $0x93c] sm:$0xf0] }
 0x105   :  { %3721 = vmatpush.bf16.msrb.mxu0 %v5134_v20  ;;  %v5290_v20 = vor.u32 %v6475_v9, %v5287_v10  ;;  %v3495_v22 = vpop.f32.mrf.mxu2  ;;  %v6559_v9 = vld [vmem:[#allocation5 + $0xa3c] sm:$0xf] }
 0x106   :  { %3734 = vmatpush.bf16.msrb.mxu1 %v5230_v23  ;;  %v5179_v23 = vld [vmem:[#allocation5 + $0x6cc] sm:$0xf0]  ;;  %v3508_v40 = vpop.f32.mrf.mxu3 }
 0x107   :  { %3747 = vmatpush.bf16.msrb.mxu2 %v5326_v24  ;;  %v6472_v24 = vld [vmem:[#allocation5 + $0x784] sm:$0xf]  ;;  %v5182_v44 = vor.u32 %v6448_v21, %v5179_v23  ;;  %v5707_v22 = vld [vmem:[#allocation5 + $0xaec] sm:$0xf0] }
 0x108   :  { %3760 = vmatpush.bf16.msrb.mxu3 %v5422_v35  ;;  %v5371_v35 = vld [vmem:[#allocation5 + $0x84c] sm:$0xf0]  ;;  %v5278_v50 = vor.u32 %v6472_v24, %v5275_v30  ;;  %v6532_v23 = vld [vmem:[#allocation5 + $0x964] sm:$0xf]  ;;  %v5818_v30 = vor.u32 %v6607_v17, %v5815_v18  ;;  %v6523_v17 = vld [vmem:[#allocation5 + $0x91c] sm:$0xf] }
 0x109   :  { %3722 = vmatpush.bf16.msrb.mxu0 %v5122_v42  ;;  %v5647_v42 = vld [vmem:[#allocation5 + $0xa74] sm:$0xf0]  ;;  %v5374_v53 = vor.u32 %v6496_v33, %v5371_v35  ;;  %v5515_v24 = vld [vmem:[#allocation5 + $0x96c] sm:$0xf0]  ;;  %v6580_v35 = vld [vmem:[#allocation5 + $0xae4] sm:$0xf] }
 0x10a   :  { %3735 = vmatpush.bf16.msrb.mxu1 %v5218_v45  ;;  %v6589_v45 = vld [vmem:[#allocation5 + $0xb2c] sm:$0xf]  ;;  %v5650_v55 = vor.u32 %v6565_v39, %v5647_v42  ;;  %v5611_v33 = vld [vmem:[#allocation5 + $0xa2c] sm:$0xf0]  ;;  %v5518_v40 = vor.u32 %v6532_v23, %v5515_v24  ;;  %v5479_v18 = vld [vmem:[#allocation5 + $0x924] sm:$0xf0] }
 0x10b   :  { %3748 = vmatpush.bf16.msrb.mxu2 %v5314_v43  ;;  %v5743_v43 = vld [vmem:[#allocation5 + $0xb34] sm:$0xf0]  ;;  %v5803_v39 = vld [vmem:[#allocation5 + $0xbac] sm:$0xf0]  ;;  %v6571_v23 = vld [vmem:[#allocation5 + $0xa9c] sm:$0xf] }
 0x10c   :  { %3761 = vmatpush.bf16.msrb.mxu3 %v5410_v52  ;;  %v5839_v52 = vld [vmem:[#allocation5 + $0xbf4] sm:$0xf0]  ;;  %v5746_v56 = vor.u32 %v6589_v45, %v5743_v43  ;;  %v5710_v45 = vor.u32 %v6580_v35, %v5707_v22  ;;  %v6529_v43 = vld [vmem:[#allocation5 + $0x94c] sm:$0xf]  ;;  %v5671_v24 = vld [vmem:[#allocation5 + $0xaa4] sm:$0xf0] }
 0x10d   :  { %3723 = vmatpush.bf16.msrb.mxu0 %v5110_v62  ;;  %v5842_v60 = vor.u32 %v6613_v51, %v5839_v52  ;;  %v6586_v62 = vld [vmem:[#allocation5 + $0xb14] sm:$0xf]  ;;  %v5806_v51 = vor.u32 %v6604_v37, %v5803_v39  ;;  %v5599_v52 = vld [vmem:[#allocation5 + $0xa14] sm:$0xf0]  ;;  %v6520_v35 = vld [vmem:[#allocation5 + $0x904] sm:$0xf]  ;;  %v5674_v39 = vor.u32 %v6571_v23, %v5671_v24 }
 0x10e   :  { %3736 = vmatpush.bf16.msrb.mxu1 %v5206_v1  ;;  %v6610_v1 = vld [vmem:[#allocation5 + $0xbd4] sm:$0xf]  ;;  %v5734_v5 = vor.u32 %v6586_v62, %v5731_v63  ;;  %v5467_v22 = vld [vmem:[#allocation5 + $0x90c] sm:$0xf0] }
 0x10f   :  { %3749 = vmatpush.bf16.msrb.mxu2 %v5302_v2  ;;  %v5827_v2 = vld [vmem:[#allocation5 + $0xbdc] sm:$0xf0]  ;;  %v6550_v62 = vld [vmem:[#allocation5 + $0x9f4] sm:$0xf] }
 0x110   :  { %3762 = vmatpush.bf16.msrb.mxu3 %v5398_v6  ;;  %v6535_v6 = vld [vmem:[#allocation5 + $0x97c] sm:$0xf]  ;;  %v5830_v10 = vor.u32 %v6610_v1, %v5827_v2  ;;  %v5587_v2 = vld [vmem:[#allocation5 + $0x9fc] sm:$0xf0] }
 0x111   :  { %3724 = vmatpush.bf16.msrb.mxu0 %v5098_v16  ;;  %v5719_v16 = vld [vmem:[#allocation5 + $0xb04] sm:$0xf0] }
 0x112   :  { %3737 = vmatpush.bf16.msrb.mxu1 %v5194_v19  ;;  %v5530_v19 = vor.u32 %v6535_v6, %v5527_v7  ;;  %v5722_v21 = vor.u32 %v6583_v14, %v5719_v16  ;;  %v6598_v6 = vld [vmem:[#allocation5 + $0xb74] sm:$0xf]  ;;  %v5779_v7 = vld [vmem:[#allocation5 + $0xb7c] sm:$0xf0]  ;;  %v5590_v14 = vor.u32 %v6550_v62, %v5587_v2  ;;  %v6223_v2 = vld [vmem:[#allocation5 + $0xef4] sm:$0xf0] }
 0x113   :  { %3750 = vmatpush.bf16.msrb.mxu2 %v5290_v20  ;;  %v5626_v20 = vor.u32 %v6559_v9, %v5623_v13 }
 0x114   :  { %3763 = vmatpush.bf16.msrb.mxu3 %v5386_v26  ;;  %v6556_v26 = vld [vmem:[#allocation5 + $0xa24] sm:$0xf] }
 0x115   :  { %3725 = vmatpush.bf16.msrb.mxu0 %v5086_v41  ;;  %v7012_v36 = vpop.f32.mrf.mxu0  ;;  %v5614_v42 = vor.u32 %v6556_v26, %v5611_v33  ;;  %v6595_v26 = vld [vmem:[#allocation5 + $0xb5c] sm:$0xf]  ;;  %v5482_v33 = vor.u32 %v6523_v17, %v5479_v18  ;;  %v6019_v17 = vld [vmem:[#allocation5 + $0xd5c] sm:$0xf0]  ;;  %v6682_v18 = vld [vmem:[#allocation5 + $0xe14] sm:$0xf] }
 0x116   :  { %3738 = vmatpush.bf16.msrb.mxu1 %v5182_v44  ;;  %v7014_v41 = vpop.f32.mrf.mxu1  ;;  %v5503_v44 = vld [vmem:[#allocation5 + $0x954] sm:$0xf0] }
 0x117   :  { %3751 = vmatpush.bf16.msrb.mxu2 %v5278_v50  ;;  %v6553_v50 = vld [vmem:[#allocation5 + $0xa0c] sm:$0xf]  ;;  %v5506_v57 = vor.u32 %v6529_v43, %v5503_v44  ;;  %v5659_v44 = vld [vmem:[#allocation5 + $0xa8c] sm:$0xf0] }
 0x118   :  { %3764 = vmatpush.bf16.msrb.mxu3 %v5374_v53  ;;  %3726 = vmatmul.bf16.vlgmr.msrb.gmra.mxu0 %v6971_v8  ;;  %v6577_v53 = vld [vmem:[#allocation5 + $0xacc] sm:$0xf]  ;;  %v5602_v58 = vor.u32 %v6553_v50, %v5599_v52  ;;  %v6592_v50 = vld [vmem:[#allocation5 + $0xb44] sm:$0xf] }
 0x119   :  { %3770 = vmatpush.bf16.msra.mxu0 %v5554_v54  ;;  %3739 = vmatmul.bf16.vlgmr.msrb.gmra.mxu1 %v6975_v12  ;;  %v5695_v54 = vld [vmem:[#allocation5 + $0xad4] sm:$0xf0] }
 0x11a   :  { %3783 = vmatpush.bf16.msra.mxu1 %v5650_v55  ;;  %3752 = vmatmul.bf16.vlgmr.msrb.gmra.mxu2 %v6973_v11  ;;  %v6601_v55 = vld [vmem:[#allocation5 + $0xb8c] sm:$0xf]  ;;  %v5698_v59 = vor.u32 %v6577_v53, %v5695_v54  ;;  %v5935_v54 = vld [vmem:[#allocation5 + $0xcb4] sm:$0xf0] }
 0x11b   :  { %3796 = vmatpush.bf16.msra.mxu2 %v5746_v56  ;;  %3765 = vmatmul.bf16.vlgmr.msrb.gmra.mxu3 %v6977_v15  ;;  %v5791_v56 = vld [vmem:[#allocation5 + $0xb94] sm:$0xf0]  ;;  %v6637_v53 = vld [vmem:[#allocation5 + $0xcac] sm:$0xf] }
 0x11c   :  { %3809 = vmatpush.bf16.msra.mxu3 %v5842_v60  ;;  %v6526_v60 = vld [vmem:[#allocation5 + $0x934] sm:$0xf]  ;;  %v5794_v63 = vor.u32 %v6601_v55, %v5791_v56  ;;  %v6661_v55 = vld [vmem:[#allocation5 + $0xd6c] sm:$0xf] }
 0x11d   :  { %3771 = vmatpush.bf16.msra.mxu0 %v5542_v3  ;;  %v7016_v1 = vpop.f32.mrf.mxu2  ;;  %v6574_v3 = vld [vmem:[#allocation5 + $0xab4] sm:$0xf]  ;;  %v3521_v9 = vpop.f32.mrf.mxu0 }
 0x11e   :  { %3784 = vmatpush.bf16.msra.mxu1 %v5638_v4  ;;  %v5683_v4 = vld [vmem:[#allocation5 + $0xabc] sm:$0xf0]  ;;  %v3534_v13 = vpop.f32.mrf.mxu1 }
 0x11f   :  { %3797 = vmatpush.bf16.msra.mxu2 %v5734_v5  ;;  %v7018_v5 = vpop.f32.mrf.mxu3  ;;  %v5686_v16 = vor.u32 %v6574_v3, %v5683_v4  ;;  %v3520_v3 = vadd.f32 %v7012_v36, %v7006_v0  ;;  %v5923_v13 = vld [vmem:[#allocation5 + $0xc9c] sm:$0xf0] }
 0x120   :  { %3810 = vmatpush.bf16.msra.mxu3 %v5830_v10  ;;  %v5494_v10 = vor.u32 %v6526_v60, %v5491_v61  ;;  %v6127_v60 = vld [vmem:[#allocation5 + $0xe34] sm:$0xf0] }
 0x121   :  { %3772 = vmatpush.bf16.msra.mxu0 %v5530_v19  ;;  %v6547_v19 = vld [vmem:[#allocation5 + $0x9dc] sm:$0xf]  ;;  %v3533_v23 = vadd.f32 %v7014_v41, %v3520_v3  ;;  %v6625_v3 = vld [vmem:[#allocation5 + $0xc4c] sm:$0xf] }
 0x122   :  { %3785 = vmatpush.bf16.msra.mxu1 %v5626_v20  ;;  %v5782_v20 = vor.u32 %v6598_v6, %v5779_v7  ;;  %v5938_v6 = vor.u32 %v6637_v53, %v5935_v54  ;;  %v6703_v41 = vld [vmem:[#allocation5 + $0xebc] sm:$0xf]  ;;  %v5995_v54 = vld [vmem:[#allocation5 + $0xd2c] sm:$0xf0] }
 0x123   :  { %3798 = vmatpush.bf16.msra.mxu2 %v5722_v21  ;;  %v5575_v21 = vld [vmem:[#allocation5 + $0x9e4] sm:$0xf0] }
 0x124   :  { %3811 = vmatpush.bf16.msra.mxu3 %v5818_v30  ;;  %v5767_v30 = vld [vmem:[#allocation5 + $0xb64] sm:$0xf0]  ;;  %v5578_v37 = vor.u32 %v6547_v19, %v5575_v21  ;;  %v6115_v19 = vld [vmem:[#allocation5 + $0xe1c] sm:$0xf0] }
 0x125   :  { %3773 = vmatpush.bf16.msra.mxu0 %v5518_v40  ;;  %v6544_v40 = vld [vmem:[#allocation5 + $0x9c4] sm:$0xf]  ;;  %v5770_v43 = vor.u32 %v6595_v26, %v5767_v30  ;;  %v3547_v52 = vpop.f32.mrf.mxu2  ;;  %v6211_v21 = vld [vmem:[#allocation5 + $0xedc] sm:$0xf0]  ;;  %v6118_v24 = vor.u32 %v6682_v18, %v6115_v19  ;;  %v6631_v26 = vld [vmem:[#allocation5 + $0xc7c] sm:$0xf] }
 0x126   :  { %3786 = vmatpush.bf16.msra.mxu1 %v5614_v42  ;;  %v5563_v42 = vld [vmem:[#allocation5 + $0x9cc] sm:$0xf0]  ;;  %v5911_v30 = vld [vmem:[#allocation5 + $0xc84] sm:$0xf0] }
 0x127   :  { %3799 = vmatpush.bf16.msra.mxu2 %v5710_v45  ;;  %v6568_v45 = vld [vmem:[#allocation5 + $0xa84] sm:$0xf]  ;;  %v3560_v56 = vpop.f32.mrf.mxu3  ;;  %v5566_v61 = vor.u32 %v6544_v40, %v5563_v42  ;;  %v6103_v40 = vld [vmem:[#allocation5 + $0xe04] sm:$0xf0] }
 0x128   :  { %3812 = vmatpush.bf16.msra.mxu3 %v5806_v51  ;;  %v5755_v51 = vld [vmem:[#allocation5 + $0xb4c] sm:$0xf0]  ;;  %v5662_v62 = vor.u32 %v6568_v45, %v5659_v44  ;;  %v6199_v42 = vld [vmem:[#allocation5 + $0xec4] sm:$0xf0]  ;;  %v5914_v45 = vor.u32 %v6631_v26, %v5911_v30  ;;  %v6628_v44 = vld [vmem:[#allocation5 + $0xc64] sm:$0xf] }
 0x129   :  { %3774 = vmatpush.bf16.msra.mxu0 %v5506_v57  ;;  %v5470_v57 = vor.u32 %v6520_v35, %v5467_v22  ;;  %v5758_v4 = vor.u32 %v6592_v50, %v5755_v51  ;;  %v3546_v35 = vadd.f32 %v7016_v1, %v3533_v23  ;;  %v5899_v50 = vld [vmem:[#allocation5 + $0xc6c] sm:$0xf0]  ;;  %v6652_v51 = vld [vmem:[#allocation5 + $0xd24] sm:$0xf]  ;;  %v6202_v53 = vor.u32 %v6703_v41, %v6199_v42  ;;  %v6646_v23 = vld [vmem:[#allocation5 + $0xcf4] sm:$0xf] }
 0x12a   :  { %3787 = vmatpush.bf16.msra.mxu1 %v5602_v58  ;;  %v6031_v58 = vld [vmem:[#allocation5 + $0xd74] sm:$0xf0]  ;;  %v6091_v56 = vld [vmem:[#allocation5 + $0xdec] sm:$0xf0]  ;;  %v6670_v26 = vld [vmem:[#allocation5 + $0xdb4] sm:$0xf] }
 0x12b   :  { %3800 = vmatpush.bf16.msra.mxu2 %v5698_v59  ;;  %v6685_v59 = vld [vmem:[#allocation5 + $0xe2c] sm:$0xf]  ;;  %v6034_v7 = vor.u32 %v6661_v55, %v6031_v58  ;;  %v3559_v52 = vadd.f32 %v7018_v5, %v3546_v35  ;;  %v6676_v55 = vld [vmem:[#allocation5 + $0xde4] sm:$0xf]  ;;  %v6067_v30 = vld [vmem:[#allocation5 + $0xdbc] sm:$0xf0] }
 0x12c   :  { %3813 = vmatpush.bf16.msra.mxu3 %v5794_v63  ;;  %v6709_v63 = vld [vmem:[#allocation5 + $0xeec] sm:$0xf]  ;;  %v6130_v9 = vor.u32 %v6685_v59, %v6127_v60  ;;  %v6700_v58 = vld [vmem:[#allocation5 + $0xea4] sm:$0xf]  ;;  %v6187_v59 = vld [vmem:[#allocation5 + $0xeac] sm:$0xf0] }
 0x12d   :  { %3775 = vmatpush.bf16.msra.mxu0 %v5494_v10  ;;  %v6634_v10 = vld [vmem:[#allocation5 + $0xc94] sm:$0xf]  ;;  %v6190_v5 = vor.u32 %v6700_v58, %v6187_v59  ;;  %v6616_v58 = vld [vmem:[#allocation5 + $0xc04] sm:$0xf]  ;;  %v5851_v59 = vld [vmem:[#allocation5 + $0xc0c] sm:$0xf0] }
 0x12e   :  { %3788 = vmatpush.bf16.msra.mxu1 %v5590_v14  ;;  %v6658_v14 = vld [vmem:[#allocation5 + $0xd54] sm:$0xf]  ;;  %v5926_v0 = vor.u32 %v6634_v10, %v5923_v13  ;;  %v6673_v10 = vld [vmem:[#allocation5 + $0xdcc] sm:$0xf]  ;;  %v6079_v13 = vld [vmem:[#allocation5 + $0xdd4] sm:$0xf0] }
 0x12f   :  { %3801 = vmatpush.bf16.msra.mxu2 %v5686_v16  ;;  %v6226_v16 = vor.u32 %v6709_v63, %v6223_v2  ;;  %v6022_v36 = vor.u32 %v6658_v14, %v6019_v17  ;;  %v5998_v63 = vor.u32 %v6652_v51, %v5995_v54  ;;  %v6094_v2 = vor.u32 %v6676_v55, %v6091_v56  ;;  %v6697_v14 = vld [vmem:[#allocation5 + $0xe8c] sm:$0xf]  ;;  %v6055_v54 = vld [vmem:[#allocation5 + $0xda4] sm:$0xf0]  ;;  %v6691_v55 = vld [vmem:[#allocation5 + $0xe5c] sm:$0xf] }
 0x130   :  { %3814 = vmatpush.bf16.msra.mxu3 %v5782_v20  ;;  %v6706_v20 = vld [vmem:[#allocation5 + $0xed4] sm:$0xf]  ;;  %v6082_v19 = vor.u32 %v6673_v10, %v6079_v13  ;;  %v6151_v56 = vld [vmem:[#allocation5 + $0xe64] sm:$0xf0]  ;;  %v6255_v10 = vld [vmem:[#allocation5 + $0xb8] sm:$0xf0] }
 0x131   :  { %3776 = vmatpush.bf16.msra.mxu0 %v5482_v33  ;;  %v6655_v33 = vld [vmem:[#allocation5 + $0xd3c] sm:$0xf]  ;;  %v6214_v22 = vor.u32 %v6706_v20, %v6211_v21  ;;  %v6622_v20 = vld [vmem:[#allocation5 + $0xc34] sm:$0xf]  ;;  %v5875_v21 = vld [vmem:[#allocation5 + $0xc3c] sm:$0xf0] }
 0x132   :  { %3789 = vmatpush.bf16.msra.mxu1 %v5578_v37  ;;  %v6007_v37 = vld [vmem:[#allocation5 + $0xd44] sm:$0xf0]  ;;  %v4501_v13 = vld [vmem:[#allocation5 + $0x170] sm:$0xf] }
 0x133   :  { %3802 = vmatpush.bf16.msra.mxu2 %v5674_v39  ;;  %v6679_v39 = vld [vmem:[#allocation5 + $0xdfc] sm:$0xf]  ;;  %v6010_v1 = vor.u32 %v6655_v33, %v6007_v37  ;;  %v6163_v37 = vld [vmem:[#allocation5 + $0xe7c] sm:$0xf0] }
 0x134   :  { %3815 = vmatpush.bf16.msra.mxu3 %v5770_v43  ;;  %v6106_v43 = vor.u32 %v6679_v39, %v6103_v40  ;;  %v5878_v40 = vor.u32 %v6622_v20, %v5875_v21 }
 0x135   :  { %3777 = vmatpush.bf16.msra.mxu0 %v5470_v57  ;;  %v3571_v57 = vpop.f32.mrf.mxu0 }
 0x136   :  { %3790 = vmatpush.bf16.msra.mxu1 %v5566_v61  ;;  %v3572_v60 = vadd.f32 %v3571_v57, %v3559_v52  ;;  %v5902_v61 = vor.u32 %v6628_v44, %v5899_v50  ;;  %v5863_v44 = vld [vmem:[#allocation5 + $0xc24] sm:$0xf0]  ;;  %v6643_v50 = vld [vmem:[#allocation5 + $0xcdc] sm:$0xf] }
 0x137   :  { %3803 = vmatpush.bf16.msra.mxu2 %v5662_v62  ;;  %v3584_v62 = vpop.f32.mrf.mxu1  ;;  %v5959_v52 = vld [vmem:[#allocation5 + $0xce4] sm:$0xf0] }
 0x138   :  { %3816 = vmatpush.bf16.msra.mxu3 %v5758_v4  ;;  %3778 = vmatmul.bf16.vlgmr.msra.gmra.mxu0 %v6983_v46  ;;  %v5887_v4 = vld [vmem:[#allocation5 + $0xc54] sm:$0xf0] }
 0x139   :  { %3822 = vmatpush.bf16.msrb.mxu0 %v5938_v6  ;;  %3791 = vmatmul.bf16.vlgmr.msra.gmra.mxu1 %v6987_v48  ;;  %v6649_v6 = vld [vmem:[#allocation5 + $0xd0c] sm:$0xf]  ;;  %v5890_v17 = vor.u32 %v6625_v3, %v5887_v4  ;;  %v6154_v3 = vor.u32 %v6691_v55, %v6151_v56  ;;  %v6043_v4 = vld [vmem:[#allocation5 + $0xd8c] sm:$0xf0] }
 0x13a   :  { %3835 = vmatpush.bf16.msrb.mxu1 %v6034_v7  ;;  %3804 = vmatmul.bf16.vlgmr.msra.gmra.mxu2 %v6985_v47  ;;  %v3585_v7 = vadd.f32 %v3584_v62, %v3572_v60  ;;  %v5962_v60 = vor.u32 %v6643_v50, %v5959_v52  ;;  %v6640_v62 = vld [vmem:[#allocation5 + $0xcc4] sm:$0xf]  ;;  %v6249_v52 = vld [vmem:[#allocation5 + $0x88] sm:$0xf0] }
 0x13b   :  { %3848 = vmatpush.bf16.msrb.mxu2 %v6130_v9  ;;  %3817 = vmatmul.bf16.vlgmr.msra.gmra.mxu3 %v6989_v49  ;;  %v5983_v9 = vld [vmem:[#allocation5 + $0xd14] sm:$0xf0]  ;;  %v6273_v56 = vld [vmem:[#allocation5 + $0x148] sm:$0xf0] }
 0x13c   :  { %3861 = vmatpush.bf16.msrb.mxu3 %v6226_v16  ;;  %v6175_v16 = vld [vmem:[#allocation5 + $0xe94] sm:$0xf0]  ;;  %v5986_v18 = vor.u32 %v6649_v6, %v5983_v9  ;;  %v6688_v6 = vld [vmem:[#allocation5 + $0xe44] sm:$0xf]  ;;  %v4405_v9 = vld [vmem:[#allocation5 + $0xb0] sm:$0xf] }
 0x13d   :  { %3823 = vmatpush.bf16.msrb.mxu0 %v5926_v0  ;;  %v6178_v0 = vor.u32 %v6697_v14, %v6175_v16  ;;  %v3573_v39 = vpop.f32.mrf.mxu0  ;;  %v5854_v16 = vor.u32 %v6616_v58, %v5851_v59  ;;  %v6297_v58 = vld [vmem:[#allocation5 + $0x208] sm:$0xf0]  ;;  %v6723_v59 = vld [vmem:[#allocation1 + $0x12] sm:$0xff] }
 0x13e   :  { %3836 = vmatpush.bf16.msrb.mxu1 %v6022_v36  ;;  %v3597_v36 = vpop.f32.mrf.mxu2  ;;  %v3610_v35 = vpop.f32.mrf.mxu3  ;;  %v6276_v39 = vld [vmem:[#allocation5 + $0x160] sm:$0xf0] }
 0x13f   :  { %3849 = vmatpush.bf16.msrb.mxu2 %v6118_v24  ;;  %v5971_v24 = vld [vmem:[#allocation5 + $0xcfc] sm:$0xf0]  ;;  %v3598_v33 = vadd.f32 %v3597_v36, %v3585_v7  ;;  %v3586_v41 = vpop.f32.mrf.mxu1 }
 0x140   :  { %3862 = vmatpush.bf16.msrb.mxu3 %v6214_v22  ;;  %v6694_v22 = vld [vmem:[#allocation5 + $0xe74] sm:$0xf]  ;;  %v6300_v41 = vld [vmem:[#allocation5 + $0x220] sm:$0xf0] }
 0x141   :  { %3824 = vmatpush.bf16.msrb.mxu0 %v5914_v45  ;;  %v7029_v42 = vadd.f32 %v3610_v35, %v3598_v33  ;;  %v5974_v45 = vor.u32 %v6646_v23, %v5971_v24  ;;  %v6166_v51 = vor.u32 %v6694_v22, %v6163_v37  ;;  %v4693_v23 = vld [vmem:[#allocation5 + $0x2f0] sm:$0xf]  ;;  %v4406_v24 = vor.u32 %v6255_v10, %v4405_v9  ;;  %v4393_v33 = vld [vmem:[#allocation5 + $0x98] sm:$0xf]  ;;  %v6252_v35 = vld [vmem:[#allocation5 + $0xa0] sm:$0xf0] }
 0x142   :  { %3837 = vmatpush.bf16.msrb.mxu1 %v6010_v1  ;;  %v6070_v1 = vor.u32 %v6670_v26, %v6067_v30  ;;  %v4489_v22 = vld [vmem:[#allocation5 + $0x158] sm:$0xf]  ;;  %v6726_v9 = vld [vmem:[#allocation7] sm:$0x7] }
 0x143   :  { %3850 = vmatpush.bf16.msrb.mxu2 %v6106_v43  ;;  %v6619_v43 = vld [vmem:[#allocation5 + $0xc1c] sm:$0xf]  ;;  %v743_v10 = vperm.slane %v6726_v9, 1 }
 0x144   :  { %3863 = vmatpush.bf16.msrb.mxu3 %v6202_v53  ;;  %v6667_v53 = vld [vmem:[#allocation5 + $0xd9c] sm:$0xf]  ;;  %v5866_v57 = vor.u32 %v6619_v43, %v5863_v44  ;;  %v4394_v43 = vor.u32 %v6252_v35, %v4393_v33  ;;  %v4490_v44 = vor.u32 %v6276_v39, %v4489_v22 }
 0x145   :  { %3825 = vmatpush.bf16.msrb.mxu0 %v5902_v61  ;;  %v6058_v61 = vor.u32 %v6667_v53, %v6055_v54  ;;  %v4477_v53 = vld [vmem:[#allocation5 + $0x140] sm:$0xf]  ;;  %v6722_v54 = vld [vmem:[#allocation1] sm:$0xff]  ;;  %v6267_v22 = vld [vmem:[#allocation5 + $0x118] sm:$0xf0] }
 0x146   :  { %3838 = vmatpush.bf16.msrb.mxu1 %v5998_v63  ;;  %v5947_v63 = vld [vmem:[#allocation5 + $0xccc] sm:$0xf0]  ;;  %v3599_v7 = vpop.f32.mrf.mxu2  ;;  %v3612_v14 = vpop.f32.mrf.mxu3  ;;  %v6291_v39 = vld [vmem:[#allocation5 + $0x1d8] sm:$0xf0] }
 0x147   :  { %3851 = vmatpush.bf16.msrb.mxu2 %v6094_v2  ;;  %v6664_v2 = vld [vmem:[#allocation5 + $0xd84] sm:$0xf]  ;;  %v5950_v20 = vor.u32 %v6640_v62, %v5947_v63  ;;  %v6321_v62 = vld [vmem:[#allocation5 + $0x2c8] sm:$0xf0]  ;;  %v4465_v7 = vld [vmem:[#allocation5 + $0x128] sm:$0xf] }
 0x148   :  { %3864 = vmatpush.bf16.msrb.mxu3 %v6190_v5  ;;  %v6139_v5 = vld [vmem:[#allocation5 + $0xe4c] sm:$0xf0]  ;;  %v6046_v21 = vor.u32 %v6664_v2, %v6043_v4  ;;  %v6725_v63 = vld [vmem:[#allocation1 + $0x1b] sm:$0xff]  ;;  %v4478_v4 = vor.u32 %v6273_v56, %v4477_v53  ;;  %v6270_v14 = vld [vmem:[#allocation5 + $0x130] sm:$0xf0] }
 0x149   :  { %3826 = vmatpush.bf16.msrb.mxu0 %v5890_v17  ;;  %v6279_v17 = vld [vmem:[#allocation5 + $0x178] sm:$0xf0]  ;;  %v6142_v36 = vor.u32 %v6688_v6, %v6139_v5  ;;  %v6246_v5 = vld [vmem:[#allocation5 + $0x70] sm:$0xf0]  ;;  %v4537_v56 = vld [vmem:[#allocation5 + $0x1b8] sm:$0xf] }
 0x14a   :  { %3839 = vmatpush.bf16.msrb.mxu1 %v5986_v18  ;;  %v4597_v18 = vld [vmem:[#allocation5 + $0x230] sm:$0xf]  ;;  %v4502_v26 = vor.u32 %v6279_v17, %v4501_v13  ;;  %v6294_v17 = vld [vmem:[#allocation5 + $0x1f0] sm:$0xf0] }
 0x14b   :  { %3852 = vmatpush.bf16.msrb.mxu2 %v6082_v19  ;;  %v6303_v19 = vld [vmem:[#allocation5 + $0x238] sm:$0xf0] }
 0x14c   :  { %3865 = vmatpush.bf16.msrb.mxu3 %v6178_v0  ;;  %v6327_v0 = vld [vmem:[#allocation5 + $0x2f8] sm:$0xf0]  ;;  %v4598_v30 = vor.u32 %v6303_v19, %v4597_v18  ;;  %v4657_v18 = vld [vmem:[#allocation5 + $0x2a8] sm:$0xf]  ;;  %v6318_v19 = vld [vmem:[#allocation5 + $0x2b0] sm:$0xf0] }
 0x14d   :  { %3827 = vmatpush.bf16.msrb.mxu0 %v5878_v40  ;;  %v4694_v37 = vor.u32 %v6327_v0, %v4693_v23  ;;  %v4585_v40 = vld [vmem:[#allocation5 + $0x218] sm:$0xf]  ;;  %v4466_v23 = vor.u32 %v6270_v14, %v4465_v7  ;;  %v4658_v35 = vor.u32 %v6318_v19, %v4657_v18  ;;  %v4429_v7 = vld [vmem:[#allocation5 + $0xe0] sm:$0xf]  ;;  %v6309_v18 = vld [vmem:[#allocation5 + $0x268] sm:$0xf0] }
 0x14e   :  { %3840 = vmatpush.bf16.msrb.mxu1 %v5974_v45  ;;  %v4681_v45 = vld [vmem:[#allocation5 + $0x2d8] sm:$0xf]  ;;  %v4586_v50 = vor.u32 %v6300_v41, %v4585_v40  ;;  %v4645_v40 = vld [vmem:[#allocation5 + $0x290] sm:$0xf]  ;;  %v6315_v41 = vld [vmem:[#allocation5 + $0x298] sm:$0xf0] }
 0x14f   :  { %3853 = vmatpush.bf16.msrb.mxu2 %v6070_v1  ;;  %v6324_v1 = vld [vmem:[#allocation5 + $0x2e0] sm:$0xf0]  ;;  %v4525_v14 = vld [vmem:[#allocation5 + $0x1a0] sm:$0xf] }
 0x150   :  { %3866 = vmatpush.bf16.msrb.mxu3 %v6166_v51  ;;  %v4381_v51 = vld [vmem:[#allocation5 + $0x80] sm:$0xf]  ;;  %v4682_v55 = vor.u32 %v6324_v1, %v4681_v45 }
 0x151   :  { %3828 = vmatpush.bf16.msrb.mxu0 %v5866_v57  ;;  %v4573_v57 = vld [vmem:[#allocation5 + $0x200] sm:$0xf]  ;;  %v4382_v2 = vor.u32 %v6249_v52, %v4381_v51  ;;  %v6240_v51 = vld [vmem:[#allocation5 + $0x40] sm:$0xf0]  ;;  %v4441_v52 = vld [vmem:[#allocation5 + $0xf8] sm:$0xf] }
 0x152   :  { %3841 = vmatpush.bf16.msrb.mxu1 %v5962_v60  ;;  %v6724_v60 = vld [vmem:[#allocation1 + $0x9] sm:$0xff]  ;;  %v4574_v6 = vor.u32 %v6297_v58, %v4573_v57  ;;  %v6288_v57 = vld [vmem:[#allocation5 + $0x1c0] sm:$0xf0] }
 0x153   :  { %3854 = vmatpush.bf16.msrb.mxu2 %v6058_v61  ;;  %v4669_v61 = vld [vmem:[#allocation5 + $0x2c0] sm:$0xf] }
 0x154   :  { %3867 = vmatpush.bf16.msrb.mxu3 %v6154_v3  ;;  %v4369_v3 = vld [vmem:[#allocation5 + $0x68] sm:$0xf]  ;;  %v4670_v13 = vor.u32 %v6321_v62, %v4669_v61  ;;  %v6312_v61 = vld [vmem:[#allocation5 + $0x280] sm:$0xf0] }
 0x155   :  { %3829 = vmatpush.bf16.msrb.mxu0 %v5854_v16  ;;  %v4561_v16 = vld [vmem:[#allocation5 + $0x1e8] sm:$0xf] }
 0x156   :  { %3842 = vmatpush.bf16.msrb.mxu1 %v5950_v20  ;;  %v4370_v20 = vor.u32 %v6246_v5, %v4369_v3  ;;  %v4562_v0 = vor.u32 %v6294_v17, %v4561_v16  ;;  %v3636_v33 = vpop.f32.mrf.mxu1  ;;  %v6237_v5 = vld [vmem:[#allocation5 + $0x28] sm:$0xf0]  ;;  %v4621_v17 = vld [vmem:[#allocation5 + $0x260] sm:$0xf] }
 0x157   :  { %3855 = vmatpush.bf16.msrb.mxu2 %v6046_v21  ;;  %v3623_v21 = vpop.f32.mrf.mxu0  ;;  %v6285_v16 = vld [vmem:[#allocation5 + $0x1a8] sm:$0xf0] }
 0x158   :  { %3868 = vmatpush.bf16.msrb.mxu3 %v6142_v36  ;;  %3830 = vmatmul.bf16.vlgmr.msrb.gmra.mxu0 %v6722_v54  ;;  %v4357_v36 = vld [vmem:[#allocation5 + $0x50] sm:$0xf]  ;;  %v4646_v54 = vor.u32 %v6315_v41, %v4645_v40  ;;  %v6351_v41 = vld [vmem:[#allocation5 + $0x3b8] sm:$0xf0] }
 0x159   :  { %3874 = vmatpush.bf16.msra.mxu0 %v4406_v24  ;;  %3843 = vmatmul.bf16.vlgmr.msrb.gmra.mxu1 %v6724_v60  ;;  %v6243_v24 = vld [vmem:[#allocation5 + $0x58] sm:$0xf0]  ;;  %v4633_v60 = vld [vmem:[#allocation5 + $0x278] sm:$0xf]  ;;  %v4789_v40 = vld [vmem:[#allocation5 + $0x3b0] sm:$0xf] }
 0x15a   :  { %3887 = vmatpush.bf16.msra.mxu1 %v4502_v26  ;;  %3856 = vmatmul.bf16.vlgmr.msrb.gmra.mxu2 %v6723_v59  ;;  %v4453_v26 = vld [vmem:[#allocation5 + $0x110] sm:$0xf]  ;;  %v4358_v1 = vor.u32 %v6243_v24, %v4357_v36  ;;  %v4417_v36 = vld [vmem:[#allocation5 + $0xc8] sm:$0xf]  ;;  %v6258_v24 = vld [vmem:[#allocation5 + $0xd0] sm:$0xf0] }
 0x15b   :  { %3900 = vmatpush.bf16.msra.mxu2 %v4598_v30  ;;  %3869 = vmatmul.bf16.vlgmr.msrb.gmra.mxu3 %v6725_v63  ;;  %v3624_v30 = vadd.f32 %v3623_v21, %v743_v10  ;;  %v4634_v10 = vor.u32 %v6312_v61, %v4633_v60  ;;  %v6234_v21 = vld [vmem:[#allocation5 + $0x10] sm:$0xf0]  ;;  %v6348_v60 = vld [vmem:[#allocation5 + $0x3a0] sm:$0xf0]  ;;  %v4873_v61 = vld [vmem:[#allocation5 + $0x458] sm:$0xf] }
 0x15c   :  { %3913 = vmatpush.bf16.msra.mxu3 %v4694_v37  ;;  %v4549_v37 = vld [vmem:[#allocation5 + $0x1d0] sm:$0xf] }
 0x15d   :  { %3875 = vmatpush.bf16.msra.mxu0 %v4394_v43  ;;  %v3637_v45 = vadd.f32 %v3636_v33, %v3624_v30  ;;  %v4454_v43 = vor.u32 %v6267_v22, %v4453_v26  ;;  %v3649_v53 = vpop.f32.mrf.mxu2  ;;  %v4513_v26 = vld [vmem:[#allocation5 + $0x188] sm:$0xf]  ;;  %v4622_v33 = vor.u32 %v6309_v18, %v4621_v17  ;;  %v6369_v18 = vld [vmem:[#allocation5 + $0x448] sm:$0xf0] }
 0x15e   :  { %3888 = vmatpush.bf16.msra.mxu1 %v4490_v44  ;;  %v4550_v44 = vor.u32 %v6291_v39, %v4549_v37  ;;  %v3662_v59 = vpop.f32.mrf.mxu3  ;;  %v3638_v9 = vpop.f32.mrf.mxu1  ;;  %v4609_v22 = vld [vmem:[#allocation5 + $0x248] sm:$0xf]  ;;  %v6306_v37 = vld [vmem:[#allocation5 + $0x250] sm:$0xf0] }
 0x15f   :  { %3901 = vmatpush.bf16.msra.mxu2 %v4586_v50  ;;  %v4345_v50 = vld [vmem:[#allocation5 + $0x38] sm:$0xf]  ;;  %v3650_v58 = vadd.f32 %v3649_v53, %v3637_v45  ;;  %v4885_v45 = vld [vmem:[#allocation5 + $0x470] sm:$0xf] }
 0x160   :  { %3914 = vmatpush.bf16.msra.mxu3 %v4682_v55  ;;  %v6264_v55 = vld [vmem:[#allocation5 + $0x100] sm:$0xf0]  ;;  %v4346_v62 = vor.u32 %v6240_v51, %v4345_v50  ;;  %v6399_v50 = vld [vmem:[#allocation5 + $0x538] sm:$0xf0]  ;;  %v4418_v51 = vor.u32 %v6258_v24, %v4417_v36  ;;  %v5077_v53 = vld [vmem:[#allocation5 + $0x5f0] sm:$0xf] }
 0x161   :  { %3876 = vmatpush.bf16.msra.mxu0 %v4382_v2  ;;  %v7031_v63 = vadd.f32 %v3662_v59, %v3650_v58  ;;  %v3625_v2 = vpop.f32.mrf.mxu0  ;;  %v4442_v3 = vor.u32 %v6264_v55, %v4441_v52  ;;  %v4610_v55 = vor.u32 %v6306_v37, %v4609_v22  ;;  %v4777_v59 = vld [vmem:[#allocation5 + $0x398] sm:$0xf]  ;;  %v4945_v22 = vld [vmem:[#allocation5 + $0x4e8] sm:$0xf]  ;;  %v6390_v37 = vld [vmem:[#allocation5 + $0x4f0] sm:$0xf0] }
 0x162   :  { %3889 = vmatpush.bf16.msra.mxu1 %v4478_v4  ;;  %v4538_v4 = vor.u32 %v6288_v57, %v4537_v56  ;;  %v4790_v56 = vor.u32 %v6351_v41, %v4789_v40  ;;  %v6372_v2 = vld [vmem:[#allocation5 + $0x460] sm:$0xf0]  ;;  %v4946_v41 = vor.u32 %v6390_v37, %v4945_v22  ;;  %v4705_v22 = vld [vmem:[#allocation5 + $0x308] sm:$0xf]  ;;  %v6330_v37 = vld [vmem:[#allocation5 + $0x310] sm:$0xf0] }
 0x163   :  { %3902 = vmatpush.bf16.msra.mxu2 %v4574_v6  ;;  %v4333_v6 = vld [vmem:[#allocation5 + $0x20] sm:$0xf]  ;;  %v4874_v9 = vor.u32 %v6372_v2, %v4873_v61  ;;  %v4729_v61 = vld [vmem:[#allocation5 + $0x338] sm:$0xf] }
 0x164   :  { %3915 = vmatpush.bf16.msra.mxu3 %v4670_v13  ;;  %v6261_v13 = vld [vmem:[#allocation5 + $0xe8] sm:$0xf0]  ;;  %v4334_v19 = vor.u32 %v6237_v5, %v4333_v6  ;;  %v5065_v6 = vld [vmem:[#allocation5 + $0x5d8] sm:$0xf]  ;;  %v6420_v5 = vld [vmem:[#allocation5 + $0x5e0] sm:$0xf0] }
 0x165   :  { %3877 = vmatpush.bf16.msra.mxu0 %v4370_v20  ;;  %v4321_v20 = vld [vmem:[#allocation5 + $0x8] sm:$0xf]  ;;  %v3651_v30 = vpop.f32.mrf.mxu2  ;;  %v5066_v17 = vor.u32 %v6420_v5, %v5065_v6  ;;  %v4825_v2 = vld [vmem:[#allocation5 + $0x3f8] sm:$0xf]  ;;  %v6384_v5 = vld [vmem:[#allocation5 + $0x4c0] sm:$0xf0] }
 0x166   :  { %3890 = vmatpush.bf16.msra.mxu1 %v4466_v23  ;;  %v4430_v23 = vor.u32 %v6261_v13, %v4429_v7  ;;  %v3664_v39 = vpop.f32.mrf.mxu3  ;;  %v4778_v7 = vor.u32 %v6348_v60, %v4777_v59  ;;  %v4765_v13 = vld [vmem:[#allocation5 + $0x380] sm:$0xf]  ;;  %v6342_v30 = vld [vmem:[#allocation5 + $0x370] sm:$0xf0]  ;;  %v4921_v6 = vld [vmem:[#allocation5 + $0x4b8] sm:$0xf] }
 0x167   :  { %3903 = vmatpush.bf16.msra.mxu2 %v4562_v0  ;;  %v4526_v0 = vor.u32 %v6285_v16, %v4525_v14  ;;  %v6345_v14 = vld [vmem:[#allocation5 + $0x388] sm:$0xf0]  ;;  %v4861_v16 = vld [vmem:[#allocation5 + $0x440] sm:$0xf]  ;;  %v5041_v39 = vld [vmem:[#allocation5 + $0x5a8] sm:$0xf] }
 0x168   :  { %3916 = vmatpush.bf16.msra.mxu3 %v4658_v35  ;;  %v6282_v35 = vld [vmem:[#allocation5 + $0x190] sm:$0xf0]  ;;  %v4862_v36 = vor.u32 %v6369_v18, %v4861_v16 }
 0x169   :  { %3878 = vmatpush.bf16.msra.mxu0 %v4358_v1  ;;  %v4322_v1 = vor.u32 %v6234_v21, %v4321_v20  ;;  %v4514_v52 = vor.u32 %v6282_v35, %v4513_v26  ;;  %v6393_v20 = vld [vmem:[#allocation5 + $0x508] sm:$0xf0]  ;;  %v5053_v21 = vld [vmem:[#allocation5 + $0x5c0] sm:$0xf]  ;;  %v4753_v26 = vld [vmem:[#allocation5 + $0x368] sm:$0xf] }
 0x16a   :  { %3891 = vmatpush.bf16.msra.mxu1 %v4454_v43  ;;  %v6375_v43 = vld [vmem:[#allocation5 + $0x478] sm:$0xf0] }
 0x16b   :  { %3904 = vmatpush.bf16.msra.mxu2 %v4550_v44  ;;  %v4981_v44 = vld [vmem:[#allocation5 + $0x530] sm:$0xf]  ;;  %v4886_v57 = vor.u32 %v6375_v43, %v4885_v45 }
 0x16c   :  { %3917 = vmatpush.bf16.msra.mxu3 %v4646_v54  ;;  %v6423_v54 = vld [vmem:[#allocation5 + $0x5f8] sm:$0xf0]  ;;  %v4982_v58 = vor.u32 %v6399_v50, %v4981_v44  ;;  %v4741_v45 = vld [vmem:[#allocation5 + $0x350] sm:$0xf] }
 0x16d   :  { %3879 = vmatpush.bf16.msra.mxu0 %v4346_v62  ;;  %v5078_v62 = vor.u32 %v6423_v54, %v5077_v53  ;;  %v4837_v43 = vld [vmem:[#allocation5 + $0x410] sm:$0xf]  ;;  %v6387_v54 = vld [vmem:[#allocation5 + $0x4d8] sm:$0xf0] }
 0x16e   :  { %3892 = vmatpush.bf16.msra.mxu1 %v4442_v3  ;;  %v4969_v3 = vld [vmem:[#allocation5 + $0x518] sm:$0xf]  ;;  %v4933_v53 = vld [vmem:[#allocation5 + $0x4d0] sm:$0xf] }
 0x16f   :  { %3905 = vmatpush.bf16.msra.mxu2 %v4538_v4  ;;  %v6396_v4 = vld [vmem:[#allocation5 + $0x520] sm:$0xf0]  ;;  %v4934_v60 = vor.u32 %v6387_v54, %v4933_v53  ;;  %v5269_v53 = vld [vmem:[#allocation5 + $0x770] sm:$0xf]  ;;  %v4706_v54 = vor.u32 %v6330_v37, %v4705_v22 }
 0x170   :  { %3918 = vmatpush.bf16.msra.mxu3 %v4634_v10  ;;  %v4970_v10 = vor.u32 %v6396_v4, %v4969_v3  ;;  %v6360_v4 = vld [vmem:[#allocation5 + $0x400] sm:$0xf0] }
 0x171   :  { %3880 = vmatpush.bf16.msra.mxu0 %v4334_v19  ;;  %v4957_v19 = vld [vmem:[#allocation5 + $0x500] sm:$0xf]  ;;  %v4826_v18 = vor.u32 %v6360_v4, %v4825_v2  ;;  %v5161_v4 = vld [vmem:[#allocation5 + $0x698] sm:$0xf] }
 0x172   :  { %3893 = vmatpush.bf16.msra.mxu1 %v4430_v23  ;;  %v6417_v23 = vld [vmem:[#allocation5 + $0x5c8] sm:$0xf0]  ;;  %v4958_v24 = vor.u32 %v6393_v20, %v4957_v19  ;;  %v4922_v19 = vor.u32 %v6384_v5, %v4921_v6  ;;  %v4717_v20 = vld [vmem:[#allocation5 + $0x320] sm:$0xf]  ;;  %v6444_v6 = vld [vmem:[#allocation5 + $0x6a0] sm:$0xf0] }
 0x173   :  { %3906 = vmatpush.bf16.msra.mxu2 %v4526_v0  ;;  %v4766_v0 = vor.u32 %v6345_v14, %v4765_v13  ;;  %v5054_v35 = vor.u32 %v6417_v23, %v5053_v21  ;;  %v6408_v13 = vld [vmem:[#allocation5 + $0x580] sm:$0xf0]  ;;  %v6333_v21 = vld [vmem:[#allocation5 + $0x328] sm:$0xf0]  ;;  %v4813_v23 = vld [vmem:[#allocation5 + $0x3e0] sm:$0xf] }
 0x174   :  { %3919 = vmatpush.bf16.msra.mxu3 %v4622_v33  ;;  %v4849_v33 = vld [vmem:[#allocation5 + $0x428] sm:$0xf]  ;;  %v5257_v5 = vld [vmem:[#allocation5 + $0x758] sm:$0xf] }
 0x175   :  { %3881 = vmatpush.bf16.msra.mxu0 %v4322_v1  ;;  %v3675_v40 = vpop.f32.mrf.mxu0  ;;  %v6339_v1 = vld [vmem:[#allocation5 + $0x358] sm:$0xf0] }
 0x176   :  { %3894 = vmatpush.bf16.msra.mxu1 %v4418_v51  ;;  %v3676_v44 = vadd.f32 %v3675_v40, %v7031_v63  ;;  %v3688_v50 = vpop.f32.mrf.mxu1  ;;  %v6354_v40 = vld [vmem:[#allocation5 + $0x3d0] sm:$0xf0] }
 0x177   :  { %3907 = vmatpush.bf16.msra.mxu2 %v4514_v52  ;;  %v6363_v52 = vld [vmem:[#allocation5 + $0x418] sm:$0xf0] }
 0x178   :  { %3920 = vmatpush.bf16.msra.mxu3 %v4610_v55  ;;  %3882 = vmatmul.bf16.vlgmr.msra.gmra.mxu0 %v6949_v28  ;;  %v6414_v28 = vld [vmem:[#allocation5 + $0x5b0] sm:$0xf0]  ;;  %v5029_v55 = vld [vmem:[#allocation5 + $0x590] sm:$0xf]  ;;  %v4838_v59 = vor.u32 %v6363_v52, %v4837_v43  ;;  %v4993_v43 = vld [vmem:[#allocation5 + $0x548] sm:$0xf] }
 0x179   :  { %3926 = vmatpush.bf16.msrb.mxu0 %v4790_v56  ;;  %3895 = vmatmul.bf16.vlgmr.msra.gmra.mxu1 %v6953_v34  ;;  %v5042_v51 = vor.u32 %v6414_v28, %v5041_v39  ;;  %v6411_v56 = vld [vmem:[#allocation5 + $0x598] sm:$0xf0] }
 0x17a   :  { %3939 = vmatpush.bf16.msrb.mxu1 %v4886_v57  ;;  %3908 = vmatmul.bf16.vlgmr.msra.gmra.mxu2 %v6947_v27  ;;  %v6366_v27 = vld [vmem:[#allocation5 + $0x430] sm:$0xf0]  ;;  %v3689_v57 = vadd.f32 %v3688_v50, %v3676_v44  ;;  %v5030_v63 = vor.u32 %v6411_v56, %v5029_v55  ;;  %v6447_v52 = vld [vmem:[#allocation5 + $0x6b8] sm:$0xf0]  ;;  %v5365_v56 = vld [vmem:[#allocation5 + $0x830] sm:$0xf] }
 0x17b   :  { %3952 = vmatpush.bf16.msrb.mxu2 %v4982_v58  ;;  %3921 = vmatmul.bf16.vlgmr.msra.gmra.mxu3 %v6951_v29  ;;  %v4754_v29 = vor.u32 %v6342_v30, %v4753_v26  ;;  %v4850_v34 = vor.u32 %v6366_v27, %v4849_v33  ;;  %v4742_v58 = vor.u32 %v6339_v1, %v4741_v45  ;;  %v4909_v26 = vld [vmem:[#allocation5 + $0x4a0] sm:$0xf]  ;;  %v6381_v30 = vld [vmem:[#allocation5 + $0x4a8] sm:$0xf0]  ;;  %v6378_v1 = vld [vmem:[#allocation5 + $0x490] sm:$0xf0] }
 0x17c   :  { %3965 = vmatpush.bf16.msrb.mxu3 %v5078_v62  ;;  %v6336_v62 = vld [vmem:[#allocation5 + $0x340] sm:$0xf0]  ;;  %v5005_v33 = vld [vmem:[#allocation5 + $0x560] sm:$0xf]  ;;  %v4718_v27 = vor.u32 %v6333_v21, %v4717_v20  ;;  %v4910_v28 = vor.u32 %v6381_v30, %v4909_v26  ;;  %v6402_v44 = vld [vmem:[#allocation5 + $0x550] sm:$0xf0] }
 0x17d   :  { %3927 = vmatpush.bf16.msrb.mxu0 %v4778_v7  ;;  %v3701_v3 = vpop.f32.mrf.mxu2  ;;  %v4730_v14 = vor.u32 %v6336_v62, %v4729_v61  ;;  %v6471_v55 = vld [vmem:[#allocation5 + $0x778] sm:$0xf0]  ;;  %v4994_v62 = vor.u32 %v6402_v44, %v4993_v43  ;;  %v5149_v21 = vld [vmem:[#allocation5 + $0x680] sm:$0xf]  ;;  %v6489_v30 = vld [vmem:[#allocation5 + $0x808] sm:$0xf0] }
 0x17e   :  { %3940 = vmatpush.bf16.msrb.mxu1 %v4874_v9  ;;  %v3702_v7 = vadd.f32 %v3701_v3, %v3689_v57  ;;  %v3714_v9 = vpop.f32.mrf.mxu3  ;;  %v6495_v57 = vld [vmem:[#allocation5 + $0x838] sm:$0xf0]  ;;  %v5270_v3 = vor.u32 %v6471_v55, %v5269_v53  ;;  %v5341_v26 = vld [vmem:[#allocation5 + $0x800] sm:$0xf]  ;;  %v5221_v53 = vld [vmem:[#allocation5 + $0x710] sm:$0xf] }
 0x17f   :  { %3953 = vmatpush.bf16.msrb.mxu2 %v4970_v10  ;;  %v5017_v10 = vld [vmem:[#allocation5 + $0x578] sm:$0xf]  ;;  %v6519_v61 = vld [vmem:[#allocation5 + $0x8f8] sm:$0xf0]  ;;  %v5342_v37 = vor.u32 %v6489_v30, %v5341_v26  ;;  %v5197_v26 = vld [vmem:[#allocation5 + $0x6e0] sm:$0xf] }
 0x180   :  { %3966 = vmatpush.bf16.msrb.mxu3 %v5066_v17  ;;  %v7038_v16 = vadd.f32 %v3714_v9, %v3702_v7  ;;  %v3677_v17 = vpop.f32.mrf.mxu0  ;;  %v6468_v9 = vld [vmem:[#allocation5 + $0x760] sm:$0xf0] }
 0x181   :  { %3928 = vmatpush.bf16.msrb.mxu0 %v4766_v0  ;;  %v3690_v0 = vpop.f32.mrf.mxu1  ;;  %v6516_v17 = vld [vmem:[#allocation5 + $0x8e0] sm:$0xf0] }
 0x182   :  { %3941 = vmatpush.bf16.msrb.mxu1 %v4862_v36  ;;  %v5018_v36 = vor.u32 %v6408_v13, %v5017_v10  ;;  %v5353_v10 = vld [vmem:[#allocation5 + $0x818] sm:$0xf]  ;;  %v6492_v13 = vld [vmem:[#allocation5 + $0x820] sm:$0xf0]  ;;  %v5245_v0 = vld [vmem:[#allocation5 + $0x740] sm:$0xf] }
 0x183   :  { %3954 = vmatpush.bf16.msrb.mxu2 %v4958_v24  ;;  %v6357_v24 = vld [vmem:[#allocation5 + $0x3e8] sm:$0xf0]  ;;  %v5354_v20 = vor.u32 %v6492_v13, %v5353_v10 }
 0x184   :  { %3967 = vmatpush.bf16.msrb.mxu3 %v5054_v35  ;;  %v6405_v35 = vld [vmem:[#allocation5 + $0x568] sm:$0xf0]  ;;  %v4814_v39 = vor.u32 %v6357_v24, %v4813_v23 }
 0x185   :  { %3929 = vmatpush.bf16.msrb.mxu0 %v4754_v29  ;;  %v4801_v29 = vld [vmem:[#allocation5 + $0x3c8] sm:$0xf]  ;;  %v5006_v45 = vor.u32 %v6405_v35, %v5005_v33  ;;  %v6441_v23 = vld [vmem:[#allocation5 + $0x688] sm:$0xf0]  ;;  %v5437_v33 = vld [vmem:[#allocation5 + $0x8c0] sm:$0xf] }
 0x186   :  { %3942 = vmatpush.bf16.msrb.mxu1 %v4850_v34  ;;  %v4897_v34 = vld [vmem:[#allocation5 + $0x488] sm:$0xf]  ;;  %v3716_v50 = vpop.f32.mrf.mxu3  ;;  %v6465_v24 = vld [vmem:[#allocation5 + $0x748] sm:$0xf0] }
 0x187   :  { %3955 = vmatpush.bf16.msrb.mxu2 %v4946_v41  ;;  %v3703_v41 = vpop.f32.mrf.mxu2  ;;  %v6513_v35 = vld [vmem:[#allocation5 + $0x8c8] sm:$0xf0]  ;;  %v5246_v22 = vor.u32 %v6465_v24, %v5245_v0 }
 0x188   :  { %3968 = vmatpush.bf16.msrb.mxu3 %v5042_v51  ;;  %v5173_v51 = vld [vmem:[#allocation5 + $0x6b0] sm:$0xf]  ;;  %v6486_v41 = vld [vmem:[#allocation5 + $0x7f0] sm:$0xf0]  ;;  %v6429_v24 = vld [vmem:[#allocation5 + $0x628] sm:$0xf0] }
 0x189   :  { %3930 = vmatpush.bf16.msrb.mxu0 %v4742_v58  ;;  %v4802_v58 = vor.u32 %v6354_v40, %v4801_v29  ;;  %v5174_v2 = vor.u32 %v6447_v52, %v5173_v51  ;;  %v5438_v29 = vor.u32 %v6513_v35, %v5437_v33  ;;  %v6462_v40 = vld [vmem:[#allocation5 + $0x730] sm:$0xf0]  ;;  %v5125_v51 = vld [vmem:[#allocation5 + $0x650] sm:$0xf]  ;;  %v6435_v52 = vld [vmem:[#allocation5 + $0x658] sm:$0xf0] }
 0x18a   :  { %3943 = vmatpush.bf16.msrb.mxu1 %v4838_v59  ;;  %v4898_v59 = vor.u32 %v6378_v1, %v4897_v34  ;;  %v5329_v34 = vld [vmem:[#allocation5 + $0x7e8] sm:$0xf]  ;;  %v6510_v1 = vld [vmem:[#allocation5 + $0x8b0] sm:$0xf0]  ;;  %v6453_v33 = vld [vmem:[#allocation5 + $0x6e8] sm:$0xf0] }
 0x18b   :  { %3956 = vmatpush.bf16.msrb.mxu2 %v4934_v60  ;;  %v5461_v60 = vld [vmem:[#allocation5 + $0x8f0] sm:$0xf]  ;;  %v5330_v50 = vor.u32 %v6486_v41, %v5329_v34  ;;  %v5293_v35 = vld [vmem:[#allocation5 + $0x7a0] sm:$0xf]  ;;  %v5185_v34 = vld [vmem:[#allocation5 + $0x6c8] sm:$0xf] }
 0x18c   :  { %3969 = vmatpush.bf16.msrb.mxu3 %v5030_v63  ;;  %v5366_v63 = vor.u32 %v6495_v57, %v5365_v56  ;;  %v5462_v7 = vor.u32 %v6519_v61, %v5461_v60  ;;  %v6459_v56 = vld [vmem:[#allocation5 + $0x718] sm:$0xf0]  ;;  %v5317_v57 = vld [vmem:[#allocation5 + $0x7d0] sm:$0xf]  ;;  %v5126_v61 = vor.u32 %v6435_v52, %v5125_v51  ;;  %v6450_v41 = vld [vmem:[#allocation5 + $0x6d0] sm:$0xf0] }
 0x18d   :  { %3931 = vmatpush.bf16.msrb.mxu0 %v4730_v14  ;;  %v5449_v14 = vld [vmem:[#allocation5 + $0x8d8] sm:$0xf]  ;;  %v6507_v60 = vld [vmem:[#allocation5 + $0x898] sm:$0xf0]  ;;  %v5653_v51 = vld [vmem:[#allocation5 + $0xa70] sm:$0xf] }
 0x18e   :  { %3944 = vmatpush.bf16.msrb.mxu1 %v4826_v18  ;;  %v5162_v18 = vor.u32 %v6444_v6, %v5161_v4 }
 0x18f   :  { %3957 = vmatpush.bf16.msrb.mxu2 %v4922_v19  ;;  %v5258_v19 = vor.u32 %v6468_v9, %v5257_v5  ;;  %v6456_v5 = vld [vmem:[#allocation5 + $0x700] sm:$0xf0] }
 0x190   :  { %3970 = vmatpush.bf16.msrb.mxu3 %v5018_v36  ;;  %v5450_v36 = vor.u32 %v6516_v17, %v5449_v14  ;;  %v6480_v9 = vld [vmem:[#allocation5 + $0x7c0] sm:$0xf0]  ;;  %v5401_v14 = vld [vmem:[#allocation5 + $0x878] sm:$0xf] }
 0x191   :  { %3932 = vmatpush.bf16.msrb.mxu0 %v4718_v27  ;;  %v5150_v27 = vor.u32 %v6441_v23, %v5149_v21  ;;  %v6504_v17 = vld [vmem:[#allocation5 + $0x880] sm:$0xf0] }
 0x192   :  { %3945 = vmatpush.bf16.msrb.mxu1 %v4814_v39  ;;  %v5137_v39 = vld [vmem:[#allocation5 + $0x668] sm:$0xf]  ;;  %v5402_v30 = vor.u32 %v6504_v17, %v5401_v14 }
 0x193   :  { %3958 = vmatpush.bf16.msrb.mxu2 %v4910_v28  ;;  %v6438_v28 = vld [vmem:[#allocation5 + $0x670] sm:$0xf0] }
 0x194   :  { %3971 = vmatpush.bf16.msrb.mxu3 %v5006_v45  ;;  %v5138_v43 = vor.u32 %v6438_v28, %v5137_v39  ;;  %v5089_v28 = vld [vmem:[#allocation5 + $0x608] sm:$0xf] }
 0x195   :  { %3933 = vmatpush.bf16.msrb.mxu0 %v4706_v54  ;;  %v3727_v45 = vpop.f32.mrf.mxu0 }
 0x196   :  { %3946 = vmatpush.bf16.msrb.mxu1 %v4802_v58  ;;  %v6483_v58 = vld [vmem:[#allocation5 + $0x7d8] sm:$0xf0] }
 0x197   :  { %3959 = vmatpush.bf16.msrb.mxu2 %v4898_v59  ;;  %v5413_v59 = vld [vmem:[#allocation5 + $0x890] sm:$0xf] }
 0x198   :  { %3972 = vmatpush.bf16.msrb.mxu3 %v4994_v62  ;;  %3934 = vmatmul.bf16.vlgmr.msrb.gmra.mxu0 %v6961_v31  ;;  %v5425_v31 = vld [vmem:[#allocation5 + $0x8a8] sm:$0xf]  ;;  %v5318_v62 = vor.u32 %v6483_v58, %v5317_v57  ;;  %v5414_v4 = vor.u32 %v6507_v60, %v5413_v59  ;;  %v5186_v57 = vor.u32 %v6450_v41, %v5185_v34  ;;  %v5845_v59 = vld [vmem:[#allocation5 + $0xbf0] sm:$0xf]  ;;  %v6615_v60 = vld [vmem:[#allocation5 + $0xbf8] sm:$0xf0] }
 0x199   :  { %3978 = vmatpush.bf16.msra.mxu0 %v5174_v2  ;;  %3947 = vmatmul.bf16.vlgmr.msrb.gmra.mxu1 %v6965_v38  ;;  %v3740_v38 = vpop.f32.mrf.mxu1  ;;  %v5426_v54 = vor.u32 %v6510_v1, %v5425_v31  ;;  %v5113_v2 = vld [vmem:[#allocation5 + $0x638] sm:$0xf]  ;;  %v6474_v1 = vld [vmem:[#allocation5 + $0x790] sm:$0xf0] }
 0x19a   :  { %3991 = vmatpush.bf16.msra.mxu1 %v5270_v3  ;;  %3960 = vmatmul.bf16.vlgmr.msrb.gmra.mxu2 %v6959_v25  ;;  %v5233_v25 = vld [vmem:[#allocation5 + $0x728] sm:$0xf]  ;;  %v6432_v3 = vld [vmem:[#allocation5 + $0x640] sm:$0xf0]  ;;  %v6606_v34 = vld [vmem:[#allocation5 + $0xbb0] sm:$0xf0] }
 0x19b   :  { %4004 = vmatpush.bf16.msra.mxu2 %v5366_v63  ;;  %3973 = vmatmul.bf16.vlgmr.msrb.gmra.mxu3 %v6963_v32  ;;  %v3728_v32 = vadd.f32 %v3727_v45, %v7038_v16  ;;  %v5234_v44 = vor.u32 %v6462_v40, %v5233_v25  ;;  %v5222_v16 = vor.u32 %v6459_v56, %v5221_v53  ;;  %v5209_v63 = vld [vmem:[#allocation5 + $0x6f8] sm:$0xf]  ;;  %v6426_v25 = vld [vmem:[#allocation5 + $0x610] sm:$0xf0]  ;;  %v5281_v45 = vld [vmem:[#allocation5 + $0x788] sm:$0xf] }
 0x19c   :  { %4017 = vmatpush.bf16.msra.mxu3 %v5462_v7  ;;  %v5305_v7 = vld [vmem:[#allocation5 + $0x7b8] sm:$0xf]  ;;  %v5210_v23 = vor.u32 %v6456_v5, %v5209_v63  ;;  %v5090_v53 = vor.u32 %v6426_v25, %v5089_v28  ;;  %v6591_v56 = vld [vmem:[#allocation5 + $0xb38] sm:$0xf0]  ;;  %v5282_v58 = vor.u32 %v6474_v1, %v5281_v45  ;;  %v6540_v63 = vld [vmem:[#allocation5 + $0x9a0] sm:$0xf0] }
 0x19d   :  { %3979 = vmatpush.bf16.msra.mxu0 %v5162_v18  ;;  %v3741_v55 = vadd.f32 %v3740_v38, %v3728_v32  ;;  %v3753_v6 = vpop.f32.mrf.mxu2  ;;  %v3729_v18 = vpop.f32.mrf.mxu0  ;;  %v5306_v0 = vor.u32 %v6480_v9, %v5305_v7  ;;  %v5377_v32 = vld [vmem:[#allocation5 + $0x848] sm:$0xf]  ;;  %v6564_v5 = vld [vmem:[#allocation5 + $0xa60] sm:$0xf0]  ;;  %v5737_v7 = vld [vmem:[#allocation5 + $0xb18] sm:$0xf] }
 0x19e   :  { %3992 = vmatpush.bf16.msra.mxu1 %v5258_v19  ;;  %v3766_v13 = vpop.f32.mrf.mxu3  ;;  %v5114_v19 = vor.u32 %v6432_v3, %v5113_v2  ;;  %v5545_v3 = vld [vmem:[#allocation5 + $0x998] sm:$0xf]  ;;  %v6588_v9 = vld [vmem:[#allocation5 + $0xb20] sm:$0xf0]  ;;  %v6558_v25 = vld [vmem:[#allocation5 + $0xa30] sm:$0xf0] }
 0x19f   :  { %4005 = vmatpush.bf16.msra.mxu2 %v5354_v20  ;;  %v3754_v10 = vadd.f32 %v3753_v6, %v3741_v55  ;;  %v5749_v55 = vld [vmem:[#allocation5 + $0xb30] sm:$0xf]  ;;  %v5846_v6 = vor.u32 %v6615_v60, %v5845_v59  ;;  %v5546_v14 = vor.u32 %v6540_v63, %v5545_v3  ;;  %v5738_v18 = vor.u32 %v6588_v9, %v5737_v7  ;;  %v6528_v59 = vld [vmem:[#allocation5 + $0x940] sm:$0xf0]  ;;  %v5593_v60 = vld [vmem:[#allocation5 + $0x9f8] sm:$0xf] }
 0x1a0   :  { %4018 = vmatpush.bf16.msra.mxu3 %v5450_v36  ;;  %v5101_v36 = vld [vmem:[#allocation5 + $0x620] sm:$0xf]  ;;  %v5750_v2 = vor.u32 %v6591_v56, %v5749_v55  ;;  %v6603_v55 = vld [vmem:[#allocation5 + $0xb98] sm:$0xf0]  ;;  %v6576_v3 = vld [vmem:[#allocation5 + $0xac0] sm:$0xf0] }
 0x1a1   :  { %3980 = vmatpush.bf16.msra.mxu0 %v5150_v27  ;;  %v3742_v20 = vpop.f32.mrf.mxu1  ;;  %v7045_v21 = vadd.f32 %v3766_v13, %v3754_v10  ;;  %v6477_v27 = vld [vmem:[#allocation5 + $0x7a8] sm:$0xf0]  ;;  %v5102_v39 = vor.u32 %v6429_v24, %v5101_v36  ;;  %v5833_v10 = vld [vmem:[#allocation5 + $0xbd8] sm:$0xf]  ;;  %v6612_v13 = vld [vmem:[#allocation5 + $0xbe0] sm:$0xf0] }
 0x1a2   :  { %3993 = vmatpush.bf16.msra.mxu1 %v5246_v22  ;;  %v5389_v22 = vld [vmem:[#allocation5 + $0x860] sm:$0xf]  ;;  %v5294_v40 = vor.u32 %v6477_v27, %v5293_v35  ;;  %v6537_v20 = vld [vmem:[#allocation5 + $0x988] sm:$0xf0] }
 0x1a3   :  { %4006 = vmatpush.bf16.msra.mxu2 %v5342_v37  ;;  %v6501_v37 = vld [vmem:[#allocation5 + $0x868] sm:$0xf0]  ;;  %v5725_v24 = vld [vmem:[#allocation5 + $0xb00] sm:$0xf] }
 0x1a4   :  { %4019 = vmatpush.bf16.msra.mxu3 %v5438_v29  ;;  %v5198_v29 = vor.u32 %v6453_v33, %v5197_v26  ;;  %v5390_v31 = vor.u32 %v6501_v37, %v5389_v22  ;;  %v6561_v36 = vld [vmem:[#allocation5 + $0xa48] sm:$0xf0]  ;;  %v5521_v37 = vld [vmem:[#allocation5 + $0x968] sm:$0xf] }
 0x1a5   :  { %3981 = vmatpush.bf16.msra.mxu0 %v5138_v43  ;;  %v6498_v43 = vld [vmem:[#allocation5 + $0x850] sm:$0xf0]  ;;  %v3755_v38 = vpop.f32.mrf.mxu2  ;;  %v6585_v26 = vld [vmem:[#allocation5 + $0xb08] sm:$0xf0] }
 0x1a6   :  { %3994 = vmatpush.bf16.msra.mxu1 %v5234_v44  ;;  %v5557_v44 = vld [vmem:[#allocation5 + $0x9b0] sm:$0xf]  ;;  %v3768_v52 = vpop.f32.mrf.mxu3  ;;  %v6609_v33 = vld [vmem:[#allocation5 + $0xbc8] sm:$0xf0]  ;;  %v5726_v22 = vor.u32 %v6585_v26, %v5725_v24  ;;  %v5773_v26 = vld [vmem:[#allocation5 + $0xb60] sm:$0xf] }
 0x1a7   :  { %4007 = vmatpush.bf16.msra.mxu2 %v5330_v50  ;;  %v6543_v50 = vld [vmem:[#allocation5 + $0x9b8] sm:$0xf0]  ;;  %v5605_v38 = vld [vmem:[#allocation5 + $0xa10] sm:$0xf]  ;;  %v6573_v24 = vld [vmem:[#allocation5 + $0xaa8] sm:$0xf0] }
 0x1a8   :  { %4020 = vmatpush.bf16.msra.mxu3 %v5426_v54  ;;  %v6567_v54 = vld [vmem:[#allocation5 + $0xa78] sm:$0xf0]  ;;  %v5701_v52 = vld [vmem:[#allocation5 + $0xad0] sm:$0xf] }
 0x1a9   :  { %3982 = vmatpush.bf16.msra.mxu0 %v5126_v61  ;;  %v5378_v61 = vor.u32 %v6498_v43, %v5377_v32  ;;  %v5509_v32 = vld [vmem:[#allocation5 + $0x950] sm:$0xf]  ;;  %v6531_v43 = vld [vmem:[#allocation5 + $0x958] sm:$0xf0] }
 0x1aa   :  { %3995 = vmatpush.bf16.msra.mxu1 %v5222_v16  ;;  %v5558_v16 = vor.u32 %v6543_v50, %v5557_v44  ;;  %v5510_v56 = vor.u32 %v6531_v43, %v5509_v32  ;;  %v6133_v32 = vld [vmem:[#allocation5 + $0xe30] sm:$0xf]  ;;  %v6687_v43 = vld [vmem:[#allocation5 + $0xe38] sm:$0xf0] }
 0x1ab   :  { %4008 = vmatpush.bf16.msra.mxu2 %v5318_v62  ;;  %v5654_v62 = vor.u32 %v6567_v54, %v5653_v51  ;;  %v6555_v51 = vld [vmem:[#allocation5 + $0xa18] sm:$0xf0]  ;;  %v5797_v54 = vld [vmem:[#allocation5 + $0xb90] sm:$0xf] }
 0x1ac   :  { %4021 = vmatpush.bf16.msra.mxu3 %v5414_v4  ;;  %v5641_v4 = vld [vmem:[#allocation5 + $0xa58] sm:$0xf] }
 0x1ad   :  { %3983 = vmatpush.bf16.msra.mxu0 %v5114_v19  ;;  %v5642_v17 = vor.u32 %v6564_v5, %v5641_v4  ;;  %v5533_v19 = vld [vmem:[#allocation5 + $0x980] sm:$0xf]  ;;  %v6600_v5 = vld [vmem:[#allocation5 + $0xb80] sm:$0xf0] }
 0x1ae   :  { %3996 = vmatpush.bf16.msra.mxu1 %v5210_v23  ;;  %v5629_v23 = vld [vmem:[#allocation5 + $0xa40] sm:$0xf]  ;;  %v5534_v35 = vor.u32 %v6537_v20, %v5533_v19  ;;  %v6525_v19 = vld [vmem:[#allocation5 + $0x928] sm:$0xf0] }
 0x1af   :  { %4009 = vmatpush.bf16.msra.mxu2 %v5306_v0  ;;  %v5834_v0 = vor.u32 %v6612_v13, %v5833_v10  ;;  %v5630_v27 = vor.u32 %v6561_v36, %v5629_v23  ;;  %v5581_v20 = vld [vmem:[#allocation5 + $0x9e0] sm:$0xf] }
 0x1b0   :  { %4022 = vmatpush.bf16.msra.mxu3 %v5402_v30  ;;  %v5821_v30 = vld [vmem:[#allocation5 + $0xbc0] sm:$0xf] }
 0x1b1   :  { %3984 = vmatpush.bf16.msra.mxu0 %v5102_v39  ;;  %v5617_v39 = vld [vmem:[#allocation5 + $0xa28] sm:$0xf]  ;;  %v5822_v28 = vor.u32 %v6609_v33, %v5821_v30  ;;  %v5677_v36 = vld [vmem:[#allocation5 + $0xaa0] sm:$0xf]  ;;  %v6597_v30 = vld [vmem:[#allocation5 + $0xb68] sm:$0xf0] }
 0x1b2   :  { %3997 = vmatpush.bf16.msra.mxu1 %v5198_v29  ;;  %v5713_v29 = vld [vmem:[#allocation5 + $0xae8] sm:$0xf] }
 0x1b3   :  { %4010 = vmatpush.bf16.msra.mxu2 %v5294_v40 }
 0x1b4   :  { %4023 = vmatpush.bf16.msra.mxu3 %v5390_v31  ;;  %v5618_v31 = vor.u32 %v6558_v25, %v5617_v39  ;;  %v6546_v39 = vld [vmem:[#allocation5 + $0x9d0] sm:$0xf0]  ;;  %v5774_v25 = vor.u32 %v6597_v30, %v5773_v26  ;;  %v6097_v30 = vld [vmem:[#allocation5 + $0xde8] sm:$0xf] }
 0x1b5   :  { %3985 = vmatpush.bf16.msra.mxu0 %v5090_v53  ;;  %v3779_v40 = vpop.f32.mrf.mxu0  ;;  %v6579_v53 = vld [vmem:[#allocation5 + $0xad8] sm:$0xf0]  ;;  %v6654_v26 = vld [vmem:[#allocation5 + $0xd30] sm:$0xf0] }
 0x1b6   :  { %3998 = vmatpush.bf16.msra.mxu1 %v5186_v57  ;;  %v3792_v45 = vpop.f32.mrf.mxu1  ;;  %v5702_v57 = vor.u32 %v6579_v53, %v5701_v52 }
 0x1b7   :  { %4011 = vmatpush.bf16.msra.mxu2 %v5282_v58  ;;  %v5497_v58 = vld [vmem:[#allocation5 + $0x938] sm:$0xf] }
 0x1b8   :  { %4024 = vmatpush.bf16.msra.mxu3 %v5378_v61  ;;  %3986 = vmatmul.bf16.vlgmr.msra.gmra.mxu0 %v6971_v8  ;;  %v6534_v8 = vld [vmem:[#allocation5 + $0x970] sm:$0xf0]  ;;  %v5798_v61 = vor.u32 %v6603_v55, %v5797_v54  ;;  %v5498_v9 = vor.u32 %v6528_v59, %v5497_v58  ;;  %v6134_v55 = vor.u32 %v6687_v43, %v6133_v32  ;;  %v6660_v59 = vld [vmem:[#allocation5 + $0xd60] sm:$0xf0]  ;;  %v5977_v32 = vld [vmem:[#allocation5 + $0xcf8] sm:$0xf] }
 0x1b9   :  { %4030 = vmatpush.bf16.msrb.mxu0 %v5558_v16  ;;  %3999 = vmatmul.bf16.vlgmr.msra.gmra.mxu1 %v6975_v12  ;;  %v5809_v12 = vld [vmem:[#allocation5 + $0xba8] sm:$0xf]  ;;  %v5522_v41 = vor.u32 %v6534_v8, %v5521_v37  ;;  %v5678_v37 = vor.u32 %v6573_v24, %v5677_v36 }
 0x1ba   :  { %4043 = vmatpush.bf16.msrb.mxu1 %v5654_v62  ;;  %4012 = vmatmul.bf16.vlgmr.msra.gmra.mxu2 %v6973_v11  ;;  %v6582_v11 = vld [vmem:[#allocation5 + $0xaf0] sm:$0xf0]  ;;  %v5810_v44 = vor.u32 %v6606_v34, %v5809_v12  ;;  %v6552_v62 = vld [vmem:[#allocation5 + $0xa00] sm:$0xf0]  ;;  %v5569_v8 = vld [vmem:[#allocation5 + $0x9c8] sm:$0xf] }
 0x1bb   :  { %4056 = vmatpush.bf16.msrb.mxu2 %v5750_v2  ;;  %4025 = vmatmul.bf16.vlgmr.msra.gmra.mxu3 %v6977_v15  ;;  %v3780_v15 = vadd.f32 %v3779_v40, %v7045_v21  ;;  %v5714_v1 = vor.u32 %v6582_v11, %v5713_v29  ;;  %v5606_v21 = vor.u32 %v6555_v51, %v5605_v38  ;;  %v5689_v2 = vld [vmem:[#allocation5 + $0xab8] sm:$0xf]  ;;  %v6570_v29 = vld [vmem:[#allocation5 + $0xa90] sm:$0xf0]  ;;  %v5761_v11 = vld [vmem:[#allocation5 + $0xb48] sm:$0xf] }
 0x1bc   :  { %4069 = vmatpush.bf16.msrb.mxu3 %v5846_v6  ;;  %v5785_v6 = vld [vmem:[#allocation5 + $0xb78] sm:$0xf]  ;;  %v6594_v40 = vld [vmem:[#allocation5 + $0xb50] sm:$0xf0]  ;;  %v5941_v34 = vld [vmem:[#allocation5 + $0xcb0] sm:$0xf]  ;;  %v5570_v38 = vor.u32 %v6546_v39, %v5569_v8 }
 0x1bd   :  { %4031 = vmatpush.bf16.msrb.mxu0 %v5546_v14  ;;  %v3793_v50 = vadd.f32 %v3792_v45, %v3780_v15  ;;  %v3805_v16 = vpop.f32.mrf.mxu2  ;;  %v3781_v7 = vpop.f32.mrf.mxu0  ;;  %v5594_v14 = vor.u32 %v6552_v62, %v5593_v60  ;;  %v5786_v23 = vor.u32 %v6600_v5, %v5785_v6  ;;  %v6639_v15 = vld [vmem:[#allocation5 + $0xcb8] sm:$0xf0]  ;;  %v5762_v52 = vor.u32 %v6594_v40, %v5761_v11  ;;  %v6121_v60 = vld [vmem:[#allocation5 + $0xe18] sm:$0xf]  ;;  %v6708_v62 = vld [vmem:[#allocation5 + $0xee0] sm:$0xf0] }
 0x1be   :  { %4044 = vmatpush.bf16.msrb.mxu1 %v5642_v17  ;;  %v3818_v4 = vpop.f32.mrf.mxu3  ;;  %v3794_v10 = vpop.f32.mrf.mxu1  ;;  %v5690_v17 = vor.u32 %v6576_v3, %v5689_v2  ;;  %v6711_v51 = vld [vmem:[#allocation5 + $0xef8] sm:$0xf0]  ;;  %v5942_v53 = vor.u32 %v6639_v15, %v5941_v34  ;;  %v6633_v6 = vld [vmem:[#allocation5 + $0xc88] sm:$0xf0]  ;;  %v6013_v5 = vld [vmem:[#allocation5 + $0xd40] sm:$0xf] }
 0x1bf   :  { %4057 = vmatpush.bf16.msrb.mxu2 %v5738_v18  ;;  %v3806_v63 = vadd.f32 %v3805_v16, %v3793_v50  ;;  %v5485_v18 = vld [vmem:[#allocation5 + $0x920] sm:$0xf]  ;;  %v6229_v50 = vld [vmem:[#allocation5 + $0xef0] sm:$0xf]  ;;  %v6217_v16 = vld [vmem:[#allocation5 + $0xed8] sm:$0xf] }
 0x1c0   :  { %4070 = vmatpush.bf16.msrb.mxu3 %v5834_v0  ;;  %v6549_v0 = vld [vmem:[#allocation5 + $0x9e8] sm:$0xf0]  ;;  %v5486_v33 = vor.u32 %v6525_v19, %v5485_v18  ;;  %v6230_v58 = vor.u32 %v6711_v51, %v6229_v50  ;;  %v6218_v7 = vor.u32 %v6708_v62, %v6217_v16  ;;  %v6109_v10 = vld [vmem:[#allocation5 + $0xe00] sm:$0xf]  ;;  %v6001_v36 = vld [vmem:[#allocation5 + $0xd28] sm:$0xf] }
 0x1c1   :  { %4032 = vmatpush.bf16.msrb.mxu0 %v5534_v35  ;;  %v7052_v13 = vadd.f32 %v3818_v4, %v3806_v63  ;;  %v5473_v35 = vld [vmem:[#allocation5 + $0x908] sm:$0xf]  ;;  %v5917_v4 = vld [vmem:[#allocation5 + $0xc80] sm:$0xf]  ;;  %v6705_v18 = vld [vmem:[#allocation5 + $0xec8] sm:$0xf0] }
 0x1c2   :  { %4045 = vmatpush.bf16.msrb.mxu1 %v5630_v27  ;;  %v6522_v27 = vld [vmem:[#allocation5 + $0x910] sm:$0xf0]  ;;  %v5918_v19 = vor.u32 %v6633_v6, %v5917_v4  ;;  %v5893_v8 = vld [vmem:[#allocation5 + $0xc50] sm:$0xf]  ;;  %v6627_v39 = vld [vmem:[#allocation5 + $0xc58] sm:$0xf0] }
 0x1c3   :  { %4058 = vmatpush.bf16.msrb.mxu2 %v5726_v22  ;;  %v5582_v22 = vor.u32 %v6549_v0, %v5581_v20  ;;  %v5905_v0 = vld [vmem:[#allocation5 + $0xc68] sm:$0xf]  ;;  %v6085_v11 = vld [vmem:[#allocation5 + $0xdd0] sm:$0xf]  ;;  %v6675_v40 = vld [vmem:[#allocation5 + $0xdd8] sm:$0xf0]  ;;  %v5894_v15 = vor.u32 %v6627_v39, %v5893_v8 }
 0x1c4   :  { %4071 = vmatpush.bf16.msrb.mxu3 %v5822_v28  ;;  %v5665_v28 = vld [vmem:[#allocation5 + $0xa88] sm:$0xf]  ;;  %v6699_v34 = vld [vmem:[#allocation5 + $0xe98] sm:$0xf0]  ;;  %v6073_v50 = vld [vmem:[#allocation5 + $0xdb8] sm:$0xf] }
 0x1c5   :  { %4033 = vmatpush.bf16.msrb.mxu0 %v5522_v41  ;;  %v3807_v12 = vpop.f32.mrf.mxu2  ;;  %v6037_v41 = vld [vmem:[#allocation5 + $0xd70] sm:$0xf]  ;;  %v6672_v51 = vld [vmem:[#allocation5 + $0xdc0] sm:$0xf0]  ;;  %v6645_v62 = vld [vmem:[#allocation5 + $0xce8] sm:$0xf0] }
 0x1c6   :  { %4046 = vmatpush.bf16.msrb.mxu1 %v5618_v31  ;;  %v3820_v45 = vpop.f32.mrf.mxu3  ;;  %v5474_v31 = vor.u32 %v6522_v27, %v5473_v35  ;;  %v6702_v35 = vld [vmem:[#allocation5 + $0xeb0] sm:$0xf0]  ;;  %v6181_v12 = vld [vmem:[#allocation5 + $0xe90] sm:$0xf]  ;;  %v6693_v4 = vld [vmem:[#allocation5 + $0xe68] sm:$0xf0] }
 0x1c7   :  { %4059 = vmatpush.bf16.msrb.mxu2 %v5714_v1  ;;  %v6663_v1 = vld [vmem:[#allocation5 + $0xd78] sm:$0xf0]  ;;  %v6086_v45 = vor.u32 %v6675_v40, %v6085_v11  ;;  %v6182_v43 = vor.u32 %v6699_v34, %v6181_v12  ;;  %v6728_v8 = vld [vmem:[#allocation1 + $0x9] sm:$0xff]  ;;  %v4149_v11 = vld [vmem:[%s7258_s3 + $0x60] sm:$0xff] }
 0x1c8   :  { %4072 = vmatpush.bf16.msrb.mxu3 %v5810_v44  ;;  %v5666_v44 = vor.u32 %v6570_v29, %v5665_v28  ;;  %v6038_v54 = vor.u32 %v6663_v1, %v6037_v41  ;;  %v5989_v28 = vld [vmem:[#allocation5 + $0xd10] sm:$0xf]  ;;  %v6651_v29 = vld [vmem:[#allocation5 + $0xd18] sm:$0xf0]  ;;  %v6624_v1 = vld [vmem:[#allocation5 + $0xc40] sm:$0xf0] }
 0x1c9   :  { %4034 = vmatpush.bf16.msrb.mxu0 %v5510_v56  ;;  %v5929_v56 = vld [vmem:[#allocation5 + $0xc98] sm:$0xf]  ;;  %v5990_v41 = vor.u32 %v6651_v29, %v5989_v28  ;;  %v4150_v28 = vld [vmem:[%s7258_s3 + $0x68] sm:$0xff]  ;;  %v4165_v40 = vld [vmem:[%s7258_s3 + $0xe0] sm:$0xff] }
 0x1ca   :  { %4047 = vmatpush.bf16.msrb.mxu1 %v5606_v21  ;;  %v6636_v21 = vld [vmem:[#allocation5 + $0xca0] sm:$0xf0]  ;;  %v6729_v39 = vld [vmem:[#allocation1 + $0x12] sm:$0xff]  ;;  %v4166_v29 = vld [vmem:[%s7258_s3 + $0xe8] sm:$0xff] }
 0x1cb   :  { %4060 = vmatpush.bf16.msrb.mxu2 %v5702_v57  ;;  %v6025_v57 = vld [vmem:[#allocation5 + $0xd58] sm:$0xf]  ;;  %v5930_v2 = vor.u32 %v6636_v21, %v5929_v56  ;;  %v6731_v12 = vld [vmem:[#allocation7] sm:$0x7] }
 0x1cc   :  { %4073 = vmatpush.bf16.msrb.mxu3 %v5798_v61  ;;  %v6684_v61 = vld [vmem:[#allocation5 + $0xe20] sm:$0xf0]  ;;  %v6026_v3 = vor.u32 %v6660_v59, %v6025_v57  ;;  %v5869_v59 = vld [vmem:[#allocation5 + $0xc20] sm:$0xf]  ;;  %v744_v34 = vperm.slane %v6731_v12, 2  ;;  %v4182_v12 = vld [vmem:[%s7258_s3 + $0x168] sm:$0xff] }
 0x1cd   :  { %4035 = vmatpush.bf16.msrb.mxu0 %v5498_v9  ;;  %v6122_v63 = vor.u32 %v6684_v61, %v6121_v60  ;;  %v6657_v9 = vld [vmem:[#allocation5 + $0xd48] sm:$0xf0]  ;;  %v5965_v61 = vld [vmem:[#allocation5 + $0xce0] sm:$0xf] }
 0x1ce   :  { %4048 = vmatpush.bf16.msrb.mxu1 %v5594_v14  ;;  %v6681_v14 = vld [vmem:[#allocation5 + $0xe08] sm:$0xf0]  ;;  %v6014_v20 = vor.u32 %v6657_v9, %v6013_v5  ;;  %v5966_v5 = vor.u32 %v6645_v62, %v5965_v61  ;;  %v5857_v9 = vld [vmem:[#allocation5 + $0xc08] sm:$0xf]  ;;  %v4159_v62 = vld [vmem:[%s7258_s3 + $0xb0] sm:$0xff] }
 0x1cf   :  { %4061 = vmatpush.bf16.msrb.mxu2 %v5690_v17  ;;  %v6205_v17 = vld [vmem:[#allocation5 + $0xec0] sm:$0xf]  ;;  %v6621_v60 = vld [vmem:[#allocation5 + $0xc28] sm:$0xf0] }
 0x1d0   :  { %4074 = vmatpush.bf16.msrb.mxu3 %v5786_v23  ;;  %v6110_v23 = vor.u32 %v6681_v14, %v6109_v10  ;;  %v6206_v24 = vor.u32 %v6705_v18, %v6205_v17  ;;  %v5870_v6 = vor.u32 %v6621_v60, %v5869_v59  ;;  %v6618_v10 = vld [vmem:[#allocation5 + $0xc10] sm:$0xf0]  ;;  %v5953_v14 = vld [vmem:[#allocation5 + $0xcc8] sm:$0xf] }
 0x1d1   :  { %4036 = vmatpush.bf16.msrb.mxu0 %v5486_v33  ;;  %v6642_v18 = vld [vmem:[#allocation5 + $0xcd0] sm:$0xf0] }
 0x1d2   :  { %4049 = vmatpush.bf16.msrb.mxu1 %v5582_v22  ;;  %v6002_v22 = vor.u32 %v6654_v26, %v6001_v36  ;;  %v5954_v26 = vor.u32 %v6642_v18, %v5953_v14  ;;  %v4143_v59 = vld [vmem:[%s7258_s3 + $0x30] sm:$0xff]  ;;  %v4154_v18 = vld [vmem:[%s7258_s3 + $0x88] sm:$0xff] }
 0x1d3   :  { %4062 = vmatpush.bf16.msrb.mxu2 %v5678_v37  ;;  %v4155_v14 = vld [vmem:[%s7258_s3 + $0x90] sm:$0xff] }
 0x1d4   :  { %4075 = vmatpush.bf16.msrb.mxu3 %v5774_v25 }
 0x1d5   :  { %4037 = vmatpush.bf16.msrb.mxu0 %v5474_v31  ;;  %v7058_v33 = vpop.f32.mrf.mxu0  ;;  %v5881_v31 = vld [vmem:[#allocation5 + $0xc38] sm:$0xf] }
 0x1d6   :  { %4050 = vmatpush.bf16.msrb.mxu1 %v5570_v38  ;;  %v7060_v27 = vpop.f32.mrf.mxu1  ;;  %v5882_v56 = vor.u32 %v6624_v1, %v5881_v31  ;;  %v4163_v1 = vld [vmem:[%s7258_s3 + $0xd0] sm:$0xff] }
 0x1d7   :  { %4063 = vmatpush.bf16.msrb.mxu2 %v5666_v44  ;;  %v6648_v44 = vld [vmem:[#allocation5 + $0xd00] sm:$0xf0] }
 0x1d8   :  { %4076 = vmatpush.bf16.msrb.mxu3 %v5762_v52  ;;  %4038 = vmatmul.bf16.vlgmr.msrb.gmra.mxu0 %v6983_v46  ;;  %v6630_v46 = vld [vmem:[#allocation5 + $0xc70] sm:$0xf0]  ;;  %v5978_v57 = vor.u32 %v6648_v44, %v5977_v32  ;;  %v4146_v44 = vld [vmem:[%s7258_s3 + $0x48] sm:$0xff] }
 0x1d9   :  { %4082 = vmatpush.bf16.msra.mxu0 %v5942_v53  ;;  %4051 = vmatmul.bf16.vlgmr.msrb.gmra.mxu1 %v6987_v48  ;;  %v6193_v48 = vld [vmem:[#allocation5 + $0xea8] sm:$0xf]  ;;  %v6169_v53 = vld [vmem:[#allocation5 + $0xe78] sm:$0xf] }
 0x1da   :  { %4095 = vmatpush.bf16.msra.mxu1 %v6038_v54  ;;  %4064 = vmatmul.bf16.vlgmr.msrb.gmra.mxu2 %v6985_v47  ;;  %v6678_v47 = vld [vmem:[#allocation5 + $0xdf0] sm:$0xf0]  ;;  %v6194_v25 = vor.u32 %v6702_v35, %v6193_v48  ;;  %v6696_v54 = vld [vmem:[#allocation5 + $0xe80] sm:$0xf0]  ;;  %v4152_v48 = vld [vmem:[%s7258_s3 + $0x78] sm:$0xff] }
 0x1db   :  { %4108 = vmatpush.bf16.msra.mxu2 %v6134_v55  ;;  %4077 = vmatmul.bf16.vlgmr.msrb.gmra.mxu3 %v6989_v49  ;;  %v5906_v49 = vor.u32 %v6630_v46, %v5905_v0  ;;  %v6098_v37 = vor.u32 %v6678_v47, %v6097_v30  ;;  %v6170_v16 = vor.u32 %v6696_v54, %v6169_v53  ;;  %v6145_v0 = vld [vmem:[#allocation5 + $0xe48] sm:$0xf]  ;;  %v6690_v46 = vld [vmem:[#allocation5 + $0xe50] sm:$0xf0]  ;;  %v4168_v35 = vld [vmem:[%s7258_s3 + $0xf8] sm:$0xff] }
 0x1dc   :  { %4121 = vmatpush.bf16.msra.mxu3 %v6230_v58  ;;  %v6074_v58 = vor.u32 %v6672_v51, %v6073_v50  ;;  %v6146_v47 = vor.u32 %v6690_v46, %v6145_v0  ;;  %v4162_v50 = vld [vmem:[%s7258_s3 + $0xc8] sm:$0xff]  ;;  %v4145_v53 = vld [vmem:[%s7258_s3 + $0x40] sm:$0xff] }
 0x1dd   :  { %4083 = vmatpush.bf16.msra.mxu0 %v5930_v2  ;;  %v7062_v38 = vpop.f32.mrf.mxu2  ;;  %v3833_v55 = vpop.f32.mrf.mxu0  ;;  %v6061_v2 = vld [vmem:[#allocation5 + $0xda0] sm:$0xf]  ;;  %v4161_v54 = vld [vmem:[%s7258_s3 + $0xc0] sm:$0xff] }
 0x1de   :  { %4096 = vmatpush.bf16.msra.mxu1 %v6026_v3  ;;  %v7064_v52 = vpop.f32.mrf.mxu3  ;;  %v3846_v21 = vpop.f32.mrf.mxu1  ;;  %v6669_v3 = vld [vmem:[#allocation5 + $0xda8] sm:$0xf0] }
 0x1df   :  { %4109 = vmatpush.bf16.msra.mxu2 %v6122_v63  ;;  %v6157_v63 = vld [vmem:[#allocation5 + $0xe60] sm:$0xf] }
 0x1e0   :  { %4122 = vmatpush.bf16.msra.mxu3 %v6218_v7  ;;  %v6062_v7 = vor.u32 %v6669_v3, %v6061_v2  ;;  %v6158_v17 = vor.u32 %v6693_v4, %v6157_v63  ;;  %v4142_v3 = vld [vmem:[%s7258_s3 + $0x28] sm:$0xff]  ;;  %v4157_v4 = vld [vmem:[%s7258_s3 + $0xa0] sm:$0xff] }
 0x1e1   :  { %4084 = vmatpush.bf16.msra.mxu0 %v5918_v19  ;;  %v6049_v19 = vld [vmem:[#allocation5 + $0xd88] sm:$0xf]  ;;  %v4158_v63 = vld [vmem:[%s7258_s3 + $0xa8] sm:$0xff] }
 0x1e2   :  { %4097 = vmatpush.bf16.msra.mxu1 %v6014_v20  ;;  %v6666_v20 = vld [vmem:[#allocation5 + $0xd90] sm:$0xf0] }
 0x1e3   :  { %4110 = vmatpush.bf16.msra.mxu2 %v6110_v23  ;;  %v6050_v30 = vor.u32 %v6666_v20, %v6049_v19  ;;  %v4137_v19 = vld [vmem:[%s7258_s3] sm:$0xff] }
 0x1e4   :  { %4123 = vmatpush.bf16.msra.mxu3 %v6206_v24  ;;  %v5858_v24 = vor.u32 %v6618_v10, %v5857_v9  ;;  %v4156_v10 = vld [vmem:[%s7258_s3 + $0x98] sm:$0xff]  ;;  %v4153_v20 = vld [vmem:[%s7258_s3 + $0x80] sm:$0xff] }
 0x1e5   :  { %4085 = vmatpush.bf16.msra.mxu0 %v5906_v49  ;;  %v3859_v23 = vpop.f32.mrf.mxu2  ;;  %v4151_v49 = vld [vmem:[%s7258_s3 + $0x70] sm:$0xff] }
 0x1e6   :  { %4098 = vmatpush.bf16.msra.mxu1 %v6002_v22  ;;  %v3872_v36 = vpop.f32.mrf.mxu3  ;;  %v6727_v22 = vld [vmem:[#allocation1] sm:$0xff]  ;;  %v4134_v23 = vmax.f32 %v7029_v42, 0.0 }
 0x1e7   :  { %4111 = vmatpush.bf16.msra.mxu2 %v6098_v37  ;;  %v4167_v37 = vld [vmem:[%s7258_s3 + $0xf0] sm:$0xff] }
 0x1e8   :  { %4124 = vmatpush.bf16.msra.mxu3 %v6194_v25  ;;  %v6730_v25 = vld [vmem:[#allocation1 + $0x1b] sm:$0xff] }
 0x1e9   :  { %4086 = vmatpush.bf16.msra.mxu0 %v5894_v15  ;;  %v4148_v15 = vld [vmem:[%s7258_s3 + $0x58] sm:$0xff] }
 0x1ea   :  { %4099 = vmatpush.bf16.msra.mxu1 %v5990_v41  ;;  %v4164_v41 = vld [vmem:[%s7258_s3 + $0xd8] sm:$0xff] }
 0x1eb   :  { %4112 = vmatpush.bf16.msra.mxu2 %v6086_v45  ;;  %v4147_v45 = vld [vmem:[%s7258_s3 + $0x50] sm:$0xff] }
 0x1ec   :  { %4125 = vmatpush.bf16.msra.mxu3 %v6182_v43 }
 0x1ed   :  { %4087 = vmatpush.bf16.msra.mxu0 %v5882_v56  ;;  %v4144_v56 = vld [vmem:[%s7258_s3 + $0x38] sm:$0xff] }
 0x1ee   :  { %4100 = vmatpush.bf16.msra.mxu1 %v5978_v57 }
 0x1ef   :  { %4113 = vmatpush.bf16.msra.mxu2 %v6074_v58  ;;  %v4160_v58 = vld [vmem:[%s7258_s3 + $0xb8] sm:$0xff] }
 0x1f0   :  { %4126 = vmatpush.bf16.msra.mxu3 %v6170_v16  ;;  %v3832_v16 = vadd.f32 %v7058_v33, %v7052_v13  ;;  %v4141_v13 = vld [vmem:[%s7258_s3 + $0x20] sm:$0xff] }
 0x1f1   :  { %4088 = vmatpush.bf16.msra.mxu0 %v5870_v6 }
 0x1f2   :  { %4101 = vmatpush.bf16.msra.mxu1 %v5966_v5  ;;  %v3845_v33 = vadd.f32 %v7060_v27, %v3832_v16  ;;  %v4140_v5 = vld [vmem:[%s7258_s3 + $0x18] sm:$0xff]  ;;  %v4139_v27 = vld [vmem:[%s7258_s3 + $0x10] sm:$0xff]  ;;  %v4169_v16 = vld [vmem:[%s7258_s3 + $0x100] sm:$0xff] }
 0x1f3   :  { %4114 = vmatpush.bf16.msra.mxu2 %v6062_v7 }
 0x1f4   :  { %4127 = vmatpush.bf16.msra.mxu3 %v6158_v17  ;;  %v3858_v9 = vadd.f32 %v7062_v38, %v3845_v33  ;;  %v4138_v38 = vld [vmem:[%s7258_s3 + $0x8] sm:$0xff] }
 0x1f5   :  { %4089 = vmatpush.bf16.msra.mxu0 %v5858_v24  ;;  %v3883_v31 = vpop.f32.mrf.mxu0 }
 0x1f6   :  { %4102 = vmatpush.bf16.msra.mxu1 %v5954_v26  ;;  %v3884_v32 = vadd.f32 %v3883_v31, %v744_v34  ;;  %v3896_v43 = vpop.f32.mrf.mxu1  ;;  %v3871_v17 = vadd.f32 %v7064_v52, %v3858_v9  ;;  %v4181_v34 = vld [vmem:[%s7258_s3 + $0x160] sm:$0xff]  ;;  %v4179_v31 = vld [vmem:[%s7258_s3 + $0x150] sm:$0xff] }
 0x1f7   :  { %4115 = vmatpush.bf16.msra.mxu2 %v6050_v30 }
 0x1f8   :  { %4128 = vmatpush.bf16.msra.mxu3 %v6146_v47  ;;  %4090 = vmatmul.bf16.vlgmr.msra.gmra.mxu0 %v6727_v22  ;;  %v3897_v51 = vadd.f32 %v3896_v43, %v3884_v32  ;;  %v4135_v0 = vmax.f32 %v3871_v17, 0.0  ;;  %v4177_v32 = vld [vmem:[%s7258_s3 + $0x140] sm:$0xff]  ;;  %v4176_v43 = vld [vmem:[%s7258_s3 + $0x138] sm:$0xff] }
 0x1f9   :  { %4189 = vmatpush.msrb.mxu0 %v4152_v48  ;;  %4103 = vmatmul.bf16.vlgmr.msra.gmra.mxu1 %v6728_v8 }
 0x1fa   :  { %4209 = vmatpush.msrb.mxu1 %v4168_v35  ;;  %4116 = vmatmul.bf16.vlgmr.msra.gmra.mxu2 %v6729_v39 }
 0x1fb   :  { %4129 = vmatmul.bf16.vlgmr.msra.gmra.mxu3 %v6730_v25  ;;  %4190 = vmatpush.msrb.mxu0 %v4151_v49 }
 0x1fc   :  { %4210 = vmatpush.msrb.mxu1 %v4167_v37 }
 0x1fd   :  { %4191 = vmatpush.msrb.mxu0 %v4150_v28  ;;  %v3909_v55 = vpop.f32.mrf.mxu2  ;;  %v3885_v61 = vpop.f32.mrf.mxu0 }
 0x1fe   :  { %4211 = vmatpush.msrb.mxu1 %v4166_v29  ;;  %v3910_v21 = vadd.f32 %v3909_v55, %v3897_v51  ;;  %v3922_v57 = vpop.f32.mrf.mxu3  ;;  %v3898_v2 = vpop.f32.mrf.mxu1  ;;  %v4184_v29 = vld [vmem:[%s7258_s3 + $0x178] sm:$0xff]  ;;  %v4174_v51 = vld [vmem:[%s7258_s3 + $0x128] sm:$0xff] }
 0x1ff   :  { %4192 = vmatpush.msrb.mxu0 %v4149_v11  ;;  %v4183_v11 = vld [vmem:[%s7258_s3 + $0x170] sm:$0xff]  ;;  %4229 = vmatpush.msrb.mxu2 %v4184_v29  ;;  %v4172_v55 = vld [vmem:[%s7258_s3 + $0x118] sm:$0xff]  ;;  %v4170_v61 = vld [vmem:[%s7258_s3 + $0x108] sm:$0xff] }
 0x200   :  { %4212 = vmatpush.msrb.mxu1 %v4165_v40  ;;  %v3923_v60 = vadd.f32 %v3922_v57, %v3910_v21  ;;  %v4171_v57 = vld [vmem:[%s7258_s3 + $0x110] sm:$0xff] }
 0x201   :  { %4193 = vmatpush.msrb.mxu0 %v4148_v15  ;;  %4230 = vmatpush.msrb.mxu2 %v4183_v11  ;;  %v4180_v15 = vld [vmem:[%s7258_s3 + $0x158] sm:$0xff] }
 0x202   :  { %4213 = vmatpush.msrb.mxu1 %v4164_v41 }
 0x203   :  { %4194 = vmatpush.msrb.mxu0 %v4147_v45  ;;  %4231 = vmatpush.msrb.mxu2 %v4182_v12 }
 0x204   :  { %4214 = vmatpush.msrb.mxu1 %v4163_v1  ;;  %v4178_v1 = vld [vmem:[%s7258_s3 + $0x148] sm:$0xff] }
 0x205   :  { %4195 = vmatpush.msrb.mxu0 %v4146_v44  ;;  %v3911_v6 = vpop.f32.mrf.mxu2  ;;  %4232 = vmatpush.msrb.mxu2 %v4181_v34  ;;  %v4175_v44 = vld [vmem:[%s7258_s3 + $0x130] sm:$0xff]  ;;  %v6721_v34 = vld [vmem:[#allocation10] ss:$0 sm:$0xff] }
 0x206   :  { %4215 = vmatpush.msrb.mxu1 %v4162_v50  ;;  %v3924_v7 = vpop.f32.mrf.mxu3 }
 0x207   :  { %4196 = vmatpush.msrb.mxu0 %v4145_v53  ;;  %4233 = vmatpush.msrb.mxu2 %v4180_v15 }
 0x208   :  { %4216 = vmatpush.msrb.mxu1 %v4161_v54  ;;  %v4173_v54 = vld [vmem:[%s7258_s3 + $0x120] sm:$0xff] }
 0x209   :  { %4197 = vmatpush.msrb.mxu0 %v4144_v56  ;;  %4234 = vmatpush.msrb.mxu2 %v4179_v31 }
 0x20a   :  { %4217 = vmatpush.msrb.mxu1 %v4160_v58 }
 0x20b   :  { %4198 = vmatpush.msrb.mxu0 %v4143_v59  ;;  %4235 = vmatpush.msrb.mxu2 %v4178_v1 }
 0x20c   :  { %4218 = vmatpush.msrb.mxu1 %v4159_v62 }
 0x20d   :  { %4199 = vmatpush.msrb.mxu0 %v4142_v3  ;;  %4236 = vmatpush.msrb.mxu2 %v4177_v32 }
 0x20e   :  { %4219 = vmatpush.msrb.mxu1 %v4158_v63 }
 0x20f   :  { %4200 = vmatpush.msrb.mxu0 %v4141_v13  ;;  %4237 = vmatpush.msrb.mxu2 %v4176_v43 }
 0x210   :  { %4220 = vmatpush.msrb.mxu1 %v4157_v4 }
 0x211   :  { %4201 = vmatpush.msrb.mxu0 %v4140_v5  ;;  %4238 = vmatpush.msrb.mxu2 %v4175_v44 }
 0x212   :  { %4221 = vmatpush.msrb.mxu1 %v4156_v10 }
 0x213   :  { %4202 = vmatpush.msrb.mxu0 %v4139_v27  ;;  %4239 = vmatpush.msrb.mxu2 %v4174_v51  ;;  %v4261_v27 = vld [vmem:[%s7260_s5 + $0x58] sm:$0xff] }
 0x214   :  { %4222 = vmatpush.msrb.mxu1 %v4155_v14  ;;  %v4260_v14 = vld [vmem:[%s7260_s5 + $0x50] sm:$0xff]  ;;  %4274 = vmatpush.msrb.mxu3 %v4261_v27 }
 0x215   :  { %4203 = vmatpush.msrb.mxu0 %v4138_v38  ;;  %v3935_v52 = vpop.f32.mrf.mxu0  ;;  %4240 = vmatpush.msrb.mxu2 %v4173_v54  ;;  %v4259_v38 = vld [vmem:[%s7260_s5 + $0x48] sm:$0xff] }
 0x216   :  { %4223 = vmatpush.msrb.mxu1 %v4154_v18  ;;  %v3936_v46 = vadd.f32 %v3935_v52, %v3923_v60  ;;  %v3948_v36 = vpop.f32.mrf.mxu1  ;;  %4275 = vmatpush.msrb.mxu3 %v4260_v14  ;;  %v4258_v18 = vld [vmem:[%s7260_s5 + $0x40] sm:$0xff]  ;;  %v4257_v52 = vld [vmem:[%s7260_s5 + $0x38] sm:$0xff] }
 0x217   :  { %4204 = vmatpush.msrb.mxu0 %v4137_v19  ;;  %4241 = vmatpush.msrb.mxu2 %v4172_v55 }
 0x218   :  { %4224 = vmatpush.msrb.mxu1 %v4153_v20  ;;  %4205 = vmatmul.f32.vlgmr.msrb.gmra.mxu0 %v4134_v23  ;;  %v3949_v24 = vadd.f32 %v3948_v36, %v3936_v46 }
 0x219   :  { %4225 = vmatmul.f32.vlgmr.msrb.gmra.mxu1 %v4135_v0  ;;  %4242 = vmatpush.msrb.mxu2 %v4171_v57 }
 0x21a   :  { %4276 = vmatpush.msrb.mxu3 %v4259_v38 }
 0x21b   :  { %4243 = vmatpush.msrb.mxu2 %v4170_v61 }
 0x21c   :  { %4277 = vmatpush.msrb.mxu3 %v4258_v18 }
 0x21d   :  { %v3961_v26 = vpop.f32.mrf.mxu2  ;;  %v3937_v35 = vpop.f32.mrf.mxu0  ;;  %4244 = vmatpush.msrb.mxu2 %v4169_v16 }
 0x21e   :  { %v3962_v30 = vadd.f32 %v3961_v26, %v3949_v24  ;;  %v3974_v47 = vpop.f32.mrf.mxu3  ;;  %v3950_v49 = vpop.f32.mrf.mxu1  ;;  %v4256_v24 = vld [vmem:[%s7260_s5 + $0x30] sm:$0xff]  ;;  %4278 = vmatpush.msrb.mxu3 %v4257_v52 }
 0x21f   :  { %v4253_v49 = vld [vmem:[%s7260_s5 + $0x18] sm:$0xff] }
 0x220   :  { %v3975_v48 = vadd.f32 %v3974_v47, %v3962_v30  ;;  %v4255_v30 = vld [vmem:[%s7260_s5 + $0x28] sm:$0xff]  ;;  %4279 = vmatpush.msrb.mxu3 %v4256_v24  ;;  %v4254_v47 = vld [vmem:[%s7260_s5 + $0x20] sm:$0xff] }
 0x222   :  { %4280 = vmatpush.msrb.mxu3 %v4255_v30 }
 0x224   :  { %4281 = vmatpush.msrb.mxu3 %v4254_v47 }
 0x225   :  { %v3963_v22 = vpop.f32.mrf.mxu2 }
 0x226   :  { %v3976_v37 = vpop.f32.mrf.mxu3  ;;  %4282 = vmatpush.msrb.mxu3 %v4253_v49  ;;  %v4252_v22 = vld [vmem:[%s7260_s5 + $0x10] sm:$0xff] }
 0x227   :  { %v4251_v37 = vld [vmem:[%s7260_s5 + $0x8] sm:$0xff] }
 0x228   :  { %4283 = vmatpush.msrb.mxu3 %v4252_v22 }
 0x22a   :  { %4284 = vmatpush.msrb.mxu3 %v4251_v37 }
 0x235   :  { %v3987_v8 = vpop.f32.mrf.mxu0 }
 0x236   :  { %v4000_v42 = vpop.f32.mrf.mxu1  ;;  %v3988_v56 = vadd.f32 %v3987_v8, %v3975_v48  ;;  %v4250_v8 = vld [vmem:[%s7260_s5] sm:$0xff] }
 0x237   :  { %4285 = vmatpush.msrb.mxu3 %v4250_v8 }
 0x238   :  { %v4001_v62 = vadd.f32 %v4000_v42, %v3988_v56  ;;  %v6720_v42 = vld [vmem:[#allocation8] ss:$0 sm:$0xff] }
 0x23d   :  { %v4013_v39 = vpop.f32.mrf.mxu2  ;;  %v3989_v25 = vpop.f32.mrf.mxu0 }
 0x23e   :  { %v4026_v28 = vpop.f32.mrf.mxu3  ;;  %v4002_v40 = vpop.f32.mrf.mxu1  ;;  %v4014_v2 = vadd.f32 %v4013_v39, %v4001_v62 }
 0x240   :  { %v4027_v13 = vadd.f32 %v4026_v28, %v4014_v2 }
 0x245   :  { %v4015_v41 = vpop.f32.mrf.mxu2 }
 0x246   :  { %v4028_v45 = vpop.f32.mrf.mxu3 }
 0x255   :  { %v4039_v50 = vpop.f32.mrf.mxu0 }
 0x256   :  { %v4052_v53 = vpop.f32.mrf.mxu1  ;;  %v4040_v33 = vadd.f32 %v4039_v50, %v4027_v13 }
 0x258   :  { %v4053_v4 = vadd.f32 %v4052_v53, %v4040_v33 }
 0x25d   :  { %v4065_v21 = vpop.f32.mrf.mxu2  ;;  %v4041_v59 = vpop.f32.mrf.mxu0 }
 0x25e   :  { %v4078_v58 = vpop.f32.mrf.mxu3  ;;  %v4054_v60 = vpop.f32.mrf.mxu1  ;;  %v4066_v6 = vadd.f32 %v4065_v21, %v4053_v4 }
 0x260   :  { %v4079_v5 = vadd.f32 %v4078_v58, %v4066_v6 }
 0x265   :  { %v4067_v3 = vpop.f32.mrf.mxu2 }
 0x266   :  { %v4080_v63 = vpop.f32.mrf.mxu3 }
 0x275   :  { %v4091_v7 = vpop.f32.mrf.mxu0 }
 0x276   :  { %v4104_v9 = vpop.f32.mrf.mxu1  ;;  %v4092_v10 = vadd.f32 %v4091_v7, %v4079_v5 }
 0x278   :  { %v4105_v17 = vadd.f32 %v4104_v9, %v4092_v10 }
 0x27d   :  { %v4117_v19 = vpop.f32.mrf.mxu2  ;;  %v4093_v0 = vpop.f32.mrf.mxu0 }
 0x27e   :  { %v4118_v20 = vadd.f32 %v4117_v19, %v4105_v17  ;;  %v4130_v23 = vpop.f32.mrf.mxu3  ;;  %v4106_v46 = vpop.f32.mrf.mxu1 }
 0x280   :  { %v4131_v36 = vadd.f32 %v4130_v23, %v4118_v20 }
 0x282   :  { %v4136_v26 = vmax.f32 %v4131_v36, 0.0 }
 0x284   :  { %4245 = vmatmul.f32.vlgmr.msrb.gmra.mxu2 %v4136_v26 }
 0x285   :  { %v4119_v48 = vpop.f32.mrf.mxu2 }
 0x286   :  { %v4132_v35 = vpop.f32.mrf.mxu3 }
 0x295   :  { %v4206_v39 = vpop.f32.mrf.mxu0 }
 0x296   :  { %v4207_v28 = vadd.f32 %v6720_v42, %v4206_v39  ;;  %v4226_v25 = vpop.f32.mrf.mxu1 }
 0x298   :  { %v4227_v29 = vadd.f32 %v4226_v25, %v4207_v28 }
 0x307   :  { %v4246_v11 = vpop.f32.mrf.mxu2 }
 0x308   :  { %v4247_v40 = vadd.f32 %v4246_v11, %v4227_v29 }
 0x30a   :  { %v4249_v12 = vmax.f32 %v4247_v40, 0.0 }
 0x30c   :  { %6231 = vmatmul.msk.f32.vlgmr.msrb.gmra.mxu3 %vm4266_vm0, %v4249_v12 }
 0x38f   :  { %v4287_v15 = vpop.f32.mrf.mxu3 }
 0x390   :  { %v4288_v41 = vadd.f32 %v6721_v34, %v4287_v15 }
 0x392   :  { %4291 = vst.msk [vmem:[#allocation11] sm:$0x3] %vm4290_vm1, %v4288_v41 }
 0x393   :  { %4302 = dma.vmem_to_hbm [thread:$0]  %s4298_s8, 32, %s4300_s11, [#allocation4]  }
 0x394   :  { %6882 = dma.done.wait [#allocation4], 32  }
 0x395   :  { %6883 = vsyncadd [#allocation4], 4294967264 }
 0x396   :  { %4307 = vsyncpa [#allocation3], 1 }
 0x397   :  { %4308 = vsyncpa [#allocation6], 1 }
 0x398   :  { %4309 = vsyncpa [#allocation9], 1 }
 0x399   :  { %4310 = vsyncpa [#allocation4], 1 }

</bundles_post_ra>
